<compile_context>
chip_gen: v5e
topology: v5e:2x2
jax: 0.10.0
libtpu: 0.0.40
codegen_flags: <defaults>
</compile_context>

<pallas_src>
import jax
import jax.numpy as jnp
from jax.experimental import pallas as pl
from jax.experimental.pallas import tpu as pltpu

COMPUTE_DTYPE = jnp.bfloat16   # matmul operand dtype; accumulation is f32


def _round_up(x, m):
    return m * pl.cdiv(x, m)


# ---------------------------------------------------------------------------
# Stage 1 kernel: conv1(matmul) + 2x2 maxpool + bias + ReLU, transposed layout
# ---------------------------------------------------------------------------
def _conv1_pool_kernel(p00_ref, p01_ref, p10_ref, p11_ref, w_ref, b_ref,
                       o_ref):
    """p??_ref: [75, M_blk] im2col patches (one per pool-window position),
    w_ref: [6, 75], b_ref: [6, 1] f32, o_ref: [6, M_blk] (lane-dense M)."""
    w = w_ref[...]
    d00 = jnp.dot(w, p00_ref[...], preferred_element_type=jnp.float32)
    d01 = jnp.dot(w, p01_ref[...], preferred_element_type=jnp.float32)
    d10 = jnp.dot(w, p10_ref[...], preferred_element_type=jnp.float32)
    d11 = jnp.dot(w, p11_ref[...], preferred_element_type=jnp.float32)
    y = jnp.maximum(jnp.maximum(d00, d01), jnp.maximum(d10, d11))
    # bias + ReLU hoisted after the pool-max (ReLU monotone, shared bias).
    y = jnp.maximum(y + b_ref[...], 0.0)
    o_ref[...] = y.astype(o_ref.dtype)


# ---------------------------------------------------------------------------
# Stage 2 kernel: conv2 + 2x2 maxpool + bias + ReLU + fc1 + fc2 + fc3
# ---------------------------------------------------------------------------
def _conv2_pool_fc_kernel(q00_ref, q01_ref, q10_ref, q11_ref,
                          w2_ref, b2_ref, w1r_ref, bf1_ref,
                          wf2_ref, bf2_ref, wf3_ref, bf3_ref, o_ref):
    """q??_ref: [S=25, NB, 150] conv2 patches (s-major, NB % 8 == 0).
    w2_ref: [150, 16]; w1r_ref: [25, 16, 120] fc1 weight with the PyTorch
    NCHW flatten baked in; o_ref: [NB, 10] logits."""
    S, NB, K2 = q00_ref.shape
    w2 = w2_ref[...]

    def conv(q_ref):
        # Leading-dim collapse is tile-preserving because NB % 8 == 0.
        q2d = q_ref[...].reshape(S * NB, K2)
        return jnp.dot(q2d, w2, preferred_element_type=jnp.float32)

    y = jnp.maximum(jnp.maximum(conv(q00_ref), conv(q01_ref)),
                    jnp.maximum(conv(q10_ref), conv(q11_ref)))
    y = jnp.maximum(y + b2_ref[...], 0.0).astype(COMPUTE_DTYPE)   # [S*NB, 16]

    # fc1: out[n] = sum_s y[s*NB + n, :] @ w1r[s]   (NCHW flatten in w1r)
    w1r = w1r_ref[...]
    acc1 = jnp.dot(y[0:NB, :], w1r[0], preferred_element_type=jnp.float32)
    for s in range(1, S):
        acc1 = acc1 + jnp.dot(y[s * NB:(s + 1) * NB, :], w1r[s],
                              preferred_element_type=jnp.float32)
    h1 = jnp.maximum(acc1 + bf1_ref[...], 0.0).astype(COMPUTE_DTYPE)  # [NB,120]
    h2 = jnp.maximum(
        jnp.dot(h1, wf2_ref[...], preferred_element_type=jnp.float32)
        + bf2_ref[...], 0.0).astype(COMPUTE_DTYPE)                    # [NB,40]
    out = (jnp.dot(h2, wf3_ref[...], preferred_element_type=jnp.float32)
           + bf3_ref[...])                                            # [NB,10]
    o_ref[...] = out.astype(o_ref.dtype)


# ---------------------------------------------------------------------------
# Pallas wrappers
# ---------------------------------------------------------------------------
def conv1_relu_pool(patches, w_t, b_col, *, block_cols=4096):
    """patches: 4 x [75, M]; w_t: [6, 75]; b_col: [6, 1]  ->  [6, M] bf16."""
    K, M = patches[0].shape
    OC = w_t.shape[0]
    m_pad = _round_up(M, 128)
    bm = min(block_cols, m_pad)
    if m_pad // bm < 2 and m_pad >= 256:       # >=2 grid steps (v7x megacore)
        bm = _round_up(m_pad // 2, 128)
    grid = pl.cdiv(m_pad, bm)
    m_pad = bm * grid
    pads = [jnp.pad(p.astype(COMPUTE_DTYPE), ((0, 0), (0, m_pad - M)))
            for p in patches]
    patch_spec = pl.BlockSpec((K, bm), lambda i: (0, i))
    out = pl.pallas_call(
        _conv1_pool_kernel,
        out_shape=jax.ShapeDtypeStruct((OC, m_pad), COMPUTE_DTYPE),
        grid=(grid,),
        in_specs=[patch_spec] * 4 + [
            pl.BlockSpec((OC, K), lambda i: (0, 0)),
            pl.BlockSpec((OC, 1), lambda i: (0, 0)),
        ],
        out_specs=pl.BlockSpec((OC, bm), lambda i: (0, i)),
        compiler_params=pltpu.CompilerParams(
            dimension_semantics=("parallel",),
            vmem_limit_bytes=32 * 1024 * 1024),
    )(*pads, w_t.astype(COMPUTE_DTYPE), b_col.astype(jnp.float32))
    return out[:, :M]


def conv2_pool_fc(q_mats, w2_mat, b2_row, w1r, bf1, wf2, bf2, wf3, bf3, *,
                  batch_block=256):
    """q_mats: 4 x [25, N, 150] (s-major).  Batch-tiled fused conv2+fc stack."""
    S, N, K2 = q_mats[0].shape
    OC2 = w2_mat.shape[1]
    H1, H2, NO = w1r.shape[2], wf2.shape[1], wf3.shape[1]
    n8 = _round_up(N, 8)
    nb = min(_round_up(batch_block, 8), n8)
    if n8 // nb < 2 and n8 >= 16:              # >=2 grid steps when possible
        nb = _round_up(pl.cdiv(n8, 2), 8)
    grid = pl.cdiv(n8, nb)
    n_pad = nb * grid
    qs = [jnp.pad(q.astype(COMPUTE_DTYPE), ((0, 0), (0, n_pad - N), (0, 0)))
          for q in q_mats]
    q_spec = pl.BlockSpec((S, nb, K2), lambda b: (0, b, 0))
    out = pl.pallas_call(
        _conv2_pool_fc_kernel,
        out_shape=jax.ShapeDtypeStruct((n_pad, NO), jnp.float32),
        grid=(grid,),
        in_specs=[q_spec] * 4 + [
            pl.BlockSpec((K2, OC2), lambda b: (0, 0)),
            pl.BlockSpec((1, OC2), lambda b: (0, 0)),
            pl.BlockSpec((S, OC2, H1), lambda b: (0, 0, 0)),
            pl.BlockSpec((1, H1), lambda b: (0, 0)),
            pl.BlockSpec((H1, H2), lambda b: (0, 0)),
            pl.BlockSpec((1, H2), lambda b: (0, 0)),
            pl.BlockSpec((H2, NO), lambda b: (0, 0)),
            pl.BlockSpec((1, NO), lambda b: (0, 0)),
        ],
        out_specs=pl.BlockSpec((nb, NO), lambda b: (b, 0)),
        compiler_params=pltpu.CompilerParams(
            dimension_semantics=("parallel",),
            vmem_limit_bytes=48 * 1024 * 1024),
    )(*qs,
      w2_mat.astype(COMPUTE_DTYPE), b2_row.astype(jnp.float32),
      w1r.astype(COMPUTE_DTYPE), bf1.astype(jnp.float32),
      wf2.astype(COMPUTE_DTYPE), bf2.astype(jnp.float32),
      wf3.astype(COMPUTE_DTYPE), bf3.astype(jnp.float32))
    return out[:N]


# ---------------------------------------------------------------------------
# im2col glue (cheap XLA slices; one matrix per 2x2 pool-window position)
# ---------------------------------------------------------------------------
def _pooled_conv1_patches(x_nhwc, kh, kw):
    """NHWC -> 4 x [kh*kw*C, N*PH*PW]; rows (di,dj,c), cols (n,ph,pw)."""
    N, H, W, C = x_nhwc.shape
    oh, ow = H - kh + 1, W - kw + 1
    ph, pw = oh // 2, ow // 2
    mats = []
    for p in range(2):
        for q in range(2):
            rows = []
            for di in range(kh):
                for dj in range(kw):
                    xs = x_nhwc[:, p + di:p + di + 2 * ph - 1:2,
                                q + dj:q + dj + 2 * pw - 1:2, :]   # [N,PH,PW,C]
                    rows.append(xs.transpose(3, 0, 1, 2).reshape(C, N * ph * pw))
            mats.append(jnp.concatenate(rows, axis=0))
    return tuple(mats), (ph, pw)


def _pooled_conv2_patches(h_cnhw, kh, kw):
    """CNHW -> 4 x [PH*PW, N, kh*kw*C]; dim0 = spatial s, cols (di,dj,c)."""
    C, N, H, W = h_cnhw.shape
    oh, ow = H - kh + 1, W - kw + 1
    ph, pw = oh // 2, ow // 2
    mats = []
    for p in range(2):
        for q in range(2):
            cols = []
            for di in range(kh):
                for dj in range(kw):
                    hs = h_cnhw[:, :, p + di:p + di + 2 * ph - 1:2,
                                q + dj:q + dj + 2 * pw - 1:2]      # [C,N,PH,PW]
                    cols.append(hs.transpose(2, 3, 1, 0).reshape(ph * pw, N, C))
            mats.append(jnp.concatenate(cols, axis=2))
    return tuple(mats), (ph, pw)


# ---------------------------------------------------------------------------
# Parameters (deterministic, in-script; mirrors _initialize_weights)
# ---------------------------------------------------------------------------
def init_params(key):
    ks = jax.random.split(key, 8)

    def xavier_normal(k, fan_in, fan_out, shape):
        std = (2.0 / (fan_in + fan_out)) ** 0.5
        return std * jax.random.normal(k, shape, dtype=jnp.float32)

    return {
        "conv1_w": 0.1 * jax.random.normal(ks[0], (6, 3, 5, 5), dtype=jnp.float32),
        "conv1_b": jnp.zeros((6,), jnp.float32),
        "conv2_w": 0.1 * jax.random.normal(ks[1], (16, 6, 5, 5), dtype=jnp.float32),
        "conv2_b": jnp.zeros((16,), jnp.float32),
        "fc1_w": xavier_normal(ks[2], 400, 120, (400, 120)),
        "fc1_b": jnp.zeros((120,), jnp.float32),
        "fc2_w": xavier_normal(ks[3], 120, 40, (120, 40)),
        "fc2_b": jnp.zeros((40,), jnp.float32),
        "fc3_w": xavier_normal(ks[4], 40, 10, (40, 10)),
        "fc3_b": jnp.zeros((10,), jnp.float32),
    }


# ---------------------------------------------------------------------------
# Forward pass (mirrors Net.forward)
# ---------------------------------------------------------------------------
def net_forward(params, x_nchw):
    N = x_nchw.shape[0]
    x = x_nchw.transpose(0, 2, 3, 1).astype(COMPUTE_DTYPE)       # NHWC, once

    # stage 1: conv1 + ReLU + maxpool (one fused pallas_call, lane-dense M)
    w1_t = params["conv1_w"].transpose(2, 3, 1, 0).reshape(75, 6).T   # [6, 75]
    b1_col = params["conv1_b"].reshape(6, 1)
    p_mats, (ph1, pw1) = _pooled_conv1_patches(x, 5, 5)
    h1_t = conv1_relu_pool(p_mats, w1_t, b1_col)                 # [6, N*14*14]
    h1 = h1_t.reshape(6, N, ph1, pw1)                            # CNHW, no copy

    # stage 2: conv2 + ReLU + maxpool + fc1 + fc2 + fc3 (one fused pallas_call)
    w2_mat = params["conv2_w"].transpose(2, 3, 1, 0).reshape(150, 16)
    b2_row = params["conv2_b"].reshape(1, 16)
    q_mats, (ph2, pw2) = _pooled_conv2_patches(h1, 5, 5)         # 4 x [25,N,150]
    # fc1 weight with the PyTorch NCHW flatten (feature = c*25 + s) baked in
    w_fc1r = params["fc1_w"].reshape(16, ph2 * pw2, 120).transpose(1, 0, 2)

    return conv2_pool_fc(
        q_mats, w2_mat, b2_row,
        w_fc1r, params["fc1_b"].reshape(1, 120),
        params["fc2_w"], params["fc2_b"].reshape(1, 40),
        params["fc3_w"], params["fc3_b"].reshape(1, 10))


if __name__ == "__main__":
    key = jax.random.PRNGKey(0)
    pkey, xkey = jax.random.split(key)
    params = init_params(pkey)
    # CIFAR10-shaped input (fc1 = 16*5*5 forces 3x32x32 inputs).
    x = jax.random.normal(xkey, (2, 3, 32, 32), dtype=jnp.float32)

    out = jax.jit(net_forward)(params, x)
    out = jax.block_until_ready(out)
    assert out.shape == (2, 10) and out.dtype == jnp.float32
    assert bool(jnp.all(jnp.isfinite(out)))
    print("KERNEL_OK")
</pallas_src>

<mosaic_0001>
module attributes {stable_mosaic.version = 11 : i64} {
  func.func @_conv1_pool_kernel(%arg0: i32, %arg1: memref<75x256xbf16, #tpu.memory_space<vmem>>, %arg2: memref<75x256xbf16, #tpu.memory_space<vmem>>, %arg3: memref<75x256xbf16, #tpu.memory_space<vmem>>, %arg4: memref<75x256xbf16, #tpu.memory_space<vmem>>, %arg5: memref<6x75xbf16, #tpu.memory_space<vmem>>, %arg6: memref<6x1xf32, #tpu.memory_space<vmem>>, %arg7: memref<6x256xbf16, #tpu.memory_space<vmem>>) attributes {dimension_semantics = [#tpu.dimension_semantics<parallel>], iteration_bounds = array<i64: 2>, scalar_prefetch = 0 : i64, scratch_operands = 0 : i64, tpu.core_type = #tpu.core_type<tc>, window_params = [{transform_indices = @transform_0, window_bounds = array<i64: 75, 256>}, {transform_indices = @transform_1, window_bounds = array<i64: 75, 256>}, {transform_indices = @transform_2, window_bounds = array<i64: 75, 256>}, {transform_indices = @transform_3, window_bounds = array<i64: 75, 256>}, {pipeline_mode = #tpu.pipeline_mode<synchronous>, transform_indices = @transform_4, window_bounds = array<i64: 6, 75>}, {pipeline_mode = #tpu.pipeline_mode<synchronous>, transform_indices = @transform_5, window_bounds = array<i64: 6, 1>}, {transform_indices = @transform_6, window_bounds = array<i64: 6, 256>}]} {
    %c0 = arith.constant 0 : index
    %c0_0 = arith.constant 0 : index
    %0 = vector.load %arg5[%c0, %c0_0] : memref<6x75xbf16, #tpu.memory_space<vmem>>, vector<6x75xbf16>
    %c0_1 = arith.constant 0 : index
    %c0_2 = arith.constant 0 : index
    %1 = vector.load %arg1[%c0_1, %c0_2] : memref<75x256xbf16, #tpu.memory_space<vmem>>, vector<75x256xbf16>
    %cst = arith.constant dense<0.000000e+00> : vector<6x256xf32>
    %2 = tpu.matmul %0, %1, %cst {dimension_numbers = #tpu.dot_dimension_numbers<[1], [0], [0], [1], [0, 0, 1, 1], [], []>} : vector<6x75xbf16>, vector<75x256xbf16>, vector<6x256xf32> -> vector<6x256xf32>
    %c0_3 = arith.constant 0 : index
    %c0_4 = arith.constant 0 : index
    %3 = vector.load %arg2[%c0_3, %c0_4] : memref<75x256xbf16, #tpu.memory_space<vmem>>, vector<75x256xbf16>
    %cst_5 = arith.constant dense<0.000000e+00> : vector<6x256xf32>
    %4 = tpu.matmul %0, %3, %cst_5 {dimension_numbers = #tpu.dot_dimension_numbers<[1], [0], [0], [1], [0, 0, 1, 1], [], []>} : vector<6x75xbf16>, vector<75x256xbf16>, vector<6x256xf32> -> vector<6x256xf32>
    %c0_6 = arith.constant 0 : index
    %c0_7 = arith.constant 0 : index
    %5 = vector.load %arg3[%c0_6, %c0_7] : memref<75x256xbf16, #tpu.memory_space<vmem>>, vector<75x256xbf16>
    %cst_8 = arith.constant dense<0.000000e+00> : vector<6x256xf32>
    %6 = tpu.matmul %0, %5, %cst_8 {dimension_numbers = #tpu.dot_dimension_numbers<[1], [0], [0], [1], [0, 0, 1, 1], [], []>} : vector<6x75xbf16>, vector<75x256xbf16>, vector<6x256xf32> -> vector<6x256xf32>
    %c0_9 = arith.constant 0 : index
    %c0_10 = arith.constant 0 : index
    %7 = vector.load %arg4[%c0_9, %c0_10] : memref<75x256xbf16, #tpu.memory_space<vmem>>, vector<75x256xbf16>
    %cst_11 = arith.constant dense<0.000000e+00> : vector<6x256xf32>
    %8 = tpu.matmul %0, %7, %cst_11 {dimension_numbers = #tpu.dot_dimension_numbers<[1], [0], [0], [1], [0, 0, 1, 1], [], []>} : vector<6x75xbf16>, vector<75x256xbf16>, vector<6x256xf32> -> vector<6x256xf32>
    %9 = arith.maximumf %2, %4 : vector<6x256xf32>
    %10 = arith.maximumf %6, %8 : vector<6x256xf32>
    %11 = arith.maximumf %9, %10 : vector<6x256xf32>
    %c0_12 = arith.constant 0 : index
    %c0_13 = arith.constant 0 : index
    %12 = vector.load %arg6[%c0_12, %c0_13] : memref<6x1xf32, #tpu.memory_space<vmem>>, vector<6x1xf32>
    %13 = vector.broadcast %12 : vector<6x1xf32> to vector<6x256xf32>
    %14 = arith.addf %11, %13 : vector<6x256xf32>
    %cst_14 = arith.constant 0.000000e+00 : f32
    %15 = vector.broadcast %cst_14 : f32 to vector<6x256xf32>
    %16 = arith.maximumf %14, %15 : vector<6x256xf32>
    %17 = arith.truncf %16 : vector<6x256xf32> to vector<6x256xbf16>
    %c0_15 = arith.constant 0 : index
    %c0_16 = arith.constant 0 : index
    %18 = vector.load %arg7[%c0_15, %c0_16] : memref<6x256xbf16, #tpu.memory_space<vmem>>, vector<6x256xbf16>
    tpu.vector_store %arg7[%c0_15, %c0_16], %17 {strides = array<i32>} : memref<6x256xbf16, #tpu.memory_space<vmem>>, vector<6x256xbf16>,
    return
  }
  func.func @transform_0(%arg0: i32) -> (i32, i32) {
    %c0_i32 = arith.constant 0 : i32
    %c0_i32_0 = arith.constant 0 : i32
    return %c0_i32, %arg0 : i32, i32
  }
  func.func @transform_1(%arg0: i32) -> (i32, i32) {
    %c0_i32 = arith.constant 0 : i32
    %c0_i32_0 = arith.constant 0 : i32
    return %c0_i32, %arg0 : i32, i32
  }
  func.func @transform_2(%arg0: i32) -> (i32, i32) {
    %c0_i32 = arith.constant 0 : i32
    %c0_i32_0 = arith.constant 0 : i32
    return %c0_i32, %arg0 : i32, i32
  }
  func.func @transform_3(%arg0: i32) -> (i32, i32) {
    %c0_i32 = arith.constant 0 : i32
    %c0_i32_0 = arith.constant 0 : i32
    return %c0_i32, %arg0 : i32, i32
  }
  func.func @transform_4(%arg0: i32) -> (i32, i32) {
    %c0_i32 = arith.constant 0 : i32
    %c0_i32_0 = arith.constant 0 : i32
    %c0_i32_1 = arith.constant 0 : i32
    return %c0_i32, %c0_i32_0 : i32, i32
  }
  func.func @transform_5(%arg0: i32) -> (i32, i32) {
    %c0_i32 = arith.constant 0 : i32
    %c0_i32_0 = arith.constant 0 : i32
    %c0_i32_1 = arith.constant 0 : i32
    return %c0_i32, %c0_i32_0 : i32, i32
  }
  func.func @transform_6(%arg0: i32) -> (i32, i32) {
    %c0_i32 = arith.constant 0 : i32
    %c0_i32_0 = arith.constant 0 : i32
    return %c0_i32, %arg0 : i32, i32
  }
}

module attributes {stable_mosaic.version = 11 : i64} {
  func.func @_conv2_pool_fc_kernel(%arg0: i32, %arg1: memref<25x8x150xbf16, #tpu.memory_space<vmem>>, %arg2: memref<25x8x150xbf16, #tpu.memory_space<vmem>>, %arg3: memref<25x8x150xbf16, #tpu.memory_space<vmem>>, %arg4: memref<25x8x150xbf16, #tpu.memory_space<vmem>>, %arg5: memref<150x16xbf16, #tpu.memory_space<vmem>>, %arg6: memref<1x16xf32, #tpu.memory_space<vmem>>, %arg7: memref<25x16x120xbf16, #tpu.memory_space<vmem>>, %arg8: memref<1x120xf32, #tpu.memory_space<vmem>>, %arg9: memref<120x40xbf16, #tpu.memory_space<vmem>>, %arg10: memref<1x40xf32, #tpu.memory_space<vmem>>, %arg11: memref<40x10xbf16, #tpu.memory_space<vmem>>, %arg12: memref<1x10xf32, #tpu.memory_space<vmem>>, %arg13: memref<8x10xf32, #tpu.memory_space<vmem>>) attributes {dimension_semantics = [#tpu.dimension_semantics<parallel>], iteration_bounds = array<i64: 1>, scalar_prefetch = 0 : i64, scratch_operands = 0 : i64, tpu.core_type = #tpu.core_type<tc>, window_params = [{transform_indices = @transform_0, window_bounds = array<i64: 25, 8, 150>}, {transform_indices = @transform_1, window_bounds = array<i64: 25, 8, 150>}, {transform_indices = @transform_2, window_bounds = array<i64: 25, 8, 150>}, {transform_indices = @transform_3, window_bounds = array<i64: 25, 8, 150>}, {pipeline_mode = #tpu.pipeline_mode<synchronous>, transform_indices = @transform_4, window_bounds = array<i64: 150, 16>}, {pipeline_mode = #tpu.pipeline_mode<synchronous>, transform_indices = @transform_5, window_bounds = array<i64: 1, 16>}, {pipeline_mode = #tpu.pipeline_mode<synchronous>, transform_indices = @transform_6, window_bounds = array<i64: 25, 16, 120>}, {pipeline_mode = #tpu.pipeline_mode<synchronous>, transform_indices = @transform_7, window_bounds = array<i64: 1, 120>}, {pipeline_mode = #tpu.pipeline_mode<synchronous>, transform_indices = @transform_8, window_bounds = array<i64: 120, 40>}, {pipeline_mode = #tpu.pipeline_mode<synchronous>, transform_indices = @transform_9, window_bounds = array<i64: 1, 40>}, {pipeline_mode = #tpu.pipeline_mode<synchronous>, transform_indices = @transform_10, window_bounds = array<i64: 40, 10>}, {pipeline_mode = #tpu.pipeline_mode<synchronous>, transform_indices = @transform_11, window_bounds = array<i64: 1, 10>}, {transform_indices = @transform_12, window_bounds = array<i64: 8, 10>}]} {
    %c0 = arith.constant 0 : index
    %c0_0 = arith.constant 0 : index
    %0 = vector.load %arg5[%c0, %c0_0] : memref<150x16xbf16, #tpu.memory_space<vmem>>, vector<150x16xbf16>
    %c0_1 = arith.constant 0 : index
    %c0_2 = arith.constant 0 : index
    %c0_3 = arith.constant 0 : index
    %1 = vector.load %arg1[%c0_1, %c0_2, %c0_3] : memref<25x8x150xbf16, #tpu.memory_space<vmem>>, vector<25x8x150xbf16>
    %2 = vector.shape_cast %1 : vector<25x8x150xbf16> to vector<200x150xbf16>
    %cst = arith.constant dense<0.000000e+00> : vector<200x16xf32>
    %3 = tpu.matmul %2, %0, %cst {dimension_numbers = #tpu.dot_dimension_numbers<[1], [0], [0], [1], [0, 0, 1, 1], [], []>} : vector<200x150xbf16>, vector<150x16xbf16>, vector<200x16xf32> -> vector<200x16xf32>
    %c0_4 = arith.constant 0 : index
    %c0_5 = arith.constant 0 : index
    %c0_6 = arith.constant 0 : index
    %4 = vector.load %arg2[%c0_4, %c0_5, %c0_6] : memref<25x8x150xbf16, #tpu.memory_space<vmem>>, vector<25x8x150xbf16>
    %5 = vector.shape_cast %4 : vector<25x8x150xbf16> to vector<200x150xbf16>
    %cst_7 = arith.constant dense<0.000000e+00> : vector<200x16xf32>
    %6 = tpu.matmul %5, %0, %cst_7 {dimension_numbers = #tpu.dot_dimension_numbers<[1], [0], [0], [1], [0, 0, 1, 1], [], []>} : vector<200x150xbf16>, vector<150x16xbf16>, vector<200x16xf32> -> vector<200x16xf32>
    %7 = arith.maximumf %3, %6 : vector<200x16xf32>
    %c0_8 = arith.constant 0 : index
    %c0_9 = arith.constant 0 : index
    %c0_10 = arith.constant 0 : index
    %8 = vector.load %arg3[%c0_8, %c0_9, %c0_10] : memref<25x8x150xbf16, #tpu.memory_space<vmem>>, vector<25x8x150xbf16>
    %9 = vector.shape_cast %8 : vector<25x8x150xbf16> to vector<200x150xbf16>
    %cst_11 = arith.constant dense<0.000000e+00> : vector<200x16xf32>
    %10 = tpu.matmul %9, %0, %cst_11 {dimension_numbers = #tpu.dot_dimension_numbers<[1], [0], [0], [1], [0, 0, 1, 1], [], []>} : vector<200x150xbf16>, vector<150x16xbf16>, vector<200x16xf32> -> vector<200x16xf32>
    %c0_12 = arith.constant 0 : index
    %c0_13 = arith.constant 0 : index
    %c0_14 = arith.constant 0 : index
    %11 = vector.load %arg4[%c0_12, %c0_13, %c0_14] : memref<25x8x150xbf16, #tpu.memory_space<vmem>>, vector<25x8x150xbf16>
    %12 = vector.shape_cast %11 : vector<25x8x150xbf16> to vector<200x150xbf16>
    %cst_15 = arith.constant dense<0.000000e+00> : vector<200x16xf32>
    %13 = tpu.matmul %12, %0, %cst_15 {dimension_numbers = #tpu.dot_dimension_numbers<[1], [0], [0], [1], [0, 0, 1, 1], [], []>} : vector<200x150xbf16>, vector<150x16xbf16>, vector<200x16xf32> -> vector<200x16xf32>
    %14 = arith.maximumf %10, %13 : vector<200x16xf32>
    %15 = arith.maximumf %7, %14 : vector<200x16xf32>
    %c0_16 = arith.constant 0 : index
    %c0_17 = arith.constant 0 : index
    %16 = vector.load %arg6[%c0_16, %c0_17] : memref<1x16xf32, #tpu.memory_space<vmem>>, vector<1x16xf32>
    %17 = vector.broadcast %16 : vector<1x16xf32> to vector<200x16xf32>
    %18 = arith.addf %15, %17 : vector<200x16xf32>
    %cst_18 = arith.constant 0.000000e+00 : f32
    %19 = vector.broadcast %cst_18 : f32 to vector<200x16xf32>
    %20 = arith.maximumf %18, %19 : vector<200x16xf32>
    %21 = arith.truncf %20 : vector<200x16xf32> to vector<200x16xbf16>
    %c0_19 = arith.constant 0 : index
    %c0_20 = arith.constant 0 : index
    %c0_21 = arith.constant 0 : index
    %22 = vector.load %arg7[%c0_19, %c0_20, %c0_21] : memref<25x16x120xbf16, #tpu.memory_space<vmem>>, vector<25x16x120xbf16>
    %23 = vector.extract_strided_slice %21 {offsets = [0, 0], sizes = [8, 16], strides = [1, 1]} : vector<200x16xbf16> to vector<8x16xbf16>
    %24 = vector.extract_strided_slice %22 {offsets = [0, 0, 0], sizes = [1, 16, 120], strides = [1, 1, 1]} : vector<25x16x120xbf16> to vector<1x16x120xbf16>
    %25 = vector.shape_cast %24 : vector<1x16x120xbf16> to vector<16x120xbf16>
    %cst_22 = arith.constant dense<0.000000e+00> : vector<8x120xf32>
    %26 = tpu.matmul %23, %25, %cst_22 {dimension_numbers = #tpu.dot_dimension_numbers<[1], [0], [0], [1], [0, 0, 1, 1], [], []>} : vector<8x16xbf16>, vector<16x120xbf16>, vector<8x120xf32> -> vector<8x120xf32>
    %27 = vector.extract_strided_slice %21 {offsets = [8, 0], sizes = [8, 16], strides = [1, 1]} : vector<200x16xbf16> to vector<8x16xbf16>
    %28 = vector.extract_strided_slice %22 {offsets = [1, 0, 0], sizes = [1, 16, 120], strides = [1, 1, 1]} : vector<25x16x120xbf16> to vector<1x16x120xbf16>
    %29 = vector.shape_cast %28 : vector<1x16x120xbf16> to vector<16x120xbf16>
    %cst_23 = arith.constant dense<0.000000e+00> : vector<8x120xf32>
    %30 = tpu.matmul %27, %29, %cst_23 {dimension_numbers = #tpu.dot_dimension_numbers<[1], [0], [0], [1], [0, 0, 1, 1], [], []>} : vector<8x16xbf16>, vector<16x120xbf16>, vector<8x120xf32> -> vector<8x120xf32>
    %31 = arith.addf %26, %30 : vector<8x120xf32>
    %32 = vector.extract_strided_slice %21 {offsets = [16, 0], sizes = [8, 16], strides = [1, 1]} : vector<200x16xbf16> to vector<8x16xbf16>
    %33 = vector.extract_strided_slice %22 {offsets = [2, 0, 0], sizes = [1, 16, 120], strides = [1, 1, 1]} : vector<25x16x120xbf16> to vector<1x16x120xbf16>
    %34 = vector.shape_cast %33 : vector<1x16x120xbf16> to vector<16x120xbf16>
    %cst_24 = arith.constant dense<0.000000e+00> : vector<8x120xf32>
    %35 = tpu.matmul %32, %34, %cst_24 {dimension_numbers = #tpu.dot_dimension_numbers<[1], [0], [0], [1], [0, 0, 1, 1], [], []>} : vector<8x16xbf16>, vector<16x120xbf16>, vector<8x120xf32> -> vector<8x120xf32>
    %36 = arith.addf %31, %35 : vector<8x120xf32>
    %37 = vector.extract_strided_slice %21 {offsets = [24, 0], sizes = [8, 16], strides = [1, 1]} : vector<200x16xbf16> to vector<8x16xbf16>
    %38 = vector.extract_strided_slice %22 {offsets = [3, 0, 0], sizes = [1, 16, 120], strides = [1, 1, 1]} : vector<25x16x120xbf16> to vector<1x16x120xbf16>
    %39 = vector.shape_cast %38 : vector<1x16x120xbf16> to vector<16x120xbf16>
    %cst_25 = arith.constant dense<0.000000e+00> : vector<8x120xf32>
    %40 = tpu.matmul %37, %39, %cst_25 {dimension_numbers = #tpu.dot_dimension_numbers<[1], [0], [0], [1], [0, 0, 1, 1], [], []>} : vector<8x16xbf16>, vector<16x120xbf16>, vector<8x120xf32> -> vector<8x120xf32>
    %41 = arith.addf %36, %40 : vector<8x120xf32>
    %42 = vector.extract_strided_slice %21 {offsets = [32, 0], sizes = [8, 16], strides = [1, 1]} : vector<200x16xbf16> to vector<8x16xbf16>
    %43 = vector.extract_strided_slice %22 {offsets = [4, 0, 0], sizes = [1, 16, 120], strides = [1, 1, 1]} : vector<25x16x120xbf16> to vector<1x16x120xbf16>
    %44 = vector.shape_cast %43 : vector<1x16x120xbf16> to vector<16x120xbf16>
    %cst_26 = arith.constant dense<0.000000e+00> : vector<8x120xf32>
    %45 = tpu.matmul %42, %44, %cst_26 {dimension_numbers = #tpu.dot_dimension_numbers<[1], [0], [0], [1], [0, 0, 1, 1], [], []>} : vector<8x16xbf16>, vector<16x120xbf16>, vector<8x120xf32> -> vector<8x120xf32>
    %46 = arith.addf %41, %45 : vector<8x120xf32>
    %47 = vector.extract_strided_slice %21 {offsets = [40, 0], sizes = [8, 16], strides = [1, 1]} : vector<200x16xbf16> to vector<8x16xbf16>
    %48 = vector.extract_strided_slice %22 {offsets = [5, 0, 0], sizes = [1, 16, 120], strides = [1, 1, 1]} : vector<25x16x120xbf16> to vector<1x16x120xbf16>
    %49 = vector.shape_cast %48 : vector<1x16x120xbf16> to vector<16x120xbf16>
    %cst_27 = arith.constant dense<0.000000e+00> : vector<8x120xf32>
    %50 = tpu.matmul %47, %49, %cst_27 {dimension_numbers = #tpu.dot_dimension_numbers<[1], [0], [0], [1], [0, 0, 1, 1], [], []>} : vector<8x16xbf16>, vector<16x120xbf16>, vector<8x120xf32> -> vector<8x120xf32>
    %51 = arith.addf %46, %50 : vector<8x120xf32>
    %52 = vector.extract_strided_slice %21 {offsets = [48, 0], sizes = [8, 16], strides = [1, 1]} : vector<200x16xbf16> to vector<8x16xbf16>
    %53 = vector.extract_strided_slice %22 {offsets = [6, 0, 0], sizes = [1, 16, 120], strides = [1, 1, 1]} : vector<25x16x120xbf16> to vector<1x16x120xbf16>
    %54 = vector.shape_cast %53 : vector<1x16x120xbf16> to vector<16x120xbf16>
    %cst_28 = arith.constant dense<0.000000e+00> : vector<8x120xf32>
    %55 = tpu.matmul %52, %54, %cst_28 {dimension_numbers = #tpu.dot_dimension_numbers<[1], [0], [0], [1], [0, 0, 1, 1], [], []>} : vector<8x16xbf16>, vector<16x120xbf16>, vector<8x120xf32> -> vector<8x120xf32>
    %56 = arith.addf %51, %55 : vector<8x120xf32>
    %57 = vector.extract_strided_slice %21 {offsets = [56, 0], sizes = [8, 16], strides = [1, 1]} : vector<200x16xbf16> to vector<8x16xbf16>
    %58 = vector.extract_strided_slice %22 {offsets = [7, 0, 0], sizes = [1, 16, 120], strides = [1, 1, 1]} : vector<25x16x120xbf16> to vector<1x16x120xbf16>
    %59 = vector.shape_cast %58 : vector<1x16x120xbf16> to vector<16x120xbf16>
    %cst_29 = arith.constant dense<0.000000e+00> : vector<8x120xf32>
    %60 = tpu.matmul %57, %59, %cst_29 {dimension_numbers = #tpu.dot_dimension_numbers<[1], [0], [0], [1], [0, 0, 1, 1], [], []>} : vector<8x16xbf16>, vector<16x120xbf16>, vector<8x120xf32> -> vector<8x120xf32>
    %61 = arith.addf %56, %60 : vector<8x120xf32>
    %62 = vector.extract_strided_slice %21 {offsets = [64, 0], sizes = [8, 16], strides = [1, 1]} : vector<200x16xbf16> to vector<8x16xbf16>
    %63 = vector.extract_strided_slice %22 {offsets = [8, 0, 0], sizes = [1, 16, 120], strides = [1, 1, 1]} : vector<25x16x120xbf16> to vector<1x16x120xbf16>
    %64 = vector.shape_cast %63 : vector<1x16x120xbf16> to vector<16x120xbf16>
    %cst_30 = arith.constant dense<0.000000e+00> : vector<8x120xf32>
    %65 = tpu.matmul %62, %64, %cst_30 {dimension_numbers = #tpu.dot_dimension_numbers<[1], [0], [0], [1], [0, 0, 1, 1], [], []>} : vector<8x16xbf16>, vector<16x120xbf16>, vector<8x120xf32> -> vector<8x120xf32>
    %66 = arith.addf %61, %65 : vector<8x120xf32>
    %67 = vector.extract_strided_slice %21 {offsets = [72, 0], sizes = [8, 16], strides = [1, 1]} : vector<200x16xbf16> to vector<8x16xbf16>
    %68 = vector.extract_strided_slice %22 {offsets = [9, 0, 0], sizes = [1, 16, 120], strides = [1, 1, 1]} : vector<25x16x120xbf16> to vector<1x16x120xbf16>
    %69 = vector.shape_cast %68 : vector<1x16x120xbf16> to vector<16x120xbf16>
    %cst_31 = arith.constant dense<0.000000e+00> : vector<8x120xf32>
    %70 = tpu.matmul %67, %69, %cst_31 {dimension_numbers = #tpu.dot_dimension_numbers<[1], [0], [0], [1], [0, 0, 1, 1], [], []>} : vector<8x16xbf16>, vector<16x120xbf16>, vector<8x120xf32> -> vector<8x120xf32>
    %71 = arith.addf %66, %70 : vector<8x120xf32>
    %72 = vector.extract_strided_slice %21 {offsets = [80, 0], sizes = [8, 16], strides = [1, 1]} : vector<200x16xbf16> to vector<8x16xbf16>
    %73 = vector.extract_strided_slice %22 {offsets = [10, 0, 0], sizes = [1, 16, 120], strides = [1, 1, 1]} : vector<25x16x120xbf16> to vector<1x16x120xbf16>
    %74 = vector.shape_cast %73 : vector<1x16x120xbf16> to vector<16x120xbf16>
    %cst_32 = arith.constant dense<0.000000e+00> : vector<8x120xf32>
    %75 = tpu.matmul %72, %74, %cst_32 {dimension_numbers = #tpu.dot_dimension_numbers<[1], [0], [0], [1], [0, 0, 1, 1], [], []>} : vector<8x16xbf16>, vector<16x120xbf16>, vector<8x120xf32> -> vector<8x120xf32>
    %76 = arith.addf %71, %75 : vector<8x120xf32>
    %77 = vector.extract_strided_slice %21 {offsets = [88, 0], sizes = [8, 16], strides = [1, 1]} : vector<200x16xbf16> to vector<8x16xbf16>
    %78 = vector.extract_strided_slice %22 {offsets = [11, 0, 0], sizes = [1, 16, 120], strides = [1, 1, 1]} : vector<25x16x120xbf16> to vector<1x16x120xbf16>
    %79 = vector.shape_cast %78 : vector<1x16x120xbf16> to vector<16x120xbf16>
    %cst_33 = arith.constant dense<0.000000e+00> : vector<8x120xf32>
    %80 = tpu.matmul %77, %79, %cst_33 {dimension_numbers = #tpu.dot_dimension_numbers<[1], [0], [0], [1], [0, 0, 1, 1], [], []>} : vector<8x16xbf16>, vector<16x120xbf16>, vector<8x120xf32> -> vector<8x120xf32>
    %81 = arith.addf %76, %80 : vector<8x120xf32>
    %82 = vector.extract_strided_slice %21 {offsets = [96, 0], sizes = [8, 16], strides = [1, 1]} : vector<200x16xbf16> to vector<8x16xbf16>
    %83 = vector.extract_strided_slice %22 {offsets = [12, 0, 0], sizes = [1, 16, 120], strides = [1, 1, 1]} : vector<25x16x120xbf16> to vector<1x16x120xbf16>
    %84 = vector.shape_cast %83 : vector<1x16x120xbf16> to vector<16x120xbf16>
    %cst_34 = arith.constant dense<0.000000e+00> : vector<8x120xf32>
    %85 = tpu.matmul %82, %84, %cst_34 {dimension_numbers = #tpu.dot_dimension_numbers<[1], [0], [0], [1], [0, 0, 1, 1], [], []>} : vector<8x16xbf16>, vector<16x120xbf16>, vector<8x120xf32> -> vector<8x120xf32>
    %86 = arith.addf %81, %85 : vector<8x120xf32>
    %87 = vector.extract_strided_slice %21 {offsets = [104, 0], sizes = [8, 16], strides = [1, 1]} : vector<200x16xbf16> to vector<8x16xbf16>
    %88 = vector.extract_strided_slice %22 {offsets = [13, 0, 0], sizes = [1, 16, 120], strides = [1, 1, 1]} : vector<25x16x120xbf16> to vector<1x16x120xbf16>
    %89 = vector.shape_cast %88 : vector<1x16x120xbf16> to vector<16x120xbf16>
    %cst_35 = arith.constant dense<0.000000e+00> : vector<8x120xf32>
    %90 = tpu.matmul %87, %89, %cst_35 {dimension_numbers = #tpu.dot_dimension_numbers<[1], [0], [0], [1], [0, 0, 1, 1], [], []>} : vector<8x16xbf16>, vector<16x120xbf16>, vector<8x120xf32> -> vector<8x120xf32>
    %91 = arith.addf %86, %90 : vector<8x120xf32>
    %92 = vector.extract_strided_slice %21 {offsets = [112, 0], sizes = [8, 16], strides = [1, 1]} : vector<200x16xbf16> to vector<8x16xbf16>
    %93 = vector.extract_strided_slice %22 {offsets = [14, 0, 0], sizes = [1, 16, 120], strides = [1, 1, 1]} : vector<25x16x120xbf16> to vector<1x16x120xbf16>
    %94 = vector.shape_cast %93 : vector<1x16x120xbf16> to vector<16x120xbf16>
    %cst_36 = arith.constant dense<0.000000e+00> : vector<8x120xf32>
    %95 = tpu.matmul %92, %94, %cst_36 {dimension_numbers = #tpu.dot_dimension_numbers<[1], [0], [0], [1], [0, 0, 1, 1], [], []>} : vector<8x16xbf16>, vector<16x120xbf16>, vector<8x120xf32> -> vector<8x120xf32>
    %96 = arith.addf %91, %95 : vector<8x120xf32>
    %97 = vector.extract_strided_slice %21 {offsets = [120, 0], sizes = [8, 16], strides = [1, 1]} : vector<200x16xbf16> to vector<8x16xbf16>
    %98 = vector.extract_strided_slice %22 {offsets = [15, 0, 0], sizes = [1, 16, 120], strides = [1, 1, 1]} : vector<25x16x120xbf16> to vector<1x16x120xbf16>
    %99 = vector.shape_cast %98 : vector<1x16x120xbf16> to vector<16x120xbf16>
    %cst_37 = arith.constant dense<0.000000e+00> : vector<8x120xf32>
    %100 = tpu.matmul %97, %99, %cst_37 {dimension_numbers = #tpu.dot_dimension_numbers<[1], [0], [0], [1], [0, 0, 1, 1], [], []>} : vector<8x16xbf16>, vector<16x120xbf16>, vector<8x120xf32> -> vector<8x120xf32>
    %101 = arith.addf %96, %100 : vector<8x120xf32>
    %102 = vector.extract_strided_slice %21 {offsets = [128, 0], sizes = [8, 16], strides = [1, 1]} : vector<200x16xbf16> to vector<8x16xbf16>
    %103 = vector.extract_strided_slice %22 {offsets = [16, 0, 0], sizes = [1, 16, 120], strides = [1, 1, 1]} : vector<25x16x120xbf16> to vector<1x16x120xbf16>
    %104 = vector.shape_cast %103 : vector<1x16x120xbf16> to vector<16x120xbf16>
    %cst_38 = arith.constant dense<0.000000e+00> : vector<8x120xf32>
    %105 = tpu.matmul %102, %104, %cst_38 {dimension_numbers = #tpu.dot_dimension_numbers<[1], [0], [0], [1], [0, 0, 1, 1], [], []>} : vector<8x16xbf16>, vector<16x120xbf16>, vector<8x120xf32> -> vector<8x120xf32>
    %106 = arith.addf %101, %105 : vector<8x120xf32>
    %107 = vector.extract_strided_slice %21 {offsets = [136, 0], sizes = [8, 16], strides = [1, 1]} : vector<200x16xbf16> to vector<8x16xbf16>
    %108 = vector.extract_strided_slice %22 {offsets = [17, 0, 0], sizes = [1, 16, 120], strides = [1, 1, 1]} : vector<25x16x120xbf16> to vector<1x16x120xbf16>
    %109 = vector.shape_cast %108 : vector<1x16x120xbf16> to vector<16x120xbf16>
    %cst_39 = arith.constant dense<0.000000e+00> : vector<8x120xf32>
    %110 = tpu.matmul %107, %109, %cst_39 {dimension_numbers = #tpu.dot_dimension_numbers<[1], [0], [0], [1], [0, 0, 1, 1], [], []>} : vector<8x16xbf16>, vector<16x120xbf16>, vector<8x120xf32> -> vector<8x120xf32>
    %111 = arith.addf %106, %110 : vector<8x120xf32>
    %112 = vector.extract_strided_slice %21 {offsets = [144, 0], sizes = [8, 16], strides = [1, 1]} : vector<200x16xbf16> to vector<8x16xbf16>
    %113 = vector.extract_strided_slice %22 {offsets = [18, 0, 0], sizes = [1, 16, 120], strides = [1, 1, 1]} : vector<25x16x120xbf16> to vector<1x16x120xbf16>
    %114 = vector.shape_cast %113 : vector<1x16x120xbf16> to vector<16x120xbf16>
    %cst_40 = arith.constant dense<0.000000e+00> : vector<8x120xf32>
    %115 = tpu.matmul %112, %114, %cst_40 {dimension_numbers = #tpu.dot_dimension_numbers<[1], [0], [0], [1], [0, 0, 1, 1], [], []>} : vector<8x16xbf16>, vector<16x120xbf16>, vector<8x120xf32> -> vector<8x120xf32>
    %116 = arith.addf %111, %115 : vector<8x120xf32>
    %117 = vector.extract_strided_slice %21 {offsets = [152, 0], sizes = [8, 16], strides = [1, 1]} : vector<200x16xbf16> to vector<8x16xbf16>
    %118 = vector.extract_strided_slice %22 {offsets = [19, 0, 0], sizes = [1, 16, 120], strides = [1, 1, 1]} : vector<25x16x120xbf16> to vector<1x16x120xbf16>
    %119 = vector.shape_cast %118 : vector<1x16x120xbf16> to vector<16x120xbf16>
    %cst_41 = arith.constant dense<0.000000e+00> : vector<8x120xf32>
    %120 = tpu.matmul %117, %119, %cst_41 {dimension_numbers = #tpu.dot_dimension_numbers<[1], [0], [0], [1], [0, 0, 1, 1], [], []>} : vector<8x16xbf16>, vector<16x120xbf16>, vector<8x120xf32> -> vector<8x120xf32>
    %121 = arith.addf %116, %120 : vector<8x120xf32>
    %122 = vector.extract_strided_slice %21 {offsets = [160, 0], sizes = [8, 16], strides = [1, 1]} : vector<200x16xbf16> to vector<8x16xbf16>
    %123 = vector.extract_strided_slice %22 {offsets = [20, 0, 0], sizes = [1, 16, 120], strides = [1, 1, 1]} : vector<25x16x120xbf16> to vector<1x16x120xbf16>
    %124 = vector.shape_cast %123 : vector<1x16x120xbf16> to vector<16x120xbf16>
    %cst_42 = arith.constant dense<0.000000e+00> : vector<8x120xf32>
    %125 = tpu.matmul %122, %124, %cst_42 {dimension_numbers = #tpu.dot_dimension_numbers<[1], [0], [0], [1], [0, 0, 1, 1], [], []>} : vector<8x16xbf16>, vector<16x120xbf16>, vector<8x120xf32> -> vector<8x120xf32>
    %126 = arith.addf %121, %125 : vector<8x120xf32>
    %127 = vector.extract_strided_slice %21 {offsets = [168, 0], sizes = [8, 16], strides = [1, 1]} : vector<200x16xbf16> to vector<8x16xbf16>
    %128 = vector.extract_strided_slice %22 {offsets = [21, 0, 0], sizes = [1, 16, 120], strides = [1, 1, 1]} : vector<25x16x120xbf16> to vector<1x16x120xbf16>
    %129 = vector.shape_cast %128 : vector<1x16x120xbf16> to vector<16x120xbf16>
    %cst_43 = arith.constant dense<0.000000e+00> : vector<8x120xf32>
    %130 = tpu.matmul %127, %129, %cst_43 {dimension_numbers = #tpu.dot_dimension_numbers<[1], [0], [0], [1], [0, 0, 1, 1], [], []>} : vector<8x16xbf16>, vector<16x120xbf16>, vector<8x120xf32> -> vector<8x120xf32>
    %131 = arith.addf %126, %130 : vector<8x120xf32>
    %132 = vector.extract_strided_slice %21 {offsets = [176, 0], sizes = [8, 16], strides = [1, 1]} : vector<200x16xbf16> to vector<8x16xbf16>
    %133 = vector.extract_strided_slice %22 {offsets = [22, 0, 0], sizes = [1, 16, 120], strides = [1, 1, 1]} : vector<25x16x120xbf16> to vector<1x16x120xbf16>
    %134 = vector.shape_cast %133 : vector<1x16x120xbf16> to vector<16x120xbf16>
    %cst_44 = arith.constant dense<0.000000e+00> : vector<8x120xf32>
    %135 = tpu.matmul %132, %134, %cst_44 {dimension_numbers = #tpu.dot_dimension_numbers<[1], [0], [0], [1], [0, 0, 1, 1], [], []>} : vector<8x16xbf16>, vector<16x120xbf16>, vector<8x120xf32> -> vector<8x120xf32>
    %136 = arith.addf %131, %135 : vector<8x120xf32>
    %137 = vector.extract_strided_slice %21 {offsets = [184, 0], sizes = [8, 16], strides = [1, 1]} : vector<200x16xbf16> to vector<8x16xbf16>
    %138 = vector.extract_strided_slice %22 {offsets = [23, 0, 0], sizes = [1, 16, 120], strides = [1, 1, 1]} : vector<25x16x120xbf16> to vector<1x16x120xbf16>
    %139 = vector.shape_cast %138 : vector<1x16x120xbf16> to vector<16x120xbf16>
    %cst_45 = arith.constant dense<0.000000e+00> : vector<8x120xf32>
    %140 = tpu.matmul %137, %139, %cst_45 {dimension_numbers = #tpu.dot_dimension_numbers<[1], [0], [0], [1], [0, 0, 1, 1], [], []>} : vector<8x16xbf16>, vector<16x120xbf16>, vector<8x120xf32> -> vector<8x120xf32>
    %141 = arith.addf %136, %140 : vector<8x120xf32>
    %142 = vector.extract_strided_slice %21 {offsets = [192, 0], sizes = [8, 16], strides = [1, 1]} : vector<200x16xbf16> to vector<8x16xbf16>
    %143 = vector.extract_strided_slice %22 {offsets = [24, 0, 0], sizes = [1, 16, 120], strides = [1, 1, 1]} : vector<25x16x120xbf16> to vector<1x16x120xbf16>
    %144 = vector.shape_cast %143 : vector<1x16x120xbf16> to vector<16x120xbf16>
    %cst_46 = arith.constant dense<0.000000e+00> : vector<8x120xf32>
    %145 = tpu.matmul %142, %144, %cst_46 {dimension_numbers = #tpu.dot_dimension_numbers<[1], [0], [0], [1], [0, 0, 1, 1], [], []>} : vector<8x16xbf16>, vector<16x120xbf16>, vector<8x120xf32> -> vector<8x120xf32>
    %146 = arith.addf %141, %145 : vector<8x120xf32>
    %c0_47 = arith.constant 0 : index
    %c0_48 = arith.constant 0 : index
    %147 = vector.load %arg8[%c0_47, %c0_48] : memref<1x120xf32, #tpu.memory_space<vmem>>, vector<1x120xf32>
    %148 = vector.broadcast %147 : vector<1x120xf32> to vector<8x120xf32>
    %149 = arith.addf %146, %148 : vector<8x120xf32>
    %cst_49 = arith.constant 0.000000e+00 : f32
    %150 = vector.broadcast %cst_49 : f32 to vector<8x120xf32>
    %151 = arith.maximumf %149, %150 : vector<8x120xf32>
    %152 = arith.truncf %151 : vector<8x120xf32> to vector<8x120xbf16>
    %c0_50 = arith.constant 0 : index
    %c0_51 = arith.constant 0 : index
    %153 = vector.load %arg9[%c0_50, %c0_51] : memref<120x40xbf16, #tpu.memory_space<vmem>>, vector<120x40xbf16>
    %cst_52 = arith.constant dense<0.000000e+00> : vector<8x40xf32>
    %154 = tpu.matmul %152, %153, %cst_52 {dimension_numbers = #tpu.dot_dimension_numbers<[1], [0], [0], [1], [0, 0, 1, 1], [], []>} : vector<8x120xbf16>, vector<120x40xbf16>, vector<8x40xf32> -> vector<8x40xf32>
    %c0_53 = arith.constant 0 : index
    %c0_54 = arith.constant 0 : index
    %155 = vector.load %arg10[%c0_53, %c0_54] : memref<1x40xf32, #tpu.memory_space<vmem>>, vector<1x40xf32>
    %156 = vector.broadcast %155 : vector<1x40xf32> to vector<8x40xf32>
    %157 = arith.addf %154, %156 : vector<8x40xf32>
    %cst_55 = arith.constant 0.000000e+00 : f32
    %158 = vector.broadcast %cst_55 : f32 to vector<8x40xf32>
    %159 = arith.maximumf %157, %158 : vector<8x40xf32>
    %160 = arith.truncf %159 : vector<8x40xf32> to vector<8x40xbf16>
    %c0_56 = arith.constant 0 : index
    %c0_57 = arith.constant 0 : index
    %161 = vector.load %arg11[%c0_56, %c0_57] : memref<40x10xbf16, #tpu.memory_space<vmem>>, vector<40x10xbf16>
    %cst_58 = arith.constant dense<0.000000e+00> : vector<8x10xf32>
    %162 = tpu.matmul %160, %161, %cst_58 {dimension_numbers = #tpu.dot_dimension_numbers<[1], [0], [0], [1], [0, 0, 1, 1], [], []>} : vector<8x40xbf16>, vector<40x10xbf16>, vector<8x10xf32> -> vector<8x10xf32>
    %c0_59 = arith.constant 0 : index
    %c0_60 = arith.constant 0 : index
    %163 = vector.load %arg12[%c0_59, %c0_60] : memref<1x10xf32, #tpu.memory_space<vmem>>, vector<1x10xf32>
    %164 = vector.broadcast %163 : vector<1x10xf32> to vector<8x10xf32>
    %165 = arith.addf %162, %164 : vector<8x10xf32>
    %c0_61 = arith.constant 0 : index
    %c0_62 = arith.constant 0 : index
    %166 = vector.load %arg13[%c0_61, %c0_62] : memref<8x10xf32, #tpu.memory_space<vmem>>, vector<8x10xf32>
    tpu.vector_store %arg13[%c0_61, %c0_62], %165 {strides = array<i32>} : memref<8x10xf32, #tpu.memory_space<vmem>>, vector<8x10xf32>,
    return
  }
  func.func @transform_0(%arg0: i32) -> (i32, i32, i32) {
    %c0_i32 = arith.constant 0 : i32
    %c0_i32_0 = arith.constant 0 : i32
    %c0_i32_1 = arith.constant 0 : i32
    return %c0_i32, %arg0, %c0_i32_0 : i32, i32, i32
  }
  func.func @transform_1(%arg0: i32) -> (i32, i32, i32) {
    %c0_i32 = arith.constant 0 : i32
    %c0_i32_0 = arith.constant 0 : i32
    %c0_i32_1 = arith.constant 0 : i32
    return %c0_i32, %arg0, %c0_i32_0 : i32, i32, i32
  }
  func.func @transform_2(%arg0: i32) -> (i32, i32, i32) {
    %c0_i32 = arith.constant 0 : i32
    %c0_i32_0 = arith.constant 0 : i32
    %c0_i32_1 = arith.constant 0 : i32
    return %c0_i32, %arg0, %c0_i32_0 : i32, i32, i32
  }
  func.func @transform_3(%arg0: i32) -> (i32, i32, i32) {
    %c0_i32 = arith.constant 0 : i32
    %c0_i32_0 = arith.constant 0 : i32
    %c0_i32_1 = arith.constant 0 : i32
    return %c0_i32, %arg0, %c0_i32_0 : i32, i32, i32
  }
  func.func @transform_4(%arg0: i32) -> (i32, i32) {
    %c0_i32 = arith.constant 0 : i32
    %c0_i32_0 = arith.constant 0 : i32
    %c0_i32_1 = arith.constant 0 : i32
    return %c0_i32, %c0_i32_0 : i32, i32
  }
  func.func @transform_5(%arg0: i32) -> (i32, i32) {
    %c0_i32 = arith.constant 0 : i32
    %c0_i32_0 = arith.constant 0 : i32
    %c0_i32_1 = arith.constant 0 : i32
    return %c0_i32, %c0_i32_0 : i32, i32
  }
  func.func @transform_6(%arg0: i32) -> (i32, i32, i32) {
    %c0_i32 = arith.constant 0 : i32
    %c0_i32_0 = arith.constant 0 : i32
    %c0_i32_1 = arith.constant 0 : i32
    %c0_i32_2 = arith.constant 0 : i32
    return %c0_i32, %c0_i32_0, %c0_i32_1 : i32, i32, i32
  }
  func.func @transform_7(%arg0: i32) -> (i32, i32) {
    %c0_i32 = arith.constant 0 : i32
    %c0_i32_0 = arith.constant 0 : i32
    %c0_i32_1 = arith.constant 0 : i32
    return %c0_i32, %c0_i32_0 : i32, i32
  }
  func.func @transform_8(%arg0: i32) -> (i32, i32) {
    %c0_i32 = arith.constant 0 : i32
    %c0_i32_0 = arith.constant 0 : i32
    %c0_i32_1 = arith.constant 0 : i32
    return %c0_i32, %c0_i32_0 : i32, i32
  }
  func.func @transform_9(%arg0: i32) -> (i32, i32) {
    %c0_i32 = arith.constant 0 : i32
    %c0_i32_0 = arith.constant 0 : i32
    %c0_i32_1 = arith.constant 0 : i32
    return %c0_i32, %c0_i32_0 : i32, i32
  }
  func.func @transform_10(%arg0: i32) -> (i32, i32) {
    %c0_i32 = arith.constant 0 : i32
    %c0_i32_0 = arith.constant 0 : i32
    %c0_i32_1 = arith.constant 0 : i32
    return %c0_i32, %c0_i32_0 : i32, i32
  }
  func.func @transform_11(%arg0: i32) -> (i32, i32) {
    %c0_i32 = arith.constant 0 : i32
    %c0_i32_0 = arith.constant 0 : i32
    %c0_i32_1 = arith.constant 0 : i32
    return %c0_i32, %c0_i32_0 : i32, i32
  }
  func.func @transform_12(%arg0: i32) -> (i32, i32) {
    %c0_i32 = arith.constant 0 : i32
    %c0_i32_0 = arith.constant 0 : i32
    return %arg0, %c0_i32 : i32, i32
  }
}

</mosaic_0001>

<bundles_post_ra>
// kernel: net_forward.2
= control target key start
LH: loop header
LB: loop body
LE: loop exit
PB: predicated region body
PF: predicated region fallthrough
CT: control target
= control target key end

     0   :  { %s1431_s21 = smov 0   ;;  %s1433_s22 = smov 0   ;;  %s1638_s0 = inlined_call_operand.vmem [shape: bf16[75,512], index: 0, kind: input, shape index: {}]   ;;  %s1639_s1 = inlined_call_operand.vmem [shape: bf16[75,512], index: 1, kind: input, shape index: {}]   ;;  %s1640_s2 = inlined_call_operand.vmem [shape: bf16[75,512], index: 2, kind: input, shape index: {}]   ;;  %s1641_s3 = inlined_call_operand.vmem [shape: bf16[75,512], index: 3, kind: input, shape index: {}]   ;;  %s1642_s4 = inlined_call_operand.vmem [shape: bf16[6,75], index: 4, kind: input, shape index: {}]   ;;  %s1643_s5 = inlined_call_operand.vmem [shape: f32[6,1], index: 5, kind: input, shape index: {}]   ;;  %s1644_s6 = inlined_call_operand.vmem [shape: bf16[6,512], index: 6, kind: output, shape index: {}]  }
   0x1   :  { %s1435_s23 = smov 0  }
   0x2 LB: > { %s1109_s24 = sadd.s32 4294967295, %s1392_s23   ;;  %s1448_s25 = sadd.s32 1, %s1392_s23   ;;  %s1392_s23 = sphi %s1435_s23, %s1648_s23   ;;  %s1388_s22 = sphi %s1433_s22, %s1647_s22   ;;  %s1384_s21 = sphi %s1431_s21, %s1646_s21  }
   0x3   : > { %s20_s26 = ssub.s32 %s1392_s23, %s1448_s25  ;;  %s23_s27 = sadd.s32 1, %s1388_s22 }
   0x4   : > { %p21_p0 = scmp.eq.s32.totalorder %s20_s26, 0  ;;  %p30_p1 = scmp.ne.s32.totalorder %s1388_s22, %s1384_s21 }
   0x5   : > { %p31_p2 = scmp.eq.s32.totalorder %s1392_s23, 0  ;;  %p1112_p4 = scmp.ge.s32.totalorder %s1392_s23, 2 }
   0x6   : > { %s1457_s28 = scalar_select %p21_p0, %s1388_s22, %s23_s27  }
   0x7   : > { %p1459_p3 = por %p31_p2, %p30_p1  ;;  %208 = sbr.rel (%p1112_p4) target bundleno = 68 (0x44), region = 24 }
   0xc   : > { %211 = sbr.rel (!%p1459_p3) target bundleno = 26 (0x1a), region = 28  ;;  %s213_s30 = sand.u32 (%p1459_p3), 1, %s1388_s22  }
   0xd   : > { %s1294_s7 = sshll.u32 (%p1459_p3), %s1392_s23, 3  ;;  %s1338_s8 = smul.u32 (%p1459_p3), 80, %s213_s30 }
   0xe   : > { %s218_s11 = scalar_lea.vmem (%p1459_p3), %s1638_s0, %s1294_s7 }
   0xf   : > { %v265_v0 = vld [vmem:[%s218_s11] sm:$0xff] (%p1459_p3)  ;;  %v267_v1 = vld [vmem:[%s218_s11 + $0x10] sm:$0xff] (%p1459_p3)  ;;  %s215_s12 = scalar_lea.vmem (%p1459_p3), [#allocation2], %s1338_s8 }
  0x10   : > { %v269_v2 = vld [vmem:[%s218_s11 + $0x20] sm:$0xff] (%p1459_p3)  ;;  %266 = vst [vmem:[%s215_s12] sm:$0xff] (%p1459_p3), %v265_v0  ;;  %v271_v3 = vld [vmem:[%s218_s11 + $0x30] sm:$0xff] (%p1459_p3) }
  0x11   : > { %268 = vst [vmem:[%s215_s12 + $0x8] sm:$0xff] %v267_v1  ;;  %v273_v4 = vld [vmem:[%s218_s11 + $0x40] sm:$0xff]  ;;  %v275_v5 = vld [vmem:[%s218_s11 + $0x50] sm:$0xff] }
  0x12   : > { %270 = vst [vmem:[%s215_s12 + $0x10] sm:$0xff] %v269_v2  ;;  %v277_v6 = vld [vmem:[%s218_s11 + $0x60] sm:$0xff]  ;;  %v279_v7 = vld [vmem:[%s218_s11 + $0x70] sm:$0xff] }
  0x13   : > { %272 = vst [vmem:[%s215_s12 + $0x18] sm:$0xff] %v271_v3  ;;  %v281_v8 = vld [vmem:[%s218_s11 + $0x80] sm:$0xff]  ;;  %v283_v9 = vld [vmem:[%s218_s11 + $0x90] sm:$0xff] }
  0x14   : > { %274 = vst [vmem:[%s215_s12 + $0x20] sm:$0xff] %v273_v4 }
  0x15   : > { %276 = vst [vmem:[%s215_s12 + $0x28] sm:$0xff] %v275_v5 }
  0x16   : > { %278 = vst [vmem:[%s215_s12 + $0x30] sm:$0xff] %v277_v6 }
  0x17   : > { %280 = vst [vmem:[%s215_s12 + $0x38] sm:$0xff] %v279_v7 }
  0x18   : > { %282 = vst [vmem:[%s215_s12 + $0x40] sm:$0xff] %v281_v8 }
  0x19   : > { %284 = vst [vmem:[%s215_s12 + $0x48] sm:$0xff] %v283_v9 }
  0x1a PF: > { %290 = sbr.rel (!%p1459_p3) target bundleno = 40 (0x28), region = 66  ;;  %s292_s13 = sand.u32 (%p1459_p3), 1, %s1388_s22  }
  0x1b   : > { %s1295_s14 = sshll.u32 (%p1459_p3), %s1392_s23, 3  ;;  %s1339_s15 = smul.u32 (%p1459_p3), 80, %s292_s13 }
  0x1c   : > { %s297_s18 = scalar_lea.vmem (%p1459_p3), %s1639_s1, %s1295_s14 }
  0x1d   : > { %v344_v10 = vld [vmem:[%s297_s18] sm:$0xff] (%p1459_p3)  ;;  %v346_v11 = vld [vmem:[%s297_s18 + $0x10] sm:$0xff] (%p1459_p3)  ;;  %s294_s19 = scalar_lea.vmem (%p1459_p3), [#allocation3], %s1339_s15 }
  0x1e   : > { %v348_v12 = vld [vmem:[%s297_s18 + $0x20] sm:$0xff] (%p1459_p3)  ;;  %345 = vst [vmem:[%s294_s19] sm:$0xff] (%p1459_p3), %v344_v10  ;;  %v350_v13 = vld [vmem:[%s297_s18 + $0x30] sm:$0xff] (%p1459_p3) }
  0x1f   : > { %347 = vst [vmem:[%s294_s19 + $0x8] sm:$0xff] %v346_v11  ;;  %v352_v14 = vld [vmem:[%s297_s18 + $0x40] sm:$0xff]  ;;  %v354_v15 = vld [vmem:[%s297_s18 + $0x50] sm:$0xff] }
  0x20   : > { %349 = vst [vmem:[%s294_s19 + $0x10] sm:$0xff] %v348_v12  ;;  %v356_v16 = vld [vmem:[%s297_s18 + $0x60] sm:$0xff]  ;;  %v358_v17 = vld [vmem:[%s297_s18 + $0x70] sm:$0xff] }
  0x21   : > { %351 = vst [vmem:[%s294_s19 + $0x18] sm:$0xff] %v350_v13  ;;  %v360_v18 = vld [vmem:[%s297_s18 + $0x80] sm:$0xff]  ;;  %v362_v19 = vld [vmem:[%s297_s18 + $0x90] sm:$0xff] }
  0x22   : > { %353 = vst [vmem:[%s294_s19 + $0x20] sm:$0xff] %v352_v14 }
  0x23   : > { %355 = vst [vmem:[%s294_s19 + $0x28] sm:$0xff] %v354_v15 }
  0x24   : > { %357 = vst [vmem:[%s294_s19 + $0x30] sm:$0xff] %v356_v16 }
  0x25   : > { %359 = vst [vmem:[%s294_s19 + $0x38] sm:$0xff] %v358_v17 }
  0x26   : > { %361 = vst [vmem:[%s294_s19 + $0x40] sm:$0xff] %v360_v18 }
  0x27   : > { %363 = vst [vmem:[%s294_s19 + $0x48] sm:$0xff] %v362_v19 }
  0x28 PF: > { %369 = sbr.rel (!%p1459_p3) target bundleno = 54 (0x36), region = 104  ;;  %s371_s20 = sand.u32 (%p1459_p3), 1, %s1388_s22  }
  0x29   : > { %s1296_s26 = sshll.u32 (%p1459_p3), %s1392_s23, 3  ;;  %s1340_s27 = smul.u32 (%p1459_p3), 80, %s371_s20 }
  0x2a   : > { %s376_s8 = scalar_lea.vmem (%p1459_p3), %s1640_s2, %s1296_s26 }
  0x2b   : > { %v423_v20 = vld [vmem:[%s376_s8] sm:$0xff] (%p1459_p3)  ;;  %v425_v21 = vld [vmem:[%s376_s8 + $0x10] sm:$0xff] (%p1459_p3)  ;;  %s373_s9 = scalar_lea.vmem (%p1459_p3), [#allocation4], %s1340_s27 }
  0x2c   : > { %v427_v22 = vld [vmem:[%s376_s8 + $0x20] sm:$0xff] (%p1459_p3)  ;;  %424 = vst [vmem:[%s373_s9] sm:$0xff] (%p1459_p3), %v423_v20  ;;  %v429_v23 = vld [vmem:[%s376_s8 + $0x30] sm:$0xff] (%p1459_p3) }
  0x2d   : > { %426 = vst [vmem:[%s373_s9 + $0x8] sm:$0xff] %v425_v21  ;;  %v431_v24 = vld [vmem:[%s376_s8 + $0x40] sm:$0xff]  ;;  %v433_v25 = vld [vmem:[%s376_s8 + $0x50] sm:$0xff] }
  0x2e   : > { %428 = vst [vmem:[%s373_s9 + $0x10] sm:$0xff] %v427_v22  ;;  %v435_v26 = vld [vmem:[%s376_s8 + $0x60] sm:$0xff]  ;;  %v437_v27 = vld [vmem:[%s376_s8 + $0x70] sm:$0xff] }
  0x2f   : > { %430 = vst [vmem:[%s373_s9 + $0x18] sm:$0xff] %v429_v23  ;;  %v439_v28 = vld [vmem:[%s376_s8 + $0x80] sm:$0xff]  ;;  %v441_v29 = vld [vmem:[%s376_s8 + $0x90] sm:$0xff] }
  0x30   : > { %432 = vst [vmem:[%s373_s9 + $0x20] sm:$0xff] %v431_v24 }
  0x31   : > { %434 = vst [vmem:[%s373_s9 + $0x28] sm:$0xff] %v433_v25 }
  0x32   : > { %436 = vst [vmem:[%s373_s9 + $0x30] sm:$0xff] %v435_v26 }
  0x33   : > { %438 = vst [vmem:[%s373_s9 + $0x38] sm:$0xff] %v437_v27 }
  0x34   : > { %440 = vst [vmem:[%s373_s9 + $0x40] sm:$0xff] %v439_v28 }
  0x35   : > { %442 = vst [vmem:[%s373_s9 + $0x48] sm:$0xff] %v441_v29 }
  0x36 PF: > { %448 = sbr.rel (!%p1459_p3) target bundleno = 68 (0x44), region = 142  ;;  %s450_s10 = sand.u32 (%p1459_p3), 1, %s1388_s22  }
  0x37   : > { %s1297_s11 = sshll.u32 (%p1459_p3), %s1392_s23, 3  ;;  %s1341_s12 = smul.u32 (%p1459_p3), 80, %s450_s10 }
  0x38   : > { %s455_s15 = scalar_lea.vmem (%p1459_p3), %s1641_s3, %s1297_s11 }
  0x39   : > { %v502_v30 = vld [vmem:[%s455_s15] sm:$0xff] (%p1459_p3)  ;;  %v504_v31 = vld [vmem:[%s455_s15 + $0x10] sm:$0xff] (%p1459_p3)  ;;  %s452_s16 = scalar_lea.vmem (%p1459_p3), [#allocation5], %s1341_s12 }
  0x3a   : > { %v506_v32 = vld [vmem:[%s455_s15 + $0x20] sm:$0xff] (%p1459_p3)  ;;  %503 = vst [vmem:[%s452_s16] sm:$0xff] (%p1459_p3), %v502_v30  ;;  %v508_v33 = vld [vmem:[%s455_s15 + $0x30] sm:$0xff] (%p1459_p3) }
  0x3b   : > { %505 = vst [vmem:[%s452_s16 + $0x8] sm:$0xff] %v504_v31  ;;  %v510_v34 = vld [vmem:[%s455_s15 + $0x40] sm:$0xff]  ;;  %v512_v35 = vld [vmem:[%s455_s15 + $0x50] sm:$0xff] }
  0x3c   : > { %507 = vst [vmem:[%s452_s16 + $0x10] sm:$0xff] %v506_v32  ;;  %v514_v36 = vld [vmem:[%s455_s15 + $0x60] sm:$0xff]  ;;  %v516_v37 = vld [vmem:[%s455_s15 + $0x70] sm:$0xff] }
  0x3d   : > { %509 = vst [vmem:[%s452_s16 + $0x18] sm:$0xff] %v508_v33  ;;  %v518_v38 = vld [vmem:[%s455_s15 + $0x80] sm:$0xff]  ;;  %v520_v39 = vld [vmem:[%s455_s15 + $0x90] sm:$0xff] }
  0x3e   : > { %511 = vst [vmem:[%s452_s16 + $0x20] sm:$0xff] %v510_v34 }
  0x3f   : > { %513 = vst [vmem:[%s452_s16 + $0x28] sm:$0xff] %v512_v35 }
  0x40   : > { %515 = vst [vmem:[%s452_s16 + $0x30] sm:$0xff] %v514_v36 }
  0x41   : > { %517 = vst [vmem:[%s452_s16 + $0x38] sm:$0xff] %v516_v37 }
  0x42   : > { %519 = vst [vmem:[%s452_s16 + $0x40] sm:$0xff] %v518_v38 }
  0x43   : > { %521 = vst [vmem:[%s452_s16 + $0x48] sm:$0xff] %v520_v39 }
  0x44 PF: > { %p1121_p5 = scmp.ge.s32.totalorder %s1392_s23, 1  ;;  %p526_p6 = scmp.lt.s32.totalorder %s1392_s23, 3 }
  0x46   : > { %p527_p7 = pnand %p1121_p5, %p526_p6 }
  0x47   : > { %s533_s29 = sand.u32 (!%p527_p7), 1, %s1384_s21   ;;  %s1122_s8 = sshll.u32 (!%p527_p7), %s1109_s24, 1 }
  0x48   : > { %530 = sbr.rel (%p527_p7) target bundleno = 267 (0x10b), region = 180  ;;  %p600_p8 = scmp.lt.s32.totalorder (!%p527_p7), %s1122_s8, 3 }
  0x49   : > { %s1495_s17 = smul.u32 (!%p527_p7), 80, %s533_s29 }
  0x4b   : > { %s1500_s18 = scalar_lea.vmem (!%p527_p7), [#allocation2], %s1495_s17  ;;  %s1507_s21 = scalar_lea.vmem (!%p527_p7), [#allocation3], %s1495_s17 }
  0x4c   : > { %s1549_s19 = scalar_lea.vmem (!%p527_p7), [#allocation4], %s1495_s17  ;;  %s1556_s20 = scalar_lea.vmem (!%p527_p7), [#allocation5], %s1495_s17 }
  0x4d   : > { %vm669_vm0 = vcmask 1044480   ;;  %vm670_vm1 = vcmask 1045504   ;;  %v1394_v40 = vmov 65535   ;;  %v1158_v43 = vld [vmem:[%s1500_s18 + $0x40] sm:$0xf]  ;;  %vm665_vm2 = vcmask 613376  }
  0x4e   : > { %v671_v41 = vsel %vm669_vm0, 4294967295, %v1394_v40  ;;  %v1307_v44 = vld [vmem:[%s1500_s18 + $0x44] sm:$0x30]  ;;  %v1306_v45 = vld [vmem:[%s1500_s18 + $0x44] sm:$0xf]  ;;  %s1650_s8 = smov (!%p600_p8, %s1122_s8), 3 }
  0x4f   : > { %v1497_v42 = vsel %vm670_vm1, %v671_v41, 0  ;;  %v1159_v46 = vor.u32 %v1307_v44, %v1158_v43  ;;  %v1160_v47 = vld [vmem:[%s1500_s18 + $0x48] sm:$0x30]  ;;  %v1200_v48 = vld [vmem:[%s1507_s21 + $0x40] sm:$0xf]  ;;  %s1123_s9 = sshll.u32 %s1650_s8, 2 }
  0x50   : > { %v1317_v49 = vld [vmem:[%s1507_s21 + $0x44] sm:$0x30]  ;;  %v1163_v50 = vor.u32 %v1306_v45, %v1160_v47  ;;  %v1316_v52 = vld [vmem:[%s1507_s21 + $0x44] sm:$0xf]  ;;  %v1202_v53 = vld [vmem:[%s1507_s21 + $0x48] sm:$0x30]  ;;  %s603_s10 = scalar_lea.vmem %s1644_s6, %s1123_s9 }
  0x51   : > { %v1201_v51 = vor.u32 %v1317_v49, %v1200_v48  ;;  %v1150_v54 = vld [vmem:[%s1500_s18 + $0x30] sm:$0xf]  ;;  %v674_v55 = vand.u32 %v1159_v46, %v1497_v42  ;;  %v1205_v56 = vor.u32 %v1316_v52, %v1202_v53  ;;  %v1305_v57 = vld [vmem:[%s1500_s18 + $0x34] sm:$0xf0]  ;;  %v1304_v58 = vld [vmem:[%s1500_s18 + $0x34] sm:$0xf] }
  0x52   : > { %v1152_v59 = vld [vmem:[%s1500_s18 + $0x38] sm:$0xf0]  ;;  %v677_v60 = vand.u32 %v1163_v50, %v1497_v42  ;;  %v1192_v62 = vld [vmem:[%s1507_s21 + $0x30] sm:$0xf]  ;;  %v1315_v63 = vld [vmem:[%s1507_s21 + $0x34] sm:$0xf0]  ;;  %v1151_v2 = vor.u32 %v1305_v57, %v1150_v54 }
  0x53   : > { %v764_v61 = vand.u32 %v1201_v51, %v1497_v42  ;;  %v1314_v0 = vld [vmem:[%s1507_s21 + $0x34] sm:$0xf]  ;;  %682 = vmatpush.bf16.msra.mxu0 %v674_v55  ;;  %v767_v1 = vand.u32 %v1205_v56, %v1497_v42  ;;  %v1194_v3 = vld [vmem:[%s1507_s21 + $0x38] sm:$0xf0]  ;;  %v1155_v4 = vor.u32 %v1304_v58, %v1152_v59  ;;  %v1193_v5 = vor.u32 %v1315_v63, %v1192_v62  ;;  %v1142_v6 = vld [vmem:[%s1500_s18 + $0x20] sm:$0xf] }
  0x54   : > { %695 = vmatpush.bf16.msra.mxu1 %v677_v60  ;;  %v1303_v7 = vld [vmem:[%s1500_s18 + $0x24] sm:$0xf0]  ;;  %v1302_v8 = vld [vmem:[%s1500_s18 + $0x24] sm:$0xf]  ;;  %v1197_v9 = vor.u32 %v1314_v0, %v1194_v3  ;;  %v1144_v10 = vld [vmem:[%s1500_s18 + $0x28] sm:$0xf0] }
  0x55   : > { %772 = vmatpush.bf16.msra.mxu2 %v764_v61  ;;  %785 = vmatpush.bf16.msra.mxu3 %v767_v1  ;;  %v1184_v11 = vld [vmem:[%s1507_s21 + $0x20] sm:$0xf]  ;;  %v1313_v12 = vld [vmem:[%s1507_s21 + $0x24] sm:$0xf0]  ;;  %v1312_v13 = vld [vmem:[%s1507_s21 + $0x24] sm:$0xf]  ;;  %v1143_v15 = vor.u32 %v1303_v7, %v1142_v6  ;;  %v1147_v17 = vor.u32 %v1302_v8, %v1144_v10 }
  0x56   : > { %v1186_v14 = vld [vmem:[%s1507_s21 + $0x28] sm:$0xf0]  ;;  %v1134_v16 = vld [vmem:[%s1500_s18 + $0x10] sm:$0xf]  ;;  %v1185_v18 = vor.u32 %v1313_v12, %v1184_v11  ;;  %v1301_v19 = vld [vmem:[%s1500_s18 + $0x14] sm:$0xf0] }
  0x57   : > { %683 = vmatpush.bf16.msra.mxu0 %v1151_v2  ;;  %v1300_v20 = vld [vmem:[%s1500_s18 + $0x14] sm:$0xf]  ;;  %v1136_v21 = vld [vmem:[%s1500_s18 + $0x18] sm:$0xf0]  ;;  %v1189_v22 = vor.u32 %v1312_v13, %v1186_v14  ;;  %v1176_v23 = vld [vmem:[%s1507_s21 + $0x10] sm:$0xf]  ;;  %v1135_v29 = vor.u32 %v1301_v19, %v1134_v16 }
  0x58   : > { %696 = vmatpush.bf16.msra.mxu1 %v1155_v4  ;;  %v1311_v24 = vld [vmem:[%s1507_s21 + $0x14] sm:$0xf0]  ;;  %v1310_v25 = vld [vmem:[%s1507_s21 + $0x14] sm:$0xf]  ;;  %v1178_v26 = vld [vmem:[%s1507_s21 + $0x18] sm:$0xf0]  ;;  %v1139_v34 = vor.u32 %v1300_v20, %v1136_v21 }
  0x59   : > { %773 = vmatpush.bf16.msra.mxu2 %v1193_v5  ;;  %786 = vmatpush.bf16.msra.mxu3 %v1197_v9  ;;  %v1126_v27 = vld [vmem:[%s1500_s18] sm:$0xf]  ;;  %v1299_v28 = vld [vmem:[%s1500_s18 + $0x4] sm:$0xf0]  ;;  %v1298_v30 = vld [vmem:[%s1500_s18 + $0x4] sm:$0xf]  ;;  %v1177_v35 = vor.u32 %v1311_v24, %v1176_v23  ;;  %v1181_v40 = vor.u32 %v1310_v25, %v1178_v26 }
  0x5a   : > { %v1128_v31 = vld [vmem:[%s1500_s18 + $0x8] sm:$0xf0]  ;;  %v1168_v32 = vld [vmem:[%s1507_s21] sm:$0xf]  ;;  %v1309_v33 = vld [vmem:[%s1507_s21 + $0x4] sm:$0xf0]  ;;  %v1127_v52 = vor.u32 %v1299_v28, %v1126_v27 }
  0x5b   : > { %684 = vmatpush.bf16.msra.mxu0 %v1143_v15  ;;  %v1308_v36 = vld [vmem:[%s1507_s21 + $0x4] sm:$0xf]  ;;  %v1242_v37 = vld [vmem:[%s1549_s19 + $0x40] sm:$0xf]  ;;  %v1327_v38 = vld [vmem:[%s1549_s19 + $0x44] sm:$0x30]  ;;  %v1131_v54 = vor.u32 %v1298_v30, %v1128_v31  ;;  %v1169_v55 = vor.u32 %v1309_v33, %v1168_v32 }
  0x5c   : > { %697 = vmatpush.bf16.msra.mxu1 %v1147_v17  ;;  %v1326_v39 = vld [vmem:[%s1549_s19 + $0x44] sm:$0xf]  ;;  %v1243_v41 = vor.u32 %v1327_v38, %v1242_v37  ;;  %v1244_v43 = vld [vmem:[%s1549_s19 + $0x48] sm:$0x30]  ;;  %v1284_v44 = vld [vmem:[%s1556_s20 + $0x40] sm:$0xf] }
  0x5d   : > { %774 = vmatpush.bf16.msra.mxu2 %v1185_v18  ;;  %787 = vmatpush.bf16.msra.mxu3 %v1189_v22  ;;  %v1337_v45 = vld [vmem:[%s1556_s20 + $0x44] sm:$0x30]  ;;  %v1395_v46 = vmov 0   ;;  %v1170_v47 = vld [vmem:[%s1507_s21 + $0x8] sm:$0xf0]  ;;  %v1247_v48 = vor.u32 %v1326_v39, %v1244_v43 }
  0x5e   : > { %1369 = vset.pattern.permute.xlu0 %v1395_v46  ;;  %v1285_v49 = vor.u32 %v1337_v45, %v1284_v44  ;;  %v1336_v50 = vld [vmem:[%s1556_s20 + $0x44] sm:$0xf]  ;;  %v1286_v51 = vld [vmem:[%s1556_s20 + $0x48] sm:$0x30]  ;;  %v1173_v56 = vor.u32 %v1308_v36, %v1170_v47  ;;  %v854_v57 = vand.u32 %v1243_v41, %v1497_v42  ;;  %v1569_v60 = vld [vmem:[%s1642_s4] sm:$0x7] }
  0x5f   : > { %685 = vmatpush.bf16.msra.mxu0 %v1135_v29  ;;  %v1289_v53 = vor.u32 %v1336_v50, %v1286_v51  ;;  %v857_v58 = vand.u32 %v1247_v48, %v1497_v42  ;;  %v1234_v61 = vld [vmem:[%s1549_s19 + $0x30] sm:$0xf]  ;;  %v1325_v62 = vld [vmem:[%s1549_s19 + $0x34] sm:$0xf0]  ;;  %v1324_v63 = vld [vmem:[%s1549_s19 + $0x34] sm:$0xf] }
  0x60   : > { %698 = vmatpush.bf16.msra.mxu1 %v1139_v34  ;;  %v944_v59 = vand.u32 %v1285_v49, %v1497_v42  ;;  %v1236_v1 = vld [vmem:[%s1549_s19 + $0x38] sm:$0xf0]  ;;  %v1276_v2 = vld [vmem:[%s1556_s20 + $0x30] sm:$0xf]  ;;  %v1335_v3 = vld [vmem:[%s1556_s20 + $0x34] sm:$0xf0]  ;;  %v1235_v6 = vor.u32 %v1325_v62, %v1234_v61 }
  0x61   : > { %775 = vmatpush.bf16.msra.mxu2 %v1177_v35  ;;  %788 = vmatpush.bf16.msra.mxu3 %v1181_v40  ;;  %v947_v0 = vand.u32 %v1289_v53, %v1497_v42  ;;  %v1334_v4 = vld [vmem:[%s1556_s20 + $0x34] sm:$0xf]  ;;  %v1278_v5 = vld [vmem:[%s1556_s20 + $0x38] sm:$0xf0]  ;;  %v1239_v42 = vor.u32 %v1324_v63, %v1236_v1  ;;  %v1277_v7 = vor.u32 %v1335_v3, %v1276_v2  ;;  %v1226_v8 = vld [vmem:[%s1549_s19 + $0x20] sm:$0xf] }
  0x62   : > { %v1323_v9 = vld [vmem:[%s1549_s19 + $0x24] sm:$0xf0]  ;;  %v1322_v10 = vld [vmem:[%s1549_s19 + $0x24] sm:$0xf]  ;;  %v1281_v11 = vor.u32 %v1334_v4, %v1278_v5  ;;  %v1228_v12 = vld [vmem:[%s1549_s19 + $0x28] sm:$0xf0] }
  0x63   : > { %686 = vmatpush.bf16.msra.mxu0 %v1127_v52  ;;  %v1268_v13 = vld [vmem:[%s1556_s20 + $0x20] sm:$0xf]  ;;  %v1333_v14 = vld [vmem:[%s1556_s20 + $0x24] sm:$0xf0]  ;;  %v1332_v15 = vld [vmem:[%s1556_s20 + $0x24] sm:$0xf]  ;;  %v1227_v17 = vor.u32 %v1323_v9, %v1226_v8  ;;  %v1231_v19 = vor.u32 %v1322_v10, %v1228_v12 }
  0x64   : > { %699 = vmatpush.bf16.msra.mxu1 %v1131_v54  ;;  %v1270_v16 = vld [vmem:[%s1556_s20 + $0x28] sm:$0xf0]  ;;  %v981_v18 = vld [vmem:[%s1643_s5] sm:$0x3f]  ;;  %v1269_v20 = vor.u32 %v1333_v14, %v1268_v13  ;;  %v1321_v22 = vld [vmem:[%s1549_s19 + $0x14] sm:$0xf0] }
  0x65   : > { %776 = vmatpush.bf16.msra.mxu2 %v1169_v55  ;;  %789 = vmatpush.bf16.msra.mxu3 %v1173_v56  ;;  %v1218_v21 = vld [vmem:[%s1549_s19 + $0x10] sm:$0xf]  ;;  %v1320_v23 = vld [vmem:[%s1549_s19 + $0x14] sm:$0xf]  ;;  %v1273_v24 = vor.u32 %v1332_v15, %v1270_v16  ;;  %v1220_v25 = vld [vmem:[%s1549_s19 + $0x18] sm:$0xf0] }
  0x66   : > { %1164 = vmatmul.msk.bf16.vlgmr.msra.gmra.mxu0 %vm665_vm2, %v1569_v60  ;;  %v1260_v26 = vld [vmem:[%s1556_s20 + $0x10] sm:$0xf]  ;;  %v1331_v27 = vld [vmem:[%s1556_s20 + $0x14] sm:$0xf0]  ;;  %984 = vperm.xlu0 %1369, %v981_v18   ;;  %v1330_v28 = vld [vmem:[%s1556_s20 + $0x14] sm:$0xf]  ;;  %v1219_v30 = vor.u32 %v1321_v22, %v1218_v21  ;;  %v1223_v31 = vor.u32 %v1320_v23, %v1220_v25 }
  0x67   : > { %862 = vmatpush.bf16.msrb.mxu0 %v854_v57  ;;  %1165 = vmatmul.msk.bf16.vlgmr.msra.gmra.mxu1 %vm665_vm2, %v1569_v60  ;;  %v1262_v29 = vld [vmem:[%s1556_s20 + $0x18] sm:$0xf0]  ;;  %v1261_v32 = vor.u32 %v1331_v27, %v1260_v26  ;;  %v1210_v33 = vld [vmem:[%s1549_s19] sm:$0xf]  ;;  %v1319_v34 = vld [vmem:[%s1549_s19 + $0x4] sm:$0xf0] }
  0x68   : > { %875 = vmatpush.bf16.msrb.mxu1 %v857_v58  ;;  %1206 = vmatmul.msk.bf16.vlgmr.msra.gmra.mxu2 %vm665_vm2, %v1569_v60  ;;  %v1318_v35 = vld [vmem:[%s1549_s19 + $0x4] sm:$0xf]  ;;  %v1265_v36 = vor.u32 %v1330_v28, %v1262_v29  ;;  %v1212_v37 = vld [vmem:[%s1549_s19 + $0x8] sm:$0xf0]  ;;  %v1252_v38 = vld [vmem:[%s1556_s20] sm:$0xf]  ;;  %v1211_v43 = vor.u32 %v1319_v34, %v1210_v33 }
  0x69   : > { %952 = vmatpush.bf16.msrb.mxu2 %v944_v59  ;;  %965 = vmatpush.bf16.msrb.mxu3 %v947_v0  ;;  %v1329_v39 = vld [vmem:[%s1556_s20 + $0x4] sm:$0xf0]  ;;  %v1328_v40 = vld [vmem:[%s1556_s20 + $0x4] sm:$0xf]  ;;  %v1254_v41 = vld [vmem:[%s1556_s20 + $0x8] sm:$0xf0]  ;;  %v1215_v44 = vor.u32 %v1318_v35, %v1212_v37 }
  0x6a   : > { %1207 = vmatmul.msk.bf16.vlgmr.msra.gmra.mxu3 %vm665_vm2, %v1569_v60  ;;  %v1253_v45 = vor.u32 %v1329_v39, %v1252_v38  ;;  %v1257_v46 = vor.u32 %v1328_v40, %v1254_v41 }
  0x6b   : > { %863 = vmatpush.bf16.msrb.mxu0 %v1235_v6 }
  0x6c   : > { %876 = vmatpush.bf16.msrb.mxu1 %v1239_v42 }
  0x6d   : > { %953 = vmatpush.bf16.msrb.mxu2 %v1277_v7  ;;  %966 = vmatpush.bf16.msrb.mxu3 %v1281_v11 }
  0x6f   : > { %864 = vmatpush.bf16.msrb.mxu0 %v1227_v17 }
  0x70   : > { %877 = vmatpush.bf16.msrb.mxu1 %v1231_v19 }
  0x71   : > { %954 = vmatpush.bf16.msrb.mxu2 %v1269_v20  ;;  %967 = vmatpush.bf16.msrb.mxu3 %v1273_v24 }
  0x73   : > { %865 = vmatpush.bf16.msrb.mxu0 %v1219_v30 }
  0x74   : > { %878 = vmatpush.bf16.msrb.mxu1 %v1223_v31 }
  0x75   : > { %955 = vmatpush.bf16.msrb.mxu2 %v1261_v32  ;;  %968 = vmatpush.bf16.msrb.mxu3 %v1265_v36 }
  0x77   : > { %866 = vmatpush.bf16.msrb.mxu0 %v1211_v43 }
  0x78   : > { %879 = vmatpush.bf16.msrb.mxu1 %v1215_v44 }
  0x79   : > { %956 = vmatpush.bf16.msrb.mxu2 %v1253_v45  ;;  %969 = vmatpush.bf16.msrb.mxu3 %v1257_v46 }
  0x7a   : > { %1248 = vmatmul.msk.bf16.vlgmr.msrb.gmra.mxu0 %vm665_vm2, %v1569_v60 }
  0x7b   : > { %1249 = vmatmul.msk.bf16.vlgmr.msrb.gmra.mxu1 %vm665_vm2, %v1569_v60 }
  0x7c   : > { %1290 = vmatmul.msk.bf16.vlgmr.msrb.gmra.mxu2 %vm665_vm2, %v1569_v60  ;;  %1291 = vmatmul.msk.bf16.vlgmr.msrb.gmra.mxu3 %vm665_vm2, %v1569_v60 }
  0xd8   : > { %v985_v1 = vpop.permute.xlu0 %984 }
  0xe3   : > { %v688_v47 = vpop.f32.mrf.mxu0 }
  0xe4   : > { %v701_v48 = vpop.f32.mrf.mxu1 }
  0xeb   : > { %v778_v49 = vpop.f32.mrf.mxu2  ;;  %v690_v51 = vpop.f32.mrf.mxu0 }
  0xec   : > { %v703_v52 = vpop.f32.mrf.mxu1  ;;  %v975_v58 = vmax.f32 %v688_v47, %v778_v49 }
  0xed   : > { %v791_v50 = vpop.f32.mrf.mxu3 }
  0xee   : > { %v976_v63 = vmax.f32 %v701_v48, %v791_v50 }
  0xf3   : > { %v780_v53 = vpop.f32.mrf.mxu2 }
  0xf5   : > { %v793_v54 = vpop.f32.mrf.mxu3 }
  0xf7   : > { %v868_v55 = vpop.f32.mrf.mxu0 }
  0xf8   : > { %v881_v56 = vpop.f32.mrf.mxu1 }
  0xff   : > { %v958_v57 = vpop.f32.mrf.mxu2  ;;  %v971_v61 = vpop.f32.mrf.mxu3 }
 0x100   : > { %v977_v59 = vmax.f32 %v868_v55, %v958_v57  ;;  %v870_v62 = vpop.f32.mrf.mxu0  ;;  %v978_v60 = vmax.f32 %v881_v56, %v971_v61  ;;  %v883_v0 = vpop.f32.mrf.mxu1 }
 0x102   : > { %v979_v2 = vmax.f32 %v975_v58, %v977_v59  ;;  %v980_v3 = vmax.f32 %v976_v63, %v978_v60 }
 0x104   : > { %v987_v4 = vadd.f32 %v985_v1, %v979_v2  ;;  %v988_v5 = vadd.f32 %v985_v1, %v980_v3 }
 0x106   : > { %v989_v6 = vmax.f32 %v987_v4, 0.0  ;;  %v990_v42 = vmax.f32 %v988_v5, 0.0 }
 0x107   : > { %v960_v7 = vpop.f32.mrf.mxu2  ;;  %v973_v8 = vpop.f32.mrf.mxu3 }
 0x108   : > { %v991_v9 = vpack.c.bf16 %v990_v42, %v989_v6 }
 0x10a   : > { %992 = vst [vmem:[%s603_s10] sm:$0x77] %v991_v9 }
 0x10b PF: > { %p13_p9 = scmp.ge.s32.totalorder %s1448_s25, 4   ;;  %s1646_s21 = smov %s1388_s22 }
 0x10c   : > { %s1647_s22 = smov %s1457_s28  ;;  %s1648_s23 = smov %s1448_s25 }
 0x10d   :  { %15 = sbr.rel (!%p13_p9) target bundleno = 2 (0x2), region = 255 }

// kernel: net_forward.3
= control target key start
LH: loop header
LB: loop body
LE: loop exit
PB: predicated region body
PF: predicated region fallthrough
CT: control target
= control target key end

     0   :  { %vm297_vm0 = vcmask 1042432   ;;  %vm257_vm1 = vcmask 179200   ;;  %vm1629_vm2 = vcmask 130048   ;;  %vm2272_vm3 = vcmask 1043456   ;;  %s4334_s4 = inlined_call_operand.vmem [shape: bf16[150,16], index: 4, kind: input, shape index: {}]   ;;  %s4335_s0 = inlined_call_operand.vmem [shape: bf16[25,8,150], index: 0, kind: input, shape index: {}]   ;;  %s4336_s1 = inlined_call_operand.vmem [shape: bf16[25,8,150], index: 1, kind: input, shape index: {}]   ;;  %s4337_s2 = inlined_call_operand.vmem [shape: bf16[25,8,150], index: 2, kind: input, shape index: {}]   ;;  %s4338_s6 = inlined_call_operand.vmem [shape: bf16[25,16,120], index: 6, kind: input, shape index: {}]   ;;  %s4339_s3 = inlined_call_operand.vmem [shape: bf16[25,8,150], index: 3, kind: input, shape index: {}]   ;;  %s4340_s5 = inlined_call_operand.vmem [shape: f32[1,16], index: 5, kind: input, shape index: {}]   ;;  %s4341_s7 = inlined_call_operand.vmem [shape: f32[1,120], index: 7, kind: input, shape index: {}]   ;;  %s4342_s9 = inlined_call_operand.vmem [shape: f32[1,40], index: 9, kind: input, shape index: {}]   ;;  %s4343_s8 = inlined_call_operand.vmem [shape: bf16[120,40], index: 8, kind: input, shape index: {}]   ;;  %s4344_s10 = inlined_call_operand.vmem [shape: bf16[40,10], index: 10, kind: input, shape index: {}]   ;;  %s4345_s11 = inlined_call_operand.vmem [shape: f32[1,10], index: 11, kind: input, shape index: {}]   ;;  %s4346_s12 = inlined_call_operand.vmem [shape: f32[8,10], index: 12, kind: output, shape index: {}]  }
   0x1   :  { %v3187_v0 = vld [vmem:[%s4334_s4 + $0x38] sm:$0xff]  ;;  %v60_v1 = vld [vmem:[%s4334_s4 + $0x48] sm:$0x7]  ;;  %v2982_v4 = vld [vmem:[%s4334_s4 + $0x30] sm:$0xff]  ;;  %vm2268_vm4 = vcmask 982016   ;;  %vm2315_vm5 = vcmask 326656  }
   0x2   :  { %v237_v2 = vunpack.c.l.b16 %v60_v1  ;;  %301 = vmatpush.bf16.msra.mxu0 %v3187_v0  ;;  %625 = vmatpush.bf16.msra.mxu2 %v3187_v0  ;;  %v2984_v6 = vld [vmem:[%s4334_s4 + $0x40] sm:$0xff]  ;;  %v2345_v8 = vld [vmem:[%s4335_s0 + $0x8] sm:$0xf0]  ;;  %v2979_v15 = vld [vmem:[%s4334_s4 + $0x18] sm:$0xff]  ;;  %vm2335_vm6 = vcmask 80896  }
   0x3   :  { %v2985_v7 = vld [vmem:[%s4335_s0 + $0x4] sm:$0xf]  ;;  %v2490_v10 = vld [vmem:[%s4336_s1 + $0x8] sm:$0xf0]  ;;  %v2978_v16 = vld [vmem:[%s4334_s4 + $0x10] sm:$0xff] }
   0x4   :  { %v247_v3 = vpack.c.b16 %v237_v2, %v237_v2  ;;  %v3009_v9 = vld [vmem:[%s4336_s1 + $0x4] sm:$0xf]  ;;  %v2981_v11 = vld [vmem:[%s4334_s4 + $0x28] sm:$0xff]  ;;  %v2348_v12 = vor.u32 %v2985_v7, %v2345_v8  ;;  %v2987_v17 = vld [vmem:[%s4335_s0 + $0x14] sm:$0xf] }
   0x5   :  { %v2493_v13 = vor.u32 %v3009_v9, %v2490_v10  ;;  %v2980_v14 = vld [vmem:[%s4334_s4 + $0x20] sm:$0xff]  ;;  %v2353_v18 = vld [vmem:[%s4335_s0 + $0x18] sm:$0xf0]  ;;  %v3011_v19 = vld [vmem:[%s4336_s1 + $0x14] sm:$0xf] }
   0x6   :  { %v299_v5 = vsel %vm297_vm0, %v247_v3, 0  ;;  %302 = vmatpush.bf16.msra.mxu0 %v2982_v4  ;;  %626 = vmatpush.bf16.msra.mxu2 %v2982_v4  ;;  %v2498_v20 = vld [vmem:[%s4336_s1 + $0x18] sm:$0xf0]  ;;  %v2977_v21 = vld [vmem:[%s4334_s4 + $0x8] sm:$0xff]  ;;  %v2356_v22 = vor.u32 %v2987_v17, %v2353_v18  ;;  %v2976_v24 = vld [vmem:[%s4334_s4] sm:$0xff] }
   0x7   :  { %380 = vmatpush.bf16.msra.mxu1 %v299_v5  ;;  %704 = vmatpush.bf16.msra.mxu3 %v299_v5  ;;  %v2501_v23 = vor.u32 %v3011_v19, %v2498_v20  ;;  %v2343_v25 = vld [vmem:[%s4335_s0] sm:$0xf]  ;;  %v2986_v26 = vld [vmem:[%s4335_s0 + $0x4] sm:$0xf0]  ;;  %v2989_v31 = vld [vmem:[%s4335_s0 + $0x24] sm:$0xf] }
   0x8   :  { %v2488_v27 = vld [vmem:[%s4336_s1] sm:$0xf]  ;;  %v3010_v28 = vld [vmem:[%s4336_s1 + $0x4] sm:$0xf0]  ;;  %v2344_v29 = vor.u32 %v2986_v26, %v2343_v25  ;;  %v2361_v32 = vld [vmem:[%s4335_s0 + $0x28] sm:$0xf0] }
   0x9   :  { %v2489_v30 = vor.u32 %v3010_v28, %v2488_v27  ;;  %v3013_v33 = vld [vmem:[%s4336_s1 + $0x24] sm:$0xf]  ;;  %v2506_v34 = vld [vmem:[%s4336_s1 + $0x28] sm:$0xf0]  ;;  %v2364_v35 = vor.u32 %v2989_v31, %v2361_v32  ;;  %v2351_v37 = vld [vmem:[%s4335_s0 + $0x10] sm:$0xf] }
   0xa   :  { %303 = vmatpush.bf16.msra.mxu0 %v2981_v11  ;;  %627 = vmatpush.bf16.msra.mxu2 %v2981_v11  ;;  %v2509_v36 = vor.u32 %v3013_v33, %v2506_v34  ;;  %v2988_v38 = vld [vmem:[%s4335_s0 + $0x14] sm:$0xf0]  ;;  %v2496_v39 = vld [vmem:[%s4336_s1 + $0x10] sm:$0xf]  ;;  %v2991_v43 = vld [vmem:[%s4335_s0 + $0x34] sm:$0xf] }
   0xb   :  { %381 = vmatpush.bf16.msra.mxu1 %v2984_v6  ;;  %705 = vmatpush.bf16.msra.mxu3 %v2984_v6  ;;  %v3012_v40 = vld [vmem:[%s4336_s1 + $0x14] sm:$0xf0]  ;;  %v2352_v41 = vor.u32 %v2988_v38, %v2351_v37  ;;  %v2369_v44 = vld [vmem:[%s4335_s0 + $0x38] sm:$0xf0]  ;;  %v3015_v45 = vld [vmem:[%s4336_s1 + $0x34] sm:$0xf] }
   0xc   :  { %v2497_v42 = vor.u32 %v3012_v40, %v2496_v39  ;;  %v2514_v46 = vld [vmem:[%s4336_s1 + $0x38] sm:$0xf0]  ;;  %v2372_v47 = vor.u32 %v2991_v43, %v2369_v44  ;;  %v2359_v49 = vld [vmem:[%s4335_s0 + $0x20] sm:$0xf]  ;;  %v2990_v50 = vld [vmem:[%s4335_s0 + $0x24] sm:$0xf0] }
   0xd   :  { %v2517_v48 = vor.u32 %v3015_v45, %v2514_v46  ;;  %v2504_v51 = vld [vmem:[%s4336_s1 + $0x20] sm:$0xf]  ;;  %v3014_v52 = vld [vmem:[%s4336_s1 + $0x24] sm:$0xf0]  ;;  %v2360_v53 = vor.u32 %v2990_v50, %v2359_v49  ;;  %v2993_v55 = vld [vmem:[%s4335_s0 + $0x44] sm:$0xf] }
   0xe   :  { %2473 = vmatmul.msk.bf16.vlgmr.msra.gmra.mxu1 %vm257_vm1, %v2348_v12  ;;  %2582 = vmatmul.msk.bf16.vlgmr.msra.gmra.mxu3 %vm257_vm1, %v2493_v13  ;;  %v2505_v54 = vor.u32 %v3014_v52, %v2504_v51  ;;  %v2377_v56 = vld [vmem:[%s4335_s0 + $0x48] sm:$0xf0]  ;;  %v3017_v57 = vld [vmem:[%s4336_s1 + $0x44] sm:$0xf]  ;;  %v2367_v61 = vld [vmem:[%s4335_s0 + $0x30] sm:$0xf] }
   0xf   :  { %1053 = vmatpush.bf16.msrb.mxu3 %v299_v5  ;;  %974 = vmatpush.bf16.msrb.mxu1 %v3187_v0  ;;  %v2522_v58 = vld [vmem:[%s4336_s1 + $0x48] sm:$0xf0]  ;;  %v2380_v59 = vor.u32 %v2993_v55, %v2377_v56  ;;  %v2992_v62 = vld [vmem:[%s4335_s0 + $0x34] sm:$0xf0]  ;;  %v2512_v63 = vld [vmem:[%s4336_s1 + $0x30] sm:$0xf] }
  0x10   :  { %304 = vmatpush.bf16.msra.mxu0 %v2980_v14  ;;  %628 = vmatpush.bf16.msra.mxu2 %v2980_v14  ;;  %v2525_v60 = vor.u32 %v3017_v57, %v2522_v58  ;;  %v2368_v1 = vor.u32 %v2992_v62, %v2367_v61  ;;  %v2995_v3 = vld [vmem:[%s4335_s0 + $0x54] sm:$0xf]  ;;  %v2375_v9 = vld [vmem:[%s4335_s0 + $0x40] sm:$0xf]  ;;  %v2994_v10 = vld [vmem:[%s4335_s0 + $0x44] sm:$0xf0] }
  0x11   :  { %v3018_v12 = vld [vmem:[%s4336_s1 + $0x44] sm:$0xf0]  ;;  %v2376_v13 = vor.u32 %v2994_v10, %v2375_v9  ;;  %v3021_v17 = vld [vmem:[%s4336_s1 + $0x64] sm:$0xf]  ;;  %v2538_v18 = vld [vmem:[%s4336_s1 + $0x68] sm:$0xf0] }
  0x12   :  { %v2541_v20 = vor.u32 %v3021_v17, %v2538_v18  ;;  %v2999_v27 = vld [vmem:[%s4335_s0 + $0x74] sm:$0xf]  ;;  %v2401_v28 = vld [vmem:[%s4335_s0 + $0x78] sm:$0xf0]  ;;  %v2391_v33 = vld [vmem:[%s4335_s0 + $0x60] sm:$0xf] }
  0x13   :  { %975 = vmatpush.bf16.msrb.mxu1 %v2982_v4  ;;  %1054 = vmatpush.bf16.msrb.mxu3 %v2984_v6  ;;  %v2404_v31 = vor.u32 %v2999_v27, %v2401_v28  ;;  %v2998_v34 = vld [vmem:[%s4335_s0 + $0x64] sm:$0xf0]  ;;  %v3001_v39 = vld [vmem:[%s4335_s0 + $0x84] sm:$0xf]  ;;  %v2409_v40 = vld [vmem:[%s4335_s0 + $0x88] sm:$0xf0] }
  0x14   :  { %305 = vmatpush.bf16.msra.mxu0 %v2979_v15  ;;  %629 = vmatpush.bf16.msra.mxu2 %v2979_v15  ;;  %v2392_v37 = vor.u32 %v2998_v34, %v2391_v33  ;;  %v2412_v43 = vor.u32 %v3001_v39, %v2409_v40  ;;  %v2399_v46 = vld [vmem:[%s4335_s0 + $0x70] sm:$0xf]  ;;  %v3024_v49 = vld [vmem:[%s4336_s1 + $0x74] sm:$0xf0]  ;;  %v2417_v55 = vld [vmem:[%s4335_s0 + $0x98] sm:$0xf0] }
  0x15   :  { %v3027_v56 = vld [vmem:[%s4336_s1 + $0x94] sm:$0xf]  ;;  %v2562_v57 = vld [vmem:[%s4336_s1 + $0x98] sm:$0xf0]  ;;  %v2407_v62 = vld [vmem:[%s4335_s0 + $0x80] sm:$0xf] }
  0x16   :  { %v3005_v9 = vld [vmem:[%s4335_s0 + $0xa4] sm:$0xf]  ;;  %v2578_v39 = vld [vmem:[%s4336_s1 + $0xb8] sm:$0xf0] }
  0x17   :  { %976 = vmatpush.bf16.msrb.mxu1 %v2981_v11 }
  0x18   :  { %306 = vmatpush.bf16.msra.mxu0 %v2978_v16  ;;  %630 = vmatpush.bf16.msra.mxu2 %v2978_v16 }
  0x1b   :  { %977 = vmatpush.bf16.msrb.mxu1 %v2980_v14 }
  0x1c   :  { %307 = vmatpush.bf16.msra.mxu0 %v2977_v21  ;;  %631 = vmatpush.bf16.msra.mxu2 %v2977_v21 }
  0x1e   :  { %2474 = vmatmul.msk.bf16.gmra.mxu1 %vm257_vm1, %v2356_v22  ;;  %2583 = vmatmul.msk.bf16.gmra.mxu3 %vm257_vm1, %v2501_v23  ;;  %v2996_v22 = vld [vmem:[%s4335_s0 + $0x54] sm:$0xf0]  ;;  %v2528_v23 = vld [vmem:[%s4336_s1 + $0x50] sm:$0xf] }
  0x1f   :  { %978 = vmatpush.bf16.msrb.mxu1 %v2979_v15 }
  0x20   :  { %308 = vmatpush.bf16.msra.mxu0 %v2976_v24  ;;  %632 = vmatpush.bf16.msra.mxu2 %v2976_v24 }
  0x23   :  { %979 = vmatpush.bf16.msrb.mxu1 %v2978_v16  ;;  %309 = vmatmul.bf16.vlgmr.msra.gmra.mxu0 %v2344_v29  ;;  %v3023_v29 = vld [vmem:[%s4336_s1 + $0x74] sm:$0xf] }
  0x24   :  { %1377 = vmatpush.bf16.msrb.mxu2 %v299_v5  ;;  %1298 = vmatpush.bf16.msrb.mxu0 %v3187_v0  ;;  %v3016_v0 = vld [vmem:[%s4336_s1 + $0x34] sm:$0xf0]  ;;  %v3019_v5 = vld [vmem:[%s4336_s1 + $0x54] sm:$0xf] }
  0x25   :  { %633 = vmatmul.bf16.vlgmr.msra.gmra.mxu2 %v2489_v30  ;;  %v2513_v2 = vor.u32 %v3016_v0, %v2512_v63  ;;  %v2546_v30 = vld [vmem:[%s4336_s1 + $0x78] sm:$0xf0]  ;;  %v3002_v63 = vld [vmem:[%s4335_s0 + $0x84] sm:$0xf0]  ;;  %v2552_v0 = vld [vmem:[%s4336_s1 + $0x80] sm:$0xf] }
  0x26   :  { %v2549_v32 = vor.u32 %v3023_v29, %v2546_v30 }
  0x27   :  { %980 = vmatpush.bf16.msrb.mxu1 %v2977_v21 }
  0x28   :  { %1299 = vmatpush.bf16.msrb.mxu0 %v2982_v4  ;;  %1378 = vmatpush.bf16.msrb.mxu2 %v2984_v6  ;;  %v2385_v4 = vld [vmem:[%s4335_s0 + $0x58] sm:$0xf0] }
  0x29   :  { %v2530_v6 = vld [vmem:[%s4336_s1 + $0x58] sm:$0xf0]  ;;  %v2388_v7 = vor.u32 %v2995_v3, %v2385_v4 }
  0x2a   :  { %v2533_v8 = vor.u32 %v3019_v5, %v2530_v6 }
  0x2b   :  { %981 = vmatpush.bf16.msrb.mxu1 %v2976_v24 }
  0x2c   :  { %1300 = vmatpush.bf16.msrb.mxu0 %v2981_v11  ;;  %v2520_v11 = vld [vmem:[%s4336_s1 + $0x40] sm:$0xf] }
  0x2e   :  { %2475 = vmatmul.msk.bf16.gmra.mxu1 %vm257_vm1, %v2364_v35  ;;  %2584 = vmatmul.msk.bf16.gmra.mxu3 %vm257_vm1, %v2509_v36  ;;  %v2536_v35 = vld [vmem:[%s4336_s1 + $0x60] sm:$0xf]  ;;  %v3022_v36 = vld [vmem:[%s4336_s1 + $0x64] sm:$0xf0] }
  0x2f   :  { %v2537_v38 = vor.u32 %v3022_v36, %v2536_v35  ;;  %v3007_v35 = vld [vmem:[%s4335_s0 + $0xb4] sm:$0xf] }
  0x30   :  { %1301 = vmatpush.bf16.msrb.mxu0 %v2980_v14  ;;  %v2521_v14 = vor.u32 %v3018_v12, %v2520_v11  ;;  %v2425_v11 = vld [vmem:[%s4335_s0 + $0xa8] sm:$0xf0]  ;;  %v3029_v12 = vld [vmem:[%s4336_s1 + $0xa4] sm:$0xf] }
  0x31   :  { %v2428_v18 = vor.u32 %v3005_v9, %v2425_v11  ;;  %v2431_v11 = vld [vmem:[%s4335_s0 + $0xb0] sm:$0xf] }
  0x33   :  { %314 = vmatmul.bf16.gmra.mxu0 %v2352_v41  ;;  %v3025_v41 = vld [vmem:[%s4336_s1 + $0x84] sm:$0xf] }
  0x34   :  { %1302 = vmatpush.bf16.msrb.mxu0 %v2979_v15  ;;  %v2997_v15 = vld [vmem:[%s4335_s0 + $0x64] sm:$0xf] }
  0x35   :  { %638 = vmatmul.bf16.gmra.mxu2 %v2497_v42  ;;  %v2554_v42 = vld [vmem:[%s4336_s1 + $0x88] sm:$0xf0] }
  0x36   :  { %v2557_v44 = vor.u32 %v3025_v41, %v2554_v42 }
  0x38   :  { %1303 = vmatpush.bf16.msrb.mxu0 %v2978_v16  ;;  %v2393_v16 = vld [vmem:[%s4335_s0 + $0x68] sm:$0xf0] }
  0x39   :  { %v2396_v19 = vor.u32 %v2997_v15, %v2393_v16 }
  0x3c   :  { %1304 = vmatpush.bf16.msrb.mxu0 %v2977_v21  ;;  %v2383_v21 = vld [vmem:[%s4335_s0 + $0x50] sm:$0xf] }
  0x3d   :  { %v2384_v25 = vor.u32 %v2996_v22, %v2383_v21  ;;  %v2415_v21 = vld [vmem:[%s4335_s0 + $0x90] sm:$0xf]  ;;  %v3004_v22 = vld [vmem:[%s4335_s0 + $0x94] sm:$0xf0] }
  0x3e   :  { %2476 = vmatmul.msk.bf16.gmra.mxu1 %vm257_vm1, %v2372_v47  ;;  %2585 = vmatmul.msk.bf16.gmra.mxu3 %vm257_vm1, %v2517_v48  ;;  %v3000_v47 = vld [vmem:[%s4335_s0 + $0x74] sm:$0xf0]  ;;  %v2544_v48 = vld [vmem:[%s4336_s1 + $0x70] sm:$0xf]  ;;  %v2416_v27 = vor.u32 %v3004_v22, %v2415_v21 }
  0x3f   :  { %v2400_v50 = vor.u32 %v3000_v47, %v2399_v46  ;;  %v2545_v51 = vor.u32 %v3024_v49, %v2544_v48  ;;  %v2423_v47 = vld [vmem:[%s4335_s0 + $0xa0] sm:$0xf]  ;;  %v3006_v48 = vld [vmem:[%s4335_s0 + $0xa4] sm:$0xf0] }
  0x40   :  { %1305 = vmatpush.bf16.msrb.mxu0 %v2976_v24  ;;  %v3020_v24 = vld [vmem:[%s4336_s1 + $0x54] sm:$0xf0]  ;;  %v2568_v49 = vld [vmem:[%s4336_s1 + $0xa0] sm:$0xf] }
  0x41   :  { %v2529_v26 = vor.u32 %v3020_v24, %v2528_v23  ;;  %v2560_v23 = vld [vmem:[%s4336_s1 + $0x90] sm:$0xf]  ;;  %v3028_v24 = vld [vmem:[%s4336_s1 + $0x94] sm:$0xf0] }
  0x42   :  { %v2561_v28 = vor.u32 %v3028_v24, %v2560_v23 }
  0x43   :  { %319 = vmatmul.bf16.gmra.mxu0 %v2360_v53 }
  0x45   :  { %643 = vmatmul.bf16.gmra.mxu2 %v2505_v54  ;;  %v3003_v54 = vld [vmem:[%s4335_s0 + $0x94] sm:$0xf] }
  0x4e   :  { %2477 = vmatmul.msk.bf16.gmra.mxu1 %vm257_vm1, %v2380_v59  ;;  %2586 = vmatmul.msk.bf16.gmra.mxu3 %vm257_vm1, %v2525_v60  ;;  %v2420_v59 = vor.u32 %v3003_v54, %v2417_v55  ;;  %v2565_v60 = vor.u32 %v3027_v56, %v2562_v57 }
  0x53   :  { %324 = vmatmul.bf16.gmra.mxu0 %v2368_v1  ;;  %v3026_v1 = vld [vmem:[%s4336_s1 + $0x84] sm:$0xf0] }
  0x54   :  { %v2553_v3 = vor.u32 %v3026_v1, %v2552_v0 }
  0x55   :  { %648 = vmatmul.bf16.gmra.mxu2 %v2513_v2  ;;  %v2408_v2 = vor.u32 %v3002_v63, %v2407_v62 }
  0x5e   :  { %2478 = vmatmul.msk.bf16.gmra.mxu1 %vm257_vm1, %v2388_v7  ;;  %2587 = vmatmul.msk.bf16.gmra.mxu3 %vm257_vm1, %v2533_v8 }
  0x63   :  { %329 = vmatmul.bf16.gmra.mxu0 %v2376_v13  ;;  %v2570_v13 = vld [vmem:[%s4336_s1 + $0xa8] sm:$0xf0] }
  0x65   :  { %653 = vmatmul.bf16.gmra.mxu2 %v2521_v14 }
  0x6e   :  { %2479 = vmatmul.msk.bf16.gmra.mxu1 %vm257_vm1, %v2396_v19  ;;  %2588 = vmatmul.msk.bf16.gmra.mxu3 %vm257_vm1, %v2541_v20  ;;  %v2573_v19 = vor.u32 %v3029_v12, %v2570_v13  ;;  %v3008_v12 = vld [vmem:[%s4335_s0 + $0xb4] sm:$0xf0]  ;;  %v2576_v13 = vld [vmem:[%s4336_s1 + $0xb0] sm:$0xf] }
  0x73   :  { %334 = vmatmul.bf16.gmra.mxu0 %v2384_v25 }
  0x75   :  { %658 = vmatmul.bf16.gmra.mxu2 %v2529_v26 }
  0x7e   :  { %2480 = vmatmul.msk.bf16.gmra.mxu1 %vm257_vm1, %v2404_v31  ;;  %2589 = vmatmul.msk.bf16.gmra.mxu3 %vm257_vm1, %v2549_v32 }
  0x83   :  { %339 = vmatmul.bf16.gmra.mxu0 %v2392_v37  ;;  %v2433_v37 = vld [vmem:[%s4335_s0 + $0xb8] sm:$0xf0] }
  0x85   :  { %663 = vmatmul.bf16.gmra.mxu2 %v2537_v38  ;;  %v3031_v38 = vld [vmem:[%s4336_s1 + $0xb4] sm:$0xf] }
  0x8b   :  { %v383_v45 = vpop.f32.mrf.mxu1 }
  0x8e   :  { %2481 = vmatmul.msk.bf16.gmra.mxu1 %vm257_vm1, %v2412_v43  ;;  %2590 = vmatmul.msk.bf16.gmra.mxu3 %vm257_vm1, %v2557_v44  ;;  %v2436_v44 = vor.u32 %v3007_v35, %v2433_v37 }
  0x91   :  { %v707_v52 = vpop.f32.mrf.mxu3 }
  0x93   :  { %344 = vmatmul.bf16.gmra.mxu0 %v2400_v50  ;;  %v385_v53 = vpop.f32.mrf.mxu1  ;;  %v3030_v50 = vld [vmem:[%s4336_s1 + $0xa4] sm:$0xf0] }
  0x94   :  { %v2569_v54 = vor.u32 %v3030_v50, %v2568_v49 }
  0x95   :  { %668 = vmatmul.bf16.gmra.mxu2 %v2545_v51 }
  0x99   :  { %v709_v58 = vpop.f32.mrf.mxu3 }
  0x9b   :  { %v388_v61 = vpop.f32.mrf.mxu1 }
  0x9e   :  { %2482 = vmatmul.msk.bf16.gmra.mxu1 %vm257_vm1, %v2420_v59  ;;  %2591 = vmatmul.msk.bf16.gmra.mxu3 %vm257_vm1, %v2565_v60  ;;  %v85_v60 = vld [vmem:[%s4335_s0 + $0xc0] sm:$0xff] }
  0x9f   :  { %v160_v63 = vunpack.c.h.b16 %v85_v60 }
  0xa0   :  { %v310_v4 = vpop.f32.mrf.mxu0 }
  0xa1   :  { %v3468_v5 = vadd.f32 %v383_v45, %v310_v4  ;;  %v712_v6 = vpop.f32.mrf.mxu3  ;;  %v2581_v45 = vor.u32 %v3031_v38, %v2578_v39 }
  0xa3   :  { %349 = vmatmul.bf16.gmra.mxu0 %v2408_v2  ;;  %v390_v7 = vpop.f32.mrf.mxu1 }
  0xa5   :  { %673 = vmatmul.bf16.gmra.mxu2 %v2553_v3 }
  0xa8   :  { %v634_v8 = vpop.f32.mrf.mxu2  ;;  %v312_v14 = vpop.f32.mrf.mxu0 }
  0xa9   :  { %v3473_v10 = vadd.f32 %v707_v52, %v634_v8  ;;  %v3486_v16 = vadd.f32 %v385_v53, %v312_v14  ;;  %v714_v17 = vpop.f32.mrf.mxu3  ;;  %v2424_v53 = vor.u32 %v3006_v48, %v2423_v47  ;;  %v3032_v14 = vld [vmem:[%s4336_s1 + $0xb4] sm:$0xf0]  ;;  %v3081_v47 = vld [vmem:[%s4338_s6] sm:$0xff] }
  0xaa   :  { %1662 = vmatpush.bf16.msra.mxu3 %v3081_v47  ;;  %v2615_v47 = vld [vmem:[%s4337_s2 + $0x28] sm:$0xf0] }
  0xab   :  { %v393_v20 = vpop.f32.mrf.mxu1 }
  0xae   :  { %2483 = vmatmul.msk.bf16.gmra.mxu1 %vm257_vm1, %v2428_v18  ;;  %2592 = vmatmul.msk.bf16.gmra.mxu3 %vm257_vm1, %v2573_v19  ;;  %v2432_v19 = vor.u32 %v3008_v12, %v2431_v11 }
  0xb0   :  { %v636_v25 = vpop.f32.mrf.mxu2  ;;  %v315_v29 = vpop.f32.mrf.mxu0 }
  0xb1   :  { %v3502_v26 = vadd.f32 %v709_v58, %v636_v25  ;;  %v3506_v31 = vadd.f32 %v388_v61, %v315_v29  ;;  %v717_v32 = vpop.f32.mrf.mxu3  ;;  %v471_v61 = vld [vmem:[%s4336_s1 + $0xc0] sm:$0xff] }
  0xb2   :  { %v546_v0 = vunpack.c.h.b16 %v471_v61 }
  0xb3   :  { %354 = vmatmul.bf16.gmra.mxu0 %v2416_v27  ;;  %v395_v33 = vpop.f32.mrf.mxu1 }
  0xb4   :  { %v572_v8 = vpack.c.b16 %v546_v0, %v546_v0  ;;  %v3035_v0 = vld [vmem:[%s4337_s2 + $0x14] sm:$0xf] }
  0xb5   :  { %678 = vmatmul.bf16.gmra.mxu2 %v2561_v28  ;;  %v2597_v28 = vld [vmem:[%s4337_s2] sm:$0xf] }
  0xb8   :  { %v639_v34 = vpop.f32.mrf.mxu2  ;;  %v317_v40 = vpop.f32.mrf.mxu0 }
  0xb9   :  { %v3511_v36 = vadd.f32 %v712_v6, %v639_v34  ;;  %v3524_v42 = vadd.f32 %v390_v7, %v317_v40  ;;  %v719_v43 = vpop.f32.mrf.mxu3  ;;  %v186_v7 = vpack.c.b16 %v160_v63, %v160_v63  ;;  %v2599_v34 = vld [vmem:[%s4337_s2 + $0x8] sm:$0xf0]  ;;  %v3036_v63 = vld [vmem:[%s4337_s2 + $0x14] sm:$0xf0] }
  0xbb   :  { %v398_v46 = vpop.f32.mrf.mxu1 }
  0xbe   :  { %2484 = vmatmul.msk.bf16.gmra.mxu1 %vm257_vm1, %v2436_v44  ;;  %2593 = vmatmul.msk.bf16.gmra.mxu3 %vm257_vm1, %v2581_v45  ;;  %v159_v45 = vunpack.c.l.b16 %v85_v60 }
  0xc0   :  { %v641_v51 = vpop.f32.mrf.mxu2  ;;  %v320_v55 = vpop.f32.mrf.mxu0  ;;  %v185_v50 = vpack.c.b16 %v159_v45, %v159_v45 }
  0xc1   :  { %v3540_v52 = vadd.f32 %v714_v17, %v641_v51  ;;  %v3544_v57 = vadd.f32 %v393_v20, %v320_v55  ;;  %v722_v58 = vpop.f32.mrf.mxu3  ;;  %v2577_v20 = vor.u32 %v3032_v14, %v2576_v13  ;;  %v2706_v14 = vld [vmem:[%s4339_s3] sm:$0xf] }
  0xc3   :  { %359 = vmatmul.bf16.gmra.mxu0 %v2424_v53  ;;  %v400_v59 = vpop.f32.mrf.mxu1 }
  0xc5   :  { %683 = vmatmul.bf16.gmra.mxu2 %v2569_v54 }
  0xc8   :  { %v644_v62 = vpop.f32.mrf.mxu2  ;;  %v322_v2 = vpop.f32.mrf.mxu0 }
  0xc9   :  { %v3552_v1 = vadd.f32 %v717_v32, %v644_v62  ;;  %v3556_v4 = vadd.f32 %v395_v33, %v322_v2  ;;  %v724_v6 = vpop.f32.mrf.mxu3  ;;  %v3034_v32 = vld [vmem:[%s4337_s2 + $0x4] sm:$0xf0]  ;;  %v3033_v33 = vld [vmem:[%s4337_s2 + $0x4] sm:$0xf]  ;;  %v2607_v2 = vld [vmem:[%s4337_s2 + $0x18] sm:$0xf0] }
  0xca   :  { %v2598_v40 = vor.u32 %v3034_v32, %v2597_v28  ;;  %v2610_v12 = vor.u32 %v3035_v0, %v2607_v2  ;;  %v3060_v0 = vld [vmem:[%s4339_s3 + $0x14] sm:$0xf0]  ;;  %v3059_v2 = vld [vmem:[%s4339_s3 + $0x14] sm:$0xf] }
  0xcb   :  { %v403_v9 = vpop.f32.mrf.mxu1 }
  0xce   :  { %2485 = vmatmul.msk.bf16.gmra.mxu1 %vm257_vm1, %v186_v7  ;;  %2594 = vmatmul.msk.bf16.gmra.mxu3 %vm257_vm1, %v572_v8 }
  0xd0   :  { %v646_v17 = vpop.f32.mrf.mxu2  ;;  %v325_v21 = vpop.f32.mrf.mxu0 }
  0xd1   :  { %v3572_v18 = vadd.f32 %v719_v43, %v646_v17  ;;  %v3576_v23 = vadd.f32 %v398_v46, %v325_v21  ;;  %v727_v24 = vpop.f32.mrf.mxu3  ;;  %v2602_v43 = vor.u32 %v3033_v33, %v2599_v34  ;;  %v545_v46 = vunpack.c.l.b16 %v471_v61  ;;  %v2605_v61 = vld [vmem:[%s4337_s2 + $0x10] sm:$0xf]  ;;  %v3058_v17 = vld [vmem:[%s4339_s3 + $0x4] sm:$0xf0] }
  0xd2   :  { %v2606_v11 = vor.u32 %v3036_v63, %v2605_v61  ;;  %v2714_v63 = vld [vmem:[%s4339_s3 + $0x10] sm:$0xf] }
  0xd3   :  { %364 = vmatmul.bf16.gmra.mxu0 %v2432_v19  ;;  %v405_v25 = vpop.f32.mrf.mxu1  ;;  %v571_v51 = vpack.c.b16 %v545_v46, %v545_v46  ;;  %v3057_v19 = vld [vmem:[%s4339_s3 + $0x4] sm:$0xf] }
  0xd4   :  { %v3037_v46 = vld [vmem:[%s4337_s2 + $0x24] sm:$0xf] }
  0xd5   :  { %688 = vmatmul.bf16.gmra.mxu2 %v2577_v20  ;;  %v2708_v20 = vld [vmem:[%s4339_s3 + $0x8] sm:$0xf0] }
  0xd8   :  { %v649_v27 = vpop.f32.mrf.mxu2  ;;  %v327_v35 = vpop.f32.mrf.mxu0 }
  0xd9   :  { %v3581_v29 = vadd.f32 %v722_v58, %v649_v27  ;;  %v3594_v38 = vadd.f32 %v400_v59, %v327_v35  ;;  %v729_v39 = vpop.f32.mrf.mxu3  ;;  %v2711_v27 = vor.u32 %v3057_v19, %v2708_v20  ;;  %v3082_v35 = vld [vmem:[%s4338_s6 + $0x8] sm:$0xff] }
  0xda   :  { %1640 = vmatpush.bf16.msra.mxu1 %v3082_v35 }
  0xdb   :  { %v408_v44 = vpop.f32.mrf.mxu1 }
  0xde   :  { %982 = vmatmul.bf16.vlgmr.msrb.gmra.mxu1 %v2598_v40  ;;  %2691 = vmatmul.msk.bf16.vlgmr.msrb.gmra.mxu3 %vm257_vm1, %v2602_v43  ;;  %v2613_v43 = vld [vmem:[%s4337_s2 + $0x20] sm:$0xf] }
  0xe0   :  { %v651_v48 = vpop.f32.mrf.mxu2  ;;  %v330_v53 = vpop.f32.mrf.mxu0 }
  0xe1   :  { %v3600_v49 = vadd.f32 %v724_v6, %v651_v48  ;;  %v3604_v55 = vadd.f32 %v403_v9, %v330_v53  ;;  %v732_v58 = vpop.f32.mrf.mxu3 }
  0xe3   :  { %369 = vmatmul.bf16.gmra.mxu0 %v185_v50  ;;  %v410_v59 = vpop.f32.mrf.mxu1 }
  0xe5   :  { %693 = vmatmul.bf16.gmra.mxu2 %v571_v51 }
  0xe8   :  { %v654_v60 = vpop.f32.mrf.mxu2  ;;  %v332_v6 = vpop.f32.mrf.mxu0 }
  0xe9   :  { %v3609_v62 = vadd.f32 %v727_v24, %v654_v60  ;;  %v3622_v8 = vadd.f32 %v405_v25, %v332_v6  ;;  %v734_v9 = vpop.f32.mrf.mxu3  ;;  %v2707_v25 = vor.u32 %v3058_v17, %v2706_v14  ;;  %v2618_v60 = vor.u32 %v3037_v46, %v2615_v47 }
  0xeb   :  { %v413_v13 = vpop.f32.mrf.mxu1 }
  0xee   :  { %987 = vmatmul.bf16.gmra.mxu1 %v2606_v11  ;;  %2692 = vmatmul.msk.bf16.gmra.mxu3 %vm257_vm1, %v2610_v12  ;;  %v2715_v12 = vor.u32 %v3060_v0, %v2714_v63  ;;  %v2722_v63 = vld [vmem:[%s4339_s3 + $0x20] sm:$0xf]  ;;  %v3062_v0 = vld [vmem:[%s4339_s3 + $0x24] sm:$0xf0] }
  0xf0   :  { %v656_v21 = vpop.f32.mrf.mxu2  ;;  %v335_v28 = vpop.f32.mrf.mxu0 }
  0xf1   :  { %v3637_v24 = vadd.f32 %v729_v39, %v656_v21  ;;  %v3641_v33 = vadd.f32 %v408_v44, %v335_v28  ;;  %v737_v34 = vpop.f32.mrf.mxu3  ;;  %v3038_v44 = vld [vmem:[%s4337_s2 + $0x24] sm:$0xf0]  ;;  %v2621_v28 = vld [vmem:[%s4337_s2 + $0x30] sm:$0xf] }
  0xf3   :  { %v415_v40 = vpop.f32.mrf.mxu1  ;;  %1306 = vmatmul.bf16.vlgmr.msrb.gmra.mxu0 %v2707_v25 }
  0xf5   :  { %2800 = vmatmul.msk.bf16.vlgmr.msrb.gmra.mxu2 %vm257_vm1, %v2711_v27  ;;  %v3085_v27 = vld [vmem:[%s4338_s6 + $0x20] sm:$0xff] }
  0xf6   :  { %1730 = vmatpush.bf16.msra.mxu0 %v3085_v27 }
  0xf8   :  { %v659_v39 = vpop.f32.mrf.mxu2  ;;  %v337_v48 = vpop.f32.mrf.mxu0 }
  0xf9   :  { %v3650_v45 = vadd.f32 %v732_v58, %v659_v39  ;;  %v3663_v51 = vadd.f32 %v410_v59, %v337_v48  ;;  %v739_v53 = vpop.f32.mrf.mxu3  ;;  %v2614_v58 = vor.u32 %v3038_v44, %v2613_v43  ;;  %v2716_v59 = vld [vmem:[%s4339_s3 + $0x18] sm:$0xf0]  ;;  %v3039_v39 = vld [vmem:[%s4337_s2 + $0x34] sm:$0xf] }
  0xfa   :  { %v2719_v14 = vor.u32 %v3059_v2, %v2716_v59  ;;  %v2623_v43 = vld [vmem:[%s4337_s2 + $0x38] sm:$0xf0]  ;;  %v3061_v2 = vld [vmem:[%s4339_s3 + $0x24] sm:$0xf] }
  0xfb   :  { %v418_v61 = vpop.f32.mrf.mxu1 }
  0xfe   :  { %992 = vmatmul.bf16.gmra.mxu1 %v2614_v58  ;;  %2693 = vmatmul.msk.bf16.gmra.mxu3 %vm257_vm1, %v2618_v60  ;;  %v2626_v58 = vor.u32 %v3039_v39, %v2623_v43  ;;  %v2629_v43 = vld [vmem:[%s4337_s2 + $0x40] sm:$0xf] }
 0x100   :  { %v661_v6 = vpop.f32.mrf.mxu2  ;;  %v340_v17 = vpop.f32.mrf.mxu0 }
 0x101   :  { %v3678_v11 = vadd.f32 %v734_v9, %v661_v6  ;;  %v3682_v20 = vadd.f32 %v413_v13, %v340_v17  ;;  %v742_v21 = vpop.f32.mrf.mxu3  ;;  %v3040_v13 = vld [vmem:[%s4337_s2 + $0x34] sm:$0xf0] }
 0x102   :  { %v2622_v48 = vor.u32 %v3040_v13, %v2621_v28 }
 0x103   :  { %v420_v25 = vpop.f32.mrf.mxu1  ;;  %1311 = vmatmul.bf16.gmra.mxu0 %v2715_v12  ;;  %v2723_v12 = vor.u32 %v3062_v0, %v2722_v63 }
 0x105   :  { %2801 = vmatmul.msk.bf16.gmra.mxu2 %vm257_vm1, %v2719_v14 }
 0x108   :  { %v664_v9 = vpop.f32.mrf.mxu2  ;;  %v342_v44 = vpop.f32.mrf.mxu0 }
 0x109   :  { %v3691_v35 = vadd.f32 %v737_v34, %v664_v9  ;;  %v3704_v47 = vadd.f32 %v415_v40, %v342_v44  ;;  %v744_v34 = vpop.f32.mrf.mxu3  ;;  %v2724_v40 = vld [vmem:[%s4339_s3 + $0x28] sm:$0xf0]  ;;  %v3042_v44 = vld [vmem:[%s4337_s2 + $0x44] sm:$0xf0] }
 0x10a   :  { %v2727_v14 = vor.u32 %v3061_v2, %v2724_v40  ;;  %v3090_v2 = vld [vmem:[%s4338_s6 + $0x48] sm:$0xff]  ;;  %v2630_v40 = vor.u32 %v3042_v44, %v2629_v43 }
 0x10b   :  { %v423_v60 = vpop.f32.mrf.mxu1  ;;  %1845 = vmatpush.bf16.msra.mxu2 %v3090_v2  ;;  %v3065_v2 = vld [vmem:[%s4339_s3 + $0x44] sm:$0xf] }
 0x10e   :  { %997 = vmatmul.bf16.gmra.mxu1 %v2622_v48  ;;  %2694 = vmatmul.msk.bf16.gmra.mxu3 %vm257_vm1, %v2626_v58  ;;  %v2631_v48 = vld [vmem:[%s4337_s2 + $0x48] sm:$0xf0] }
 0x110   :  { %v666_v59 = vpop.f32.mrf.mxu2  ;;  %v345_v17 = vpop.f32.mrf.mxu0 }
 0x111   :  { %v3719_v6 = vadd.f32 %v739_v53, %v666_v59  ;;  %v3723_v9 = vadd.f32 %v418_v61, %v345_v17  ;;  %v747_v28 = vpop.f32.mrf.mxu3  ;;  %v3041_v61 = vld [vmem:[%s4337_s2 + $0x44] sm:$0xf]  ;;  %v3064_v17 = vld [vmem:[%s4339_s3 + $0x34] sm:$0xf0] }
 0x112   :  { %v2634_v59 = vor.u32 %v3041_v61, %v2631_v48 }
 0x113   :  { %v425_v13 = vpop.f32.mrf.mxu1  ;;  %1316 = vmatmul.bf16.gmra.mxu0 %v2723_v12 }
 0x115   :  { %2802 = vmatmul.msk.bf16.gmra.mxu2 %vm257_vm1, %v2727_v14  ;;  %v2730_v14 = vld [vmem:[%s4339_s3 + $0x30] sm:$0xf] }
 0x116   :  { %v2731_v61 = vor.u32 %v3064_v17, %v2730_v14  ;;  %v2639_v14 = vld [vmem:[%s4337_s2 + $0x58] sm:$0xf0] }
 0x118   :  { %v669_v39 = vpop.f32.mrf.mxu2  ;;  %v347_v58 = vpop.f32.mrf.mxu0 }
 0x119   :  { %v3729_v53 = vadd.f32 %v742_v21, %v669_v39  ;;  %v3742_v0 = vadd.f32 %v420_v25, %v347_v58  ;;  %v749_v21 = vpop.f32.mrf.mxu3  ;;  %v3063_v25 = vld [vmem:[%s4339_s3 + $0x34] sm:$0xf]  ;;  %v2732_v39 = vld [vmem:[%s4339_s3 + $0x38] sm:$0xf0] }
 0x11a   :  { %v2735_v48 = vor.u32 %v3063_v25, %v2732_v39  ;;  %v3067_v25 = vld [vmem:[%s4339_s3 + $0x54] sm:$0xf] }
 0x11b   :  { %v428_v12 = vpop.f32.mrf.mxu1 }
 0x11e   :  { %1002 = vmatmul.bf16.gmra.mxu1 %v2630_v40  ;;  %2695 = vmatmul.msk.bf16.gmra.mxu3 %vm257_vm1, %v2634_v59  ;;  %v2637_v40 = vld [vmem:[%s4337_s2 + $0x50] sm:$0xf]  ;;  %v3044_v59 = vld [vmem:[%s4337_s2 + $0x54] sm:$0xf0] }
 0x120   :  { %v671_v43 = vpop.f32.mrf.mxu2  ;;  %v350_v58 = vpop.f32.mrf.mxu0 }
 0x121   :  { %v3760_v44 = vadd.f32 %v744_v34, %v671_v43  ;;  %v3764_v63 = vadd.f32 %v423_v60, %v350_v58  ;;  %v752_v27 = vpop.f32.mrf.mxu3  ;;  %v3043_v60 = vld [vmem:[%s4337_s2 + $0x54] sm:$0xf]  ;;  %v3066_v58 = vld [vmem:[%s4339_s3 + $0x44] sm:$0xf0] }
 0x122   :  { %v2642_v43 = vor.u32 %v3043_v60, %v2639_v14 }
 0x123   :  { %4366 = vst [vmem:[#allocation2_spill] sm:$0xff] %v3760_v44  ;;  %v430_v19 = vpop.f32.mrf.mxu1  ;;  %1321 = vmatmul.bf16.gmra.mxu0 %v2731_v61 }
 0x124   :  { %4367 = vst [vmem:[#allocation3_spill] sm:$0xff] %v3764_v63 }
 0x125   :  { %2803 = vmatmul.msk.bf16.gmra.mxu2 %vm257_vm1, %v2735_v48  ;;  %v2738_v48 = vld [vmem:[%s4339_s3 + $0x40] sm:$0xf] }
 0x128   :  { %v674_v46 = vpop.f32.mrf.mxu2  ;;  %v352_v17 = vpop.f32.mrf.mxu0 }
 0x129   :  { %v3770_v34 = vadd.f32 %v747_v28, %v674_v46  ;;  %v3783_v39 = vadd.f32 %v425_v13, %v352_v17  ;;  %v754_v46 = vpop.f32.mrf.mxu3  ;;  %v2638_v28 = vor.u32 %v3044_v59, %v2637_v40  ;;  %v2740_v13 = vld [vmem:[%s4339_s3 + $0x48] sm:$0xf0]  ;;  %v2739_v59 = vor.u32 %v3066_v58, %v2738_v48  ;;  %v3069_v58 = vld [vmem:[%s4339_s3 + $0x64] sm:$0xf] }
 0x12a   :  { %v2743_v60 = vor.u32 %v3065_v2, %v2740_v13  ;;  %v3046_v2 = vld [vmem:[%s4337_s2 + $0x64] sm:$0xf0] }
 0x12b   :  { %4368 = vst [vmem:[#allocation4_spill] sm:$0xff] %v3770_v34  ;;  %v433_v61 = vpop.f32.mrf.mxu1 }
 0x12c   :  { %4369 = vst [vmem:[#allocation5_spill] sm:$0xff] %v3783_v39 }
 0x12e   :  { %1007 = vmatmul.bf16.gmra.mxu1 %v2638_v28  ;;  %2696 = vmatmul.msk.bf16.gmra.mxu3 %vm257_vm1, %v2642_v43  ;;  %v2645_v28 = vld [vmem:[%s4337_s2 + $0x60] sm:$0xf]  ;;  %v2647_v43 = vld [vmem:[%s4337_s2 + $0x68] sm:$0xf0] }
 0x130   :  { %v676_v17 = vpop.f32.mrf.mxu2  ;;  %v355_v14 = vpop.f32.mrf.mxu0 }
 0x131   :  { %v3798_v40 = vadd.f32 %v749_v21, %v676_v17  ;;  %v3802_v50 = vadd.f32 %v428_v12, %v355_v14  ;;  %v757_v54 = vpop.f32.mrf.mxu3  ;;  %v3045_v12 = vld [vmem:[%s4337_s2 + $0x64] sm:$0xf]  ;;  %v3068_v14 = vld [vmem:[%s4339_s3 + $0x54] sm:$0xf0] }
 0x132   :  { %v2650_v17 = vor.u32 %v3045_v12, %v2647_v43 }
 0x133   :  { %4370 = vst [vmem:[#allocation6_spill] sm:$0xff] %v3798_v40  ;;  %v435_v7 = vpop.f32.mrf.mxu1  ;;  %1326 = vmatmul.bf16.gmra.mxu0 %v2739_v59 }
 0x134   :  { %4371 = vst [vmem:[#allocation7_spill] sm:$0xff] %v3802_v50  ;;  %v4387_v50 = vmax.f32 %v3486_v16, %v3502_v26  ;;  %v1144_v16 = vld [vmem:[%s4339_s3 + $0xc0] sm:$0xff] }
 0x135   :  { %2804 = vmatmul.msk.bf16.gmra.mxu2 %vm257_vm1, %v2743_v60  ;;  %v2746_v60 = vld [vmem:[%s4339_s3 + $0x50] sm:$0xf] }
 0x138   :  { %v679_v32 = vpop.f32.mrf.mxu2  ;;  %v357_v48 = vpop.f32.mrf.mxu0 }
 0x139   :  { %v3808_v21 = vadd.f32 %v752_v27, %v679_v32  ;;  %v3821_v13 = vadd.f32 %v430_v19, %v357_v48  ;;  %v759_v32 = vpop.f32.mrf.mxu3  ;;  %v2646_v27 = vor.u32 %v3046_v2, %v2645_v28  ;;  %v2748_v19 = vld [vmem:[%s4339_s3 + $0x58] sm:$0xf0]  ;;  %v2747_v2 = vor.u32 %v3068_v14, %v2746_v60 }
 0x13a   :  { %v2751_v12 = vor.u32 %v3067_v25, %v2748_v19  ;;  %v3048_v25 = vld [vmem:[%s4337_s2 + $0x74] sm:$0xf0] }
 0x13b   :  { %4372 = vst [vmem:[#allocation8_spill] sm:$0xff] %v3808_v21  ;;  %v438_v59 = vpop.f32.mrf.mxu1 }
 0x13c   :  { %4373 = vst [vmem:[#allocation9_spill] sm:$0xff] %v3821_v13 }
 0x13e   :  { %1012 = vmatmul.bf16.gmra.mxu1 %v2646_v27  ;;  %2697 = vmatmul.msk.bf16.gmra.mxu3 %vm257_vm1, %v2650_v17  ;;  %v2653_v27 = vld [vmem:[%s4337_s2 + $0x70] sm:$0xf]  ;;  %v2655_v17 = vld [vmem:[%s4337_s2 + $0x78] sm:$0xf0] }
 0x140   :  { %v681_v48 = vpop.f32.mrf.mxu2  ;;  %v360_v43 = vpop.f32.mrf.mxu0 }
 0x141   :  { %v3836_v28 = vadd.f32 %v754_v46, %v681_v48  ;;  %v3840_v37 = vadd.f32 %v433_v61, %v360_v43  ;;  %v762_v22 = vpop.f32.mrf.mxu3  ;;  %v3047_v61 = vld [vmem:[%s4337_s2 + $0x74] sm:$0xf]  ;;  %v3070_v43 = vld [vmem:[%s4339_s3 + $0x64] sm:$0xf0] }
 0x142   :  { %v2658_v48 = vor.u32 %v3047_v61, %v2655_v17 }
 0x143   :  { %4374 = vst [vmem:[#allocation10_spill] sm:$0xff] %v3836_v28  ;;  %v440_v3 = vpop.f32.mrf.mxu1  ;;  %1331 = vmatmul.bf16.gmra.mxu0 %v2747_v2 }
 0x144   :  { %4375 = vst [vmem:[#allocation11_spill] sm:$0xff] %v3840_v37  ;;  %v3078_v37 = vld [vmem:[%s4339_s3 + $0xa4] sm:$0xf0] }
 0x145   :  { %2805 = vmatmul.msk.bf16.gmra.mxu2 %vm257_vm1, %v2751_v12  ;;  %v2754_v12 = vld [vmem:[%s4339_s3 + $0x60] sm:$0xf] }
 0x148   :  { %v684_v56 = vpop.f32.mrf.mxu2  ;;  %v362_v60 = vpop.f32.mrf.mxu0 }
 0x149   :  { %v3846_v46 = vadd.f32 %v757_v54, %v684_v56  ;;  %v3859_v19 = vadd.f32 %v435_v7, %v362_v60  ;;  %v764_v56 = vpop.f32.mrf.mxu3  ;;  %v2654_v54 = vor.u32 %v3048_v25, %v2653_v27  ;;  %v2756_v7 = vld [vmem:[%s4339_s3 + $0x68] sm:$0xf0]  ;;  %v2755_v25 = vor.u32 %v3070_v43, %v2754_v12 }
 0x14a   :  { %v2759_v61 = vor.u32 %v3069_v58, %v2756_v7  ;;  %v3050_v58 = vld [vmem:[%s4337_s2 + $0x84] sm:$0xf0] }
 0x14b   :  { %4376 = vst [vmem:[#allocation12_spill] sm:$0xff] %v3846_v46  ;;  %v443_v2 = vpop.f32.mrf.mxu1 }
 0x14c   :  { %4377 = vst [vmem:[#allocation13_spill] sm:$0xff] %v3859_v19  ;;  %v2786_v19 = vld [vmem:[%s4339_s3 + $0xa0] sm:$0xf] }
 0x14e   :  { %1017 = vmatmul.bf16.gmra.mxu1 %v2654_v54  ;;  %2698 = vmatmul.msk.bf16.gmra.mxu3 %vm257_vm1, %v2658_v48  ;;  %v2661_v54 = vld [vmem:[%s4337_s2 + $0x80] sm:$0xf] }
 0x150   :  { %v686_v60 = vpop.f32.mrf.mxu2  ;;  %v365_v17 = vpop.f32.mrf.mxu0 }
 0x151   :  { %v3874_v27 = vadd.f32 %v759_v32, %v686_v60  ;;  %v3878_v30 = vadd.f32 %v438_v59, %v365_v17  ;;  %v767_v41 = vpop.f32.mrf.mxu3  ;;  %v3049_v59 = vld [vmem:[%s4337_s2 + $0x84] sm:$0xf]  ;;  %v3071_v17 = vld [vmem:[%s4339_s3 + $0x74] sm:$0xf] }
 0x153   :  { %4378 = vst [vmem:[#allocation14_spill] sm:$0xff] %v3874_v27  ;;  %v445_v15 = vpop.f32.mrf.mxu1  ;;  %1336 = vmatmul.bf16.gmra.mxu0 %v2755_v25  ;;  %v2762_v25 = vld [vmem:[%s4339_s3 + $0x70] sm:$0xf] }
 0x154   :  { %4379 = vst [vmem:[#allocation15_spill] sm:$0xff] %v3878_v30  ;;  %v2663_v15 = vld [vmem:[%s4337_s2 + $0x88] sm:$0xf0] }
 0x155   :  { %2806 = vmatmul.msk.bf16.gmra.mxu2 %vm257_vm1, %v2759_v61  ;;  %v2666_v7 = vor.u32 %v3049_v59, %v2663_v15  ;;  %v3072_v61 = vld [vmem:[%s4339_s3 + $0x74] sm:$0xf0] }
 0x158   :  { %v689_v46 = vpop.f32.mrf.mxu2  ;;  %v367_v48 = vpop.f32.mrf.mxu0 }
 0x159   :  { %v3884_v32 = vadd.f32 %v762_v22, %v689_v46  ;;  %v3897_v43 = vadd.f32 %v440_v3, %v367_v48  ;;  %v769_v22 = vpop.f32.mrf.mxu3  ;;  %v2662_v46 = vor.u32 %v3050_v58, %v2661_v54  ;;  %v2764_v3 = vld [vmem:[%s4339_s3 + $0x78] sm:$0xf0]  ;;  %v2763_v58 = vor.u32 %v3072_v61, %v2762_v25  ;;  %v3052_v25 = vld [vmem:[%s4337_s2 + $0x94] sm:$0xf0] }
 0x15a   :  { %v2767_v59 = vor.u32 %v3071_v17, %v2764_v3 }
 0x15b   :  { %4380 = vst [vmem:[#allocation16_spill] sm:$0xff] %v3884_v32  ;;  %v983_v60 = vpop.f32.mrf.mxu1 }
 0x15c   :  { %4381 = vst [vmem:[#allocation17_spill] sm:$0xff] %v3897_v43 }
 0x15e   :  { %1022 = vmatmul.bf16.gmra.mxu1 %v2662_v46  ;;  %2699 = vmatmul.msk.bf16.gmra.mxu3 %vm257_vm1, %v2666_v7 }
 0x160   :  { %v691_v48 = vpop.f32.mrf.mxu2  ;;  %v370_v15 = vpop.f32.mrf.mxu0 }
 0x161   :  { %v3912_v54 = vadd.f32 %v764_v56, %v691_v48  ;;  %v3916_v12 = vadd.f32 %v443_v2, %v370_v15  ;;  %v1056_v14 = vpop.f32.mrf.mxu3  ;;  %v2669_v56 = vld [vmem:[%s4337_s2 + $0x90] sm:$0xf]  ;;  %v2671_v2 = vld [vmem:[%s4337_s2 + $0x98] sm:$0xf0]  ;;  %v3073_v15 = vld [vmem:[%s4339_s3 + $0x84] sm:$0xf] }
 0x162   :  { %v1057_v32 = vadd.f32 %v1056_v14, %v983_v60  ;;  %v3051_v14 = vld [vmem:[%s4337_s2 + $0x94] sm:$0xf] }
 0x163   :  { %4382 = vst [vmem:[#allocation18_spill] sm:$0xff] %v3912_v54  ;;  %v3918_v30 = vpop.f32.mrf.mxu1  ;;  %1341 = vmatmul.bf16.gmra.mxu0 %v2763_v58  ;;  %v2674_v3 = vor.u32 %v3051_v14, %v2671_v2  ;;  %v2770_v58 = vld [vmem:[%s4339_s3 + $0x80] sm:$0xf] }
 0x164   :  { %4383 = vst [vmem:[#allocation19_spill] sm:$0xff] %v3916_v12  ;;  %v2677_v12 = vld [vmem:[%s4337_s2 + $0xa0] sm:$0xf] }
 0x165   :  { %2807 = vmatmul.msk.bf16.gmra.mxu2 %vm257_vm1, %v2767_v59  ;;  %v3074_v59 = vld [vmem:[%s4339_s3 + $0x84] sm:$0xf0] }
 0x168   :  { %v694_v46 = vpop.f32.mrf.mxu2  ;;  %v372_v60 = vpop.f32.mrf.mxu0 }
 0x169   :  { %v3924_v7 = vadd.f32 %v767_v41, %v694_v46  ;;  %v3937_v17 = vpop.f32.mrf.mxu3  ;;  %v2670_v41 = vor.u32 %v3052_v25, %v2669_v56  ;;  %v2772_v46 = vld [vmem:[%s4339_s3 + $0x88] sm:$0xf0]  ;;  %v2771_v56 = vor.u32 %v3074_v59, %v2770_v58 }
 0x16a   :  { %v2775_v25 = vor.u32 %v3073_v15, %v2772_v46 }
 0x16b   :  { %4384 = vst [vmem:[#allocation20_spill] sm:$0xff] %v3924_v7  ;;  %v988_v48 = vpop.f32.mrf.mxu1 }
 0x16e   :  { %1027 = vmatmul.bf16.gmra.mxu1 %v2670_v41  ;;  %2700 = vmatmul.msk.bf16.gmra.mxu3 %vm257_vm1, %v2674_v3  ;;  %v3054_v41 = vld [vmem:[%s4337_s2 + $0xa4] sm:$0xf0]  ;;  %v3053_v3 = vld [vmem:[%s4337_s2 + $0xa4] sm:$0xf] }
 0x16f   :  { %v2678_v46 = vor.u32 %v3054_v41, %v2677_v12 }
 0x170   :  { %v696_v60 = vpop.f32.mrf.mxu2  ;;  %v1307_v14 = vpop.f32.mrf.mxu0 }
 0x171   :  { %v1061_v2 = vpop.f32.mrf.mxu3 }
 0x172   :  { %v1062_v61 = vadd.f32 %v1061_v2, %v988_v48  ;;  %v2679_v48 = vld [vmem:[%s4337_s2 + $0xa8] sm:$0xf0]  ;;  %v3076_v2 = vld [vmem:[%s4339_s3 + $0x94] sm:$0xf0] }
 0x173   :  { %v3952_v22 = vpop.f32.mrf.mxu1  ;;  %1346 = vmatmul.bf16.gmra.mxu0 %v2771_v56  ;;  %v2682_v60 = vor.u32 %v3053_v3, %v2679_v48 }
 0x175   :  { %2808 = vmatmul.msk.bf16.gmra.mxu2 %vm257_vm1, %v2775_v25 }
 0x178   :  { %v1380_v7 = vpop.f32.mrf.mxu2  ;;  %v1309_v58 = vpop.f32.mrf.mxu0 }
 0x179   :  { %v1381_v54 = vadd.f32 %v1380_v7, %v1307_v14  ;;  %v3967_v15 = vpop.f32.mrf.mxu3  ;;  %v4385_v7 = vmax.f32 %v3468_v5, %v3473_v10  ;;  %v2778_v14 = vld [vmem:[%s4339_s3 + $0x90] sm:$0xf]  ;;  %v2780_v5 = vld [vmem:[%s4339_s3 + $0x98] sm:$0xf0] }
 0x17a   :  { %v2779_v12 = vor.u32 %v3076_v2, %v2778_v14  ;;  %v2687_v14 = vld [vmem:[%s4337_s2 + $0xb8] sm:$0xf0] }
 0x17b   :  { %v1444_v59 = vmax.f32 %v1057_v32, %v1381_v54  ;;  %v3974_v25 = vpop.f32.mrf.mxu1  ;;  %v3075_v32 = vld [vmem:[%s4339_s3 + $0x94] sm:$0xf] }
 0x17c   :  { %v2783_v54 = vor.u32 %v3075_v32, %v2780_v5 }
 0x17d   :  { %v3972_v56 = vmax.f32 %v4385_v7, %v1444_v59  ;;  %v2685_v7 = vld [vmem:[%s4337_s2 + $0xb0] sm:$0xf] }
 0x17e   :  { %1032 = vmatmul.bf16.gmra.mxu1 %v2678_v46  ;;  %2701 = vmatmul.msk.bf16.gmra.mxu3 %vm257_vm1, %v2682_v60  ;;  %v3056_v46 = vld [vmem:[%s4337_s2 + $0xb4] sm:$0xf0]  ;;  %v3055_v60 = vld [vmem:[%s4337_s2 + $0xb4] sm:$0xf] }
 0x180   :  { %v1382_v10 = vpop.f32.mrf.mxu2  ;;  %v1312_v41 = vpop.f32.mrf.mxu0 }
 0x181   :  { %v3989_v3 = vpop.f32.mrf.mxu3  ;;  %v1383_v13 = vadd.f32 %v1382_v10, %v1309_v58  ;;  %v2794_v58 = vld [vmem:[%s4339_s3 + $0xb0] sm:$0xf] }
 0x183   :  { %v3991_v48 = vpop.f32.mrf.mxu1  ;;  %1351 = vmatmul.bf16.gmra.mxu0 %v2779_v12  ;;  %v2686_v12 = vor.u32 %v3056_v46, %v2685_v7 }
 0x185   :  { %2809 = vmatmul.msk.bf16.gmra.mxu2 %vm257_vm1, %v2783_v54  ;;  %v2690_v54 = vor.u32 %v3055_v60, %v2687_v14 }
 0x188   :  { %v1385_v59 = vpop.f32.mrf.mxu2  ;;  %v1314_v2 = vpop.f32.mrf.mxu0 }
 0x189   :  { %v1386_v43 = vadd.f32 %v1385_v59, %v1312_v41  ;;  %v4006_v5 = vpop.f32.mrf.mxu3  ;;  %v4386_v41 = vmax.f32 %v3506_v31, %v3511_v36  ;;  %v2788_v31 = vld [vmem:[%s4339_s3 + $0xa8] sm:$0xf0] }
 0x18b   :  { %v1446_v32 = vmax.f32 %v1062_v61, %v1386_v43  ;;  %v4013_v27 = vpop.f32.mrf.mxu1  ;;  %v3077_v43 = vld [vmem:[%s4339_s3 + $0xa4] sm:$0xf]  ;;  %v2787_v61 = vor.u32 %v3078_v37, %v2786_v19  ;;  %v1059_v19 = vadd.f32 %v3937_v17, %v3918_v30  ;;  %v3080_v30 = vld [vmem:[%s4339_s3 + $0xb4] sm:$0xf0]  ;;  %v2796_v17 = vld [vmem:[%s4339_s3 + $0xb8] sm:$0xf0] }
 0x18c   :  { %v2791_v7 = vor.u32 %v3077_v43, %v2788_v31 }
 0x18d   :  { %v4011_v59 = vmax.f32 %v4386_v41, %v1446_v32  ;;  %v820_v32 = vld [vmem:[%s4337_s2 + $0xc0] sm:$0xff]  ;;  %v1445_v10 = vmax.f32 %v1059_v19, %v1383_v13 }
 0x18e   :  { %1037 = vmatmul.bf16.gmra.mxu1 %v2686_v12  ;;  %2702 = vmatmul.msk.bf16.gmra.mxu3 %vm257_vm1, %v2690_v54  ;;  %v894_v28 = vunpack.c.l.b16 %v820_v32  ;;  %v895_v12 = vunpack.c.h.b16 %v820_v32  ;;  %v4066_v19 = vld [vmem:[%s4340_s5] ss:$0 sm:$0xff] }
 0x18f   :  { %v1470_v40 = vmax.f32 %v4387_v50, %v1445_v10  ;;  %v1064_v50 = vadd.f32 %v3967_v15, %v3952_v22 }
 0x190   :  { %v1387_v36 = vpop.f32.mrf.mxu2  ;;  %v1317_v46 = vpop.f32.mrf.mxu0  ;;  %v920_v43 = vpack.c.b16 %v894_v28, %v894_v28  ;;  %v921_v31 = vpack.c.b16 %v895_v12, %v895_v12  ;;  %v3079_v28 = vld [vmem:[%s4339_s3 + $0xb4] sm:$0xf]  ;;  %v2795_v12 = vor.u32 %v3080_v30, %v2794_v58 }
 0x191   :  { %v4028_v60 = vpop.f32.mrf.mxu3  ;;  %v2799_v13 = vor.u32 %v3079_v28, %v2796_v17  ;;  %v1388_v30 = vadd.f32 %v1387_v36, %v1314_v2  ;;  %v1219_v17 = vunpack.c.h.b16 %v1144_v16  ;;  %v3087_v2 = vld [vmem:[%s4338_s6 + $0x30] sm:$0xff] }
 0x193   :  { %v4030_v14 = vpop.f32.mrf.mxu1  ;;  %1356 = vmatmul.bf16.gmra.mxu0 %v2787_v61  ;;  %v3083_v61 = vld [vmem:[%s4338_s6 + $0x10] sm:$0xff]  ;;  %v1245_v44 = vpack.c.b16 %v1219_v17, %v1219_v17 }
 0x194   :  { %1684 = vmatpush.bf16.msrb.mxu1 %v3083_v61 }
 0x195   :  { %2810 = vmatmul.msk.bf16.gmra.mxu2 %vm257_vm1, %v2791_v7  ;;  %v3084_v7 = vld [vmem:[%s4338_s6 + $0x18] sm:$0xff] }
 0x196   :  { %1707 = vmatpush.bf16.msrb.mxu3 %v3084_v7 }
 0x198   :  { %v1390_v41 = vpop.f32.mrf.mxu2  ;;  %v4036_v54 = vpop.f32.mrf.mxu0 }
 0x199   :  { %v4038_v37 = vpop.f32.mrf.mxu3  ;;  %v1391_v22 = vadd.f32 %v1390_v41, %v1317_v46 }
 0x19b   :  { %v4048_v21 = vpop.f32.mrf.mxu1 }
 0x19e   :  { %1042 = vmatmul.bf16.gmra.mxu1 %v920_v43  ;;  %2703 = vmatmul.msk.bf16.gmra.mxu3 %vm257_vm1, %v921_v31  ;;  %v1498_v43 = vadd.f32 %v4066_v19, %v3972_v56  ;;  %v1499_v31 = vadd.f32 %v4066_v19, %v1470_v40  ;;  %v1218_v56 = vunpack.c.l.b16 %v1144_v16  ;;  %v3086_v40 = vld [vmem:[%s4338_s6 + $0x28] sm:$0xff] }
 0x1a0   :  { %v1392_v32 = vpop.f32.mrf.mxu2  ;;  %v1322_v39 = vpop.f32.mrf.mxu0  ;;  %v1523_v7 = vmax.f32 %v1498_v43, 0.0  ;;  %v1524_v58 = vmax.f32 %v1499_v31, 0.0  ;;  %v1067_v43 = vadd.f32 %v3989_v3, %v3974_v25  ;;  %v3089_v31 = vld [vmem:[%s4338_s6 + $0x40] sm:$0xff]  ;;  %v1244_v16 = vpack.c.b16 %v1218_v56, %v1218_v56 }
 0x1a1   :  { %v1076_v34 = vpop.f32.mrf.mxu3  ;;  %1822 = vmatpush.bf16.msrb.mxu0 %v3089_v31  ;;  %v4389_v56 = vmax.f32 %v3544_v57, %v3552_v1  ;;  %v3088_v1 = vld [vmem:[%s4338_s6 + $0x38] sm:$0xff]  ;;  %v4390_v31 = vmax.f32 %v3556_v4, %v3572_v18  ;;  %v4392_v18 = vmax.f32 %v3622_v8, %v3637_v24 }
 0x1a2   :  { %v1548_v36 = vpack.c.bf16 %v1523_v7, %v1523_v7  ;;  %v4388_v7 = vmax.f32 %v3524_v42, %v3540_v52  ;;  %v1448_v3 = vmax.f32 %v1067_v43, %v1391_v22  ;;  %v1393_v52 = vadd.f32 %v1392_v32, %v4036_v54 }
 0x1a3   :  { %v4071_v63 = vpop.f32.mrf.mxu1  ;;  %1361 = vmatmul.bf16.gmra.mxu0 %v2795_v12  ;;  %v1549_v12 = vpack.c.bf16 %v1524_v58, %v1524_v58 }
 0x1a4   :  { %v1473_v17 = vmax.f32 %v4389_v56, %v1448_v3  ;;  %v4391_v3 = vmax.f32 %v3576_v23, %v3581_v29  ;;  %v4393_v29 = vmax.f32 %v3604_v55, %v3609_v62 }
 0x1a5   :  { %2811 = vmatmul.msk.bf16.gmra.mxu2 %vm257_vm1, %v2799_v13  ;;  %v1447_v13 = vmax.f32 %v1064_v50, %v1388_v30  ;;  %v1500_v30 = vadd.f32 %v4066_v19, %v4011_v59 }
 0x1a6   :  { %v1502_v59 = vadd.f32 %v4066_v19, %v1473_v17 }
 0x1a7   :  { %v1472_v58 = vmax.f32 %v4388_v7, %v1447_v13 }
 0x1a8   :  { %v1395_v61 = vpop.f32.mrf.mxu2  ;;  %v4077_v28 = vpop.f32.mrf.mxu0  ;;  %v1527_v32 = vmax.f32 %v1502_v59, 0.0 }
 0x1a9   :  { %v1078_v26 = vpop.f32.mrf.mxu3  ;;  %v1501_v50 = vadd.f32 %v4066_v19, %v1472_v58 }
 0x1aa   :  { %v1079_v7 = vadd.f32 %v1078_v26, %v4071_v63 }
 0x1ab   :  { %v4084_v10 = vpop.f32.mrf.mxu1 }
 0x1ae   :  { %2817 = vmatmul.msk.bf16.vlgmr.msra.gmra.mxu1 %vm1629_vm2, %v1549_v12  ;;  %2822 = vmatmul.msk.bf16.vlgmr.msra.gmra.mxu3 %vm1629_vm2, %v1548_v36  ;;  %v1072_v36 = vadd.f32 %v4028_v60, %v4013_v27  ;;  %v1396_v12 = vadd.f32 %v1395_v61, %v1322_v39  ;;  %v3091_v27 = vld [vmem:[%s4338_s6 + $0x50] sm:$0xff] }
 0x1af   :  { %1753 = vmatpush.bf16.msra.mxu3 %v3086_v40  ;;  %1776 = vmatpush.bf16.msra.mxu1 %v3087_v2  ;;  %v1525_v40 = vmax.f32 %v1500_v30, 0.0  ;;  %v1526_v2 = vmax.f32 %v1501_v50, 0.0 }
 0x1b0   :  { %v4094_v15 = vpop.f32.mrf.mxu2  ;;  %v1327_v25 = vpop.f32.mrf.mxu0  ;;  %v1450_v54 = vmax.f32 %v1072_v36, %v1396_v12 }
 0x1b1   :  { %v1081_v46 = vpop.f32.mrf.mxu3  ;;  %v1550_v39 = vpack.c.bf16 %v1525_v40, %v1525_v40  ;;  %v1551_v60 = vpack.c.bf16 %v1526_v2, %v1526_v2  ;;  %v3094_v2 = vld [vmem:[%s4338_s6 + $0x68] sm:$0xff]  ;;  %v1398_v12 = vadd.f32 %v4094_v15, %v4077_v28 }
 0x1b2   :  { %v1475_v30 = vmax.f32 %v4391_v3, %v1450_v54  ;;  %1937 = vmatpush.bf16.msrb.mxu2 %v3094_v2 }
 0x1b3   :  { %v4104_v41 = vpop.f32.mrf.mxu1  ;;  %1366 = vmatmul.bf16.gmra.mxu0 %v1244_v16 }
 0x1b4   :  { %v1504_v23 = vadd.f32 %v4066_v19, %v1475_v30 }
 0x1b5   :  { %2812 = vmatmul.msk.bf16.gmra.mxu2 %vm257_vm1, %v1245_v44  ;;  %v1069_v44 = vadd.f32 %v4006_v5, %v3991_v48  ;;  %v1077_v48 = vadd.f32 %v1076_v34, %v4048_v21  ;;  %v3093_v21 = vld [vmem:[%s4338_s6 + $0x60] sm:$0xff] }
 0x1b6   :  { %v1529_v36 = vmax.f32 %v1504_v23, 0.0 }
 0x1b7   :  { %v1449_v22 = vmax.f32 %v1069_v44, %v1393_v52 }
 0x1b8   :  { %v1400_v42 = vpop.f32.mrf.mxu2  ;;  %v1329_v13 = vpop.f32.mrf.mxu0  ;;  %v1554_v15 = vpack.c.bf16 %v1529_v36, %v1529_v36 }
 0x1b9   :  { %v4119_v43 = vpop.f32.mrf.mxu3  ;;  %v1401_v5 = vadd.f32 %v1400_v42, %v1327_v25  ;;  %v1474_v16 = vmax.f32 %v4390_v31, %v1449_v22  ;;  %v1552_v25 = vpack.c.bf16 %v1527_v32, %v1527_v32 }
 0x1bb   :  { %v4121_v57 = vpop.f32.mrf.mxu1  ;;  %v1452_v50 = vmax.f32 %v1077_v48, %v1401_v5  ;;  %v1503_v4 = vadd.f32 %v4066_v19, %v1474_v16  ;;  %v4395_v48 = vmax.f32 %v3641_v33, %v3650_v45 }
 0x1bd   :  { %v1477_v42 = vmax.f32 %v4393_v29, %v1452_v50  ;;  %v1528_v8 = vmax.f32 %v1503_v4, 0.0  ;;  %v4396_v4 = vmax.f32 %v3682_v20, %v3691_v35  ;;  %v3097_v20 = vld [vmem:[%s4338_s6 + $0x80] sm:$0xff] }
 0x1be   :  { %2827 = vmatmul.msk.bf16.vlgmr.msrb.gmra.mxu1 %vm1629_vm2, %v1550_v39  ;;  %2832 = vmatmul.msk.bf16.vlgmr.msrb.gmra.mxu3 %vm1629_vm2, %v1551_v60  ;;  %v3092_v39 = vld [vmem:[%s4338_s6 + $0x58] sm:$0xff] }
 0x1bf   :  { %1799 = vmatpush.bf16.msrb.mxu3 %v3088_v1  ;;  %1868 = vmatpush.bf16.msrb.mxu1 %v3091_v27  ;;  %v1506_v55 = vadd.f32 %v4066_v19, %v1477_v42  ;;  %v1074_v1 = vadd.f32 %v4038_v37, %v4030_v14  ;;  %v1553_v28 = vpack.c.bf16 %v1528_v8, %v1528_v8  ;;  %v3095_v14 = vld [vmem:[%s4338_s6 + $0x70] sm:$0xff] }
 0x1c0   :  { %v1402_v61 = vpop.f32.mrf.mxu2  ;;  %v1332_v34 = vpop.f32.mrf.mxu0  ;;  %v4394_v37 = vmax.f32 %v3594_v38, %v3600_v49 }
 0x1c1   :  { %v1403_v58 = vadd.f32 %v1402_v61, %v1329_v13  ;;  %v1086_v17 = vpop.f32.mrf.mxu3  ;;  %v1082_v13 = vadd.f32 %v1081_v46, %v4084_v10  ;;  %v1451_v10 = vmax.f32 %v1074_v1, %v1398_v12  ;;  %v1531_v60 = vmax.f32 %v1506_v55, 0.0 }
 0x1c2   :  { %v1087_v30 = vadd.f32 %v1086_v17, %v4121_v57  ;;  %v3096_v57 = vld [vmem:[%s4338_s6 + $0x78] sm:$0xff] }
 0x1c3   :  { %v1453_v56 = vmax.f32 %v1079_v7, %v1403_v58  ;;  %v4146_v26 = vpop.f32.mrf.mxu1  ;;  %2837 = vmatmul.msk.bf16.vlgmr.msra.gmra.mxu0 %vm1629_vm2, %v1552_v25  ;;  %v1476_v32 = vmax.f32 %v4394_v37, %v1451_v10  ;;  %v1556_v31 = vpack.c.bf16 %v1531_v60, %v1531_v60  ;;  %v4399_v10 = vmax.f32 %v3723_v9, %v3729_v53  ;;  %v3099_v37 = vld [vmem:[%s4338_s6 + $0x90] sm:$0xff] }
 0x1c4   :  { %1914 = vmatpush.bf16.msra.mxu0 %v3093_v21 }
 0x1c5   :  { %v1478_v63 = vmax.f32 %v4392_v18, %v1453_v56  ;;  %v1505_v58 = vadd.f32 %v4066_v19, %v1476_v32  ;;  %v1084_v56 = vadd.f32 %v4119_v43, %v4104_v41 }
 0x1c7   :  { %v1507_v52 = vadd.f32 %v4066_v19, %v1478_v63  ;;  %v1530_v49 = vmax.f32 %v1505_v58, 0.0 }
 0x1c8   :  { %v1405_v40 = vpop.f32.mrf.mxu2  ;;  %v1334_v59 = vpop.f32.mrf.mxu0 }
 0x1c9   :  { %v1532_v24 = vmax.f32 %v1507_v52, 0.0  ;;  %v1406_v44 = vadd.f32 %v1405_v40, %v1332_v34  ;;  %v1088_v22 = vpop.f32.mrf.mxu3  ;;  %v1555_v17 = vpack.c.bf16 %v1530_v49, %v1530_v49  ;;  %v4397_v40 = vmax.f32 %v3663_v51, %v3678_v11  ;;  %v3098_v51 = vld [vmem:[%s4338_s6 + $0x88] sm:$0xff] }
 0x1ca   :  { %v1089_v35 = vadd.f32 %v1088_v22, %v4146_v26 }
 0x1cb   :  { %v1557_v62 = vpack.c.bf16 %v1532_v24, %v1532_v24  ;;  %v1018_v27 = vpop.f32.mrf.mxu1  ;;  %v1454_v46 = vmax.f32 %v1082_v13, %v1406_v44  ;;  %v4398_v13 = vmax.f32 %v3704_v47, %v3719_v6 }
 0x1cd   :  { %2862 = vmatmul.msk.bf16.vlgmr.msra.gmra.mxu2 %vm1629_vm2, %v1557_v62  ;;  %v1479_v5 = vmax.f32 %v4395_v48, %v1454_v46 }
 0x1ce   :  { %2842 = vmatmul.msk.bf16.vlgmr.msra.gmra.mxu3 %vm1629_vm2, %v1553_v28  ;;  %2847 = vmatmul.msk.bf16.vlgmr.msra.gmra.mxu1 %vm1629_vm2, %v1554_v15 }
 0x1cf   :  { %1891 = vmatpush.bf16.msra.mxu3 %v3092_v39  ;;  %1960 = vmatpush.bf16.msra.mxu1 %v3095_v14  ;;  %v1508_v3 = vadd.f32 %v4066_v19, %v1479_v5 }
 0x1d0   :  { %v1407_v54 = vpop.f32.mrf.mxu2  ;;  %v1337_v61 = vpop.f32.mrf.mxu0  ;;  %2029 = vmatpush.bf16.msra.mxu2 %v3098_v51 }
 0x1d1   :  { %v1091_v16 = vpop.f32.mrf.mxu3  ;;  %v1533_v21 = vmax.f32 %v1508_v3, 0.0  ;;  %v1408_v25 = vadd.f32 %v1407_v54, %v1334_v59 }
 0x1d2   :  { %v1092_v55 = vadd.f32 %v1091_v16, %v1018_v27  ;;  %v4400_v16 = vld [vmem:[#allocation2_spill] sm:$0xff] }
 0x1d3   :  { %v1020_v7 = vpop.f32.mrf.mxu1  ;;  %2857 = vmatmul.msk.bf16.vlgmr.msrb.gmra.mxu0 %vm1629_vm2, %v1556_v31  ;;  %v1558_v23 = vpack.c.bf16 %v1533_v21, %v1533_v21  ;;  %v1455_v29 = vmax.f32 %v1084_v56, %v1408_v25  ;;  %v4401_v58 = vmax.f32 %v3742_v0, %v4400_v16  ;;  %v4402_v56 = vld [vmem:[#allocation3_spill] sm:$0xff]  ;;  %v4403_v0 = vld [vmem:[#allocation4_spill] sm:$0xff] }
 0x1d4   :  { %2006 = vmatpush.bf16.msrb.mxu0 %v3097_v20 }
 0x1d5   :  { %v1480_v2 = vmax.f32 %v4397_v40, %v1455_v29  ;;  %v3101_v29 = vld [vmem:[%s4338_s6 + $0xa0] sm:$0xff] }
 0x1d7   :  { %v1509_v26 = vadd.f32 %v4066_v19, %v1480_v2  ;;  %v4405_v2 = vld [vmem:[#allocation5_spill] sm:$0xff] }
 0x1d8   :  { %v1410_v34 = vpop.f32.mrf.mxu2  ;;  %v1339_v33 = vpop.f32.mrf.mxu0 }
 0x1d9   :  { %v1411_v38 = vadd.f32 %v1410_v34, %v1337_v61  ;;  %v1093_v50 = vpop.f32.mrf.mxu3  ;;  %v1534_v39 = vmax.f32 %v1509_v26, 0.0 }
 0x1da   :  { %v1094_v32 = vadd.f32 %v1093_v50, %v1020_v7  ;;  %v3100_v7 = vld [vmem:[%s4338_s6 + $0x98] sm:$0xff] }
 0x1db   :  { %v1456_v45 = vmax.f32 %v1087_v30, %v1411_v38  ;;  %v1023_v63 = vpop.f32.mrf.mxu1  ;;  %v1559_v60 = vpack.c.bf16 %v1534_v39, %v1534_v39  ;;  %v4408_v39 = vld [vmem:[#allocation7_spill] sm:$0xff] }
 0x1dd   :  { %v1481_v18 = vmax.f32 %v4396_v4, %v1456_v45  ;;  %v4404_v4 = vmax.f32 %v4402_v56, %v4403_v0  ;;  %v4415_v56 = vld [vmem:[#allocation12_spill] sm:$0xff] }
 0x1de   :  { %2852 = vmatmul.msk.bf16.vlgmr.msrb.gmra.mxu3 %vm1629_vm2, %v1555_v17  ;;  %2867 = vmatmul.msk.bf16.vlgmr.msrb.gmra.mxu1 %vm1629_vm2, %v1558_v23 }
 0x1df   :  { %v1510_v42 = vadd.f32 %v4066_v19, %v1481_v18  ;;  %1983 = vmatpush.bf16.msrb.mxu3 %v3096_v57  ;;  %2052 = vmatpush.bf16.msrb.mxu1 %v3099_v37 }
 0x1e0   :  { %v1412_v52 = vpop.f32.mrf.mxu2  ;;  %v1342_v8 = vpop.f32.mrf.mxu0 }
 0x1e1   :  { %v1535_v41 = vmax.f32 %v1510_v42, 0.0  ;;  %v1413_v43 = vadd.f32 %v1412_v52, %v1339_v33  ;;  %v1096_v12 = vpop.f32.mrf.mxu3 }
 0x1e2   :  { %v1097_v34 = vadd.f32 %v1096_v12, %v1023_v63 }
 0x1e3   :  { %v1560_v24 = vpack.c.bf16 %v1535_v41, %v1535_v41  ;;  %v1457_v36 = vmax.f32 %v1089_v35, %v1413_v43  ;;  %v1025_v59 = vpop.f32.mrf.mxu1 }
 0x1e5   :  { %v1482_v44 = vmax.f32 %v4398_v13, %v1457_v36  ;;  %2877 = vmatmul.msk.bf16.vlgmr.msra.gmra.mxu0 %vm1629_vm2, %v1560_v24 }
 0x1e6   :  { %2098 = vmatpush.bf16.msra.mxu0 %v3101_v29 }
 0x1e7   :  { %v1511_v62 = vadd.f32 %v4066_v19, %v1482_v44 }
 0x1e8   :  { %v1415_v22 = vpop.f32.mrf.mxu2  ;;  %v1344_v28 = vpop.f32.mrf.mxu0 }
 0x1e9   :  { %v1536_v11 = vmax.f32 %v1511_v62, 0.0  ;;  %v1416_v1 = vadd.f32 %v1415_v22, %v1342_v8  ;;  %v1098_v15 = vpop.f32.mrf.mxu3  ;;  %v4406_v8 = vld [vmem:[#allocation6_spill] sm:$0xff] }
 0x1ea   :  { %v1099_v42 = vadd.f32 %v1098_v15, %v1025_v59  ;;  %v4407_v24 = vmax.f32 %v4405_v2, %v4406_v8  ;;  %v3102_v59 = vld [vmem:[%s4338_s6 + $0xa8] sm:$0xff] }
 0x1eb   :  { %v1561_v47 = vpack.c.bf16 %v1536_v11, %v1536_v11  ;;  %v1458_v6 = vmax.f32 %v1092_v55, %v1416_v1  ;;  %v1028_v27 = vpop.f32.mrf.mxu1 }
 0x1ed   :  { %v1483_v46 = vmax.f32 %v4399_v10, %v1458_v6  ;;  %2882 = vmatmul.msk.bf16.vlgmr.msrb.gmra.mxu2 %vm1629_vm2, %v1561_v47 }
 0x1ee   :  { %2872 = vmatmul.msk.bf16.vlgmr.msra.gmra.mxu3 %vm1629_vm2, %v1559_v60  ;;  %2121 = vmatpush.bf16.msrb.mxu2 %v3102_v59 }
 0x1ef   :  { %v1512_v54 = vadd.f32 %v4066_v19, %v1483_v46  ;;  %2075 = vmatpush.bf16.msra.mxu3 %v3100_v7 }
 0x1f0   :  { %v1417_v14 = vpop.f32.mrf.mxu2  ;;  %v1347_v61 = vpop.f32.mrf.mxu0 }
 0x1f1   :  { %v1537_v48 = vmax.f32 %v1512_v54, 0.0  ;;  %v1418_v5 = vadd.f32 %v1417_v14, %v1344_v28  ;;  %v1101_v31 = vpop.f32.mrf.mxu3  ;;  %v4409_v28 = vld [vmem:[#allocation8_spill] sm:$0xff] }
 0x1f2   :  { %v1102_v13 = vadd.f32 %v1101_v31, %v1028_v27  ;;  %v4410_v47 = vmax.f32 %v4408_v39, %v4409_v28  ;;  %v3103_v27 = vld [vmem:[%s4338_s6 + $0xb0] sm:$0xff] }
 0x1f3   :  { %v1562_v9 = vpack.c.bf16 %v1537_v48, %v1537_v48  ;;  %v1459_v53 = vmax.f32 %v1094_v32, %v1418_v5  ;;  %v1030_v30 = vpop.f32.mrf.mxu1 }
 0x1f5   :  { %v1484_v3 = vmax.f32 %v4401_v58, %v1459_v53  ;;  %2887 = vmatmul.msk.bf16.vlgmr.msra.gmra.mxu1 %vm1629_vm2, %v1562_v9  ;;  %v4411_v9 = vld [vmem:[#allocation9_spill] sm:$0xff]  ;;  %v4412_v53 = vld [vmem:[#allocation10_spill] sm:$0xff] }
 0x1f6   :  { %2144 = vmatpush.bf16.msra.mxu1 %v3103_v27  ;;  %v4413_v31 = vmax.f32 %v4411_v9, %v4412_v53 }
 0x1f7   :  { %v1513_v38 = vadd.f32 %v4066_v19, %v1484_v3 }
 0x1f8   :  { %v1420_v49 = vpop.f32.mrf.mxu2  ;;  %v1349_v33 = vpop.f32.mrf.mxu0 }
 0x1f9   :  { %v1421_v21 = vadd.f32 %v1420_v49, %v1347_v61  ;;  %v1538_v25 = vmax.f32 %v1513_v38, 0.0  ;;  %v1103_v50 = vpop.f32.mrf.mxu3  ;;  %v3104_v61 = vld [vmem:[%s4338_s6 + $0xb8] sm:$0xff] }
 0x1fa   :  { %v1104_v60 = vadd.f32 %v1103_v50, %v1030_v30  ;;  %v4414_v50 = vld [vmem:[#allocation11_spill] sm:$0xff] }
 0x1fb   :  { %v1460_v45 = vmax.f32 %v1097_v34, %v1421_v21  ;;  %v1033_v57 = vpop.f32.mrf.mxu1  ;;  %v1563_v17 = vpack.c.bf16 %v1538_v25, %v1538_v25  ;;  %v4416_v0 = vmax.f32 %v4414_v50, %v4415_v56 }
 0x1fd   :  { %v1485_v18 = vmax.f32 %v4404_v4, %v1460_v45  ;;  %v3105_v45 = vld [vmem:[%s4338_s6 + $0xc0] sm:$0xff] }
 0x1fe   :  { %2892 = vmatmul.msk.bf16.vlgmr.msrb.gmra.mxu3 %vm1629_vm2, %v1563_v17 }
 0x1ff   :  { %v1514_v63 = vadd.f32 %v4066_v19, %v1485_v18  ;;  %2167 = vmatpush.bf16.msrb.mxu3 %v3104_v61 }
 0x200   :  { %v1422_v23 = vpop.f32.mrf.mxu2  ;;  %v1352_v35 = vpop.f32.mrf.mxu0 }
 0x201   :  { %v1539_v52 = vmax.f32 %v1514_v63, 0.0  ;;  %v1423_v20 = vadd.f32 %v1422_v23, %v1349_v33  ;;  %v1106_v40 = vpop.f32.mrf.mxu3 }
 0x202   :  { %v1107_v3 = vadd.f32 %v1106_v40, %v1033_v57 }
 0x203   :  { %v1564_v41 = vpack.c.bf16 %v1539_v52, %v1539_v52  ;;  %v1461_v43 = vmax.f32 %v1099_v42, %v1423_v20  ;;  %v1035_v12 = vpop.f32.mrf.mxu1 }
 0x205   :  { %v1486_v36 = vmax.f32 %v4407_v24, %v1461_v43  ;;  %2897 = vmatmul.msk.bf16.vlgmr.msrb.gmra.mxu0 %vm1629_vm2, %v1564_v41  ;;  %v4417_v41 = vld [vmem:[#allocation13_spill] sm:$0xff]  ;;  %v4418_v43 = vld [vmem:[#allocation14_spill] sm:$0xff] }
 0x206   :  { %2190 = vmatpush.bf16.msrb.mxu0 %v3105_v45  ;;  %v4419_v40 = vmax.f32 %v4417_v41, %v4418_v43 }
 0x207   :  { %v1515_v44 = vadd.f32 %v4066_v19, %v1486_v36 }
 0x208   :  { %v1425_v26 = vpop.f32.mrf.mxu2  ;;  %v1354_v22 = vpop.f32.mrf.mxu0 }
 0x209   :  { %v1540_v55 = vmax.f32 %v1515_v44, 0.0  ;;  %v1426_v62 = vadd.f32 %v1425_v26, %v1352_v35  ;;  %v1108_v1 = vpop.f32.mrf.mxu3 }
 0x20a   :  { %v1109_v63 = vadd.f32 %v1108_v1, %v1035_v12 }
 0x20b   :  { %v1565_v51 = vpack.c.bf16 %v1540_v55, %v1540_v55  ;;  %v1462_v11 = vmax.f32 %v1102_v13, %v1426_v62  ;;  %v1038_v15 = vpop.f32.mrf.mxu1 }
 0x20d   :  { %v1487_v6 = vmax.f32 %v4410_v47, %v1462_v11  ;;  %2902 = vmatmul.msk.bf16.vlgmr.msra.gmra.mxu2 %vm1629_vm2, %v1565_v51  ;;  %v4421_v51 = vld [vmem:[#allocation16_spill] sm:$0xff] }
 0x20f   :  { %v1516_v10 = vadd.f32 %v4066_v19, %v1487_v6 }
 0x210   :  { %v1427_v46 = vpop.f32.mrf.mxu2  ;;  %v1357_v37 = vpop.f32.mrf.mxu0 }
 0x211   :  { %v1541_v54 = vmax.f32 %v1516_v10, 0.0  ;;  %v1428_v14 = vadd.f32 %v1427_v46, %v1354_v22  ;;  %v1111_v5 = vpop.f32.mrf.mxu3  ;;  %v4420_v22 = vld [vmem:[#allocation15_spill] sm:$0xff] }
 0x212   :  { %v1112_v24 = vadd.f32 %v1111_v5, %v1038_v15  ;;  %v4422_v11 = vmax.f32 %v4420_v22, %v4421_v51 }
 0x213   :  { %v1566_v32 = vpack.c.bf16 %v1541_v54, %v1541_v54  ;;  %v1463_v48 = vmax.f32 %v1104_v60, %v1428_v14  ;;  %v1040_v58 = vpop.f32.mrf.mxu1 }
 0x215   :  { %v1488_v16 = vmax.f32 %v4413_v31, %v1463_v48  ;;  %2907 = vmatmul.msk.bf16.vlgmr.msrb.gmra.mxu1 %vm1629_vm2, %v1566_v32  ;;  %v4424_v32 = vld [vmem:[#allocation18_spill] sm:$0xff] }
 0x217   :  { %v1517_v30 = vadd.f32 %v4066_v19, %v1488_v16 }
 0x218   :  { %v1430_v34 = vpop.f32.mrf.mxu2  ;;  %v1359_v7 = vpop.f32.mrf.mxu0 }
 0x219   :  { %v1542_v38 = vmax.f32 %v1517_v30, 0.0  ;;  %v1431_v49 = vadd.f32 %v1430_v34, %v1357_v37  ;;  %v1113_v33 = vpop.f32.mrf.mxu3  ;;  %v4423_v37 = vld [vmem:[#allocation17_spill] sm:$0xff] }
 0x21a   :  { %v1114_v6 = vadd.f32 %v1113_v33, %v1040_v58  ;;  %v4425_v48 = vmax.f32 %v4423_v37, %v4424_v32 }
 0x21b   :  { %v1567_v21 = vpack.c.bf16 %v1542_v38, %v1542_v38  ;;  %v1464_v25 = vmax.f32 %v1107_v3, %v1431_v49  ;;  %v1043_v18 = vpop.f32.mrf.mxu1  ;;  %v4426_v49 = vld [vmem:[#allocation19_spill] sm:$0xff] }
 0x21d   :  { %v1489_v4 = vmax.f32 %v4416_v0, %v1464_v25  ;;  %2912 = vmatmul.msk.bf16.vlgmr.msra.gmra.mxu3 %vm1629_vm2, %v1567_v21 }
 0x21f   :  { %v1518_v57 = vadd.f32 %v4066_v19, %v1489_v4 }
 0x220   :  { %v1432_v17 = vpop.f32.mrf.mxu2  ;;  %v1362_v42 = vpop.f32.mrf.mxu0 }
 0x221   :  { %v1543_v23 = vmax.f32 %v1518_v57, 0.0  ;;  %v1433_v29 = vadd.f32 %v1432_v17, %v1359_v7  ;;  %v1116_v35 = vpop.f32.mrf.mxu3  ;;  %v4427_v7 = vld [vmem:[#allocation20_spill] sm:$0xff] }
 0x222   :  { %v1117_v9 = vadd.f32 %v1116_v35, %v1043_v18  ;;  %v4428_v21 = vmax.f32 %v4426_v49, %v4427_v7  ;;  %v3107_v49 = vld [vmem:[%s4343_s8 + $0x8] sm:$0xff] }
 0x223   :  { %v1568_v52 = vpack.c.bf16 %v1543_v23, %v1543_v23  ;;  %v1465_v20 = vmax.f32 %v1109_v63, %v1433_v29  ;;  %v1045_v8 = vpop.f32.mrf.mxu1 }
 0x225   :  { %v1490_v2 = vmax.f32 %v4419_v40, %v1465_v20  ;;  %2917 = vmatmul.msk.bf16.vlgmr.msra.gmra.mxu0 %vm1629_vm2, %v1568_v52 }
 0x227   :  { %v1519_v36 = vadd.f32 %v4066_v19, %v1490_v2 }
 0x228   :  { %v1435_v13 = vpop.f32.mrf.mxu2  ;;  %v1364_v12 = vpop.f32.mrf.mxu0 }
 0x229   :  { %v1544_v44 = vmax.f32 %v1519_v36, 0.0  ;;  %v1436_v26 = vadd.f32 %v1435_v13, %v1362_v42  ;;  %v1118_v62 = vpop.f32.mrf.mxu3 }
 0x22b   :  { %v1569_v59 = vpack.c.bf16 %v1544_v44, %v1544_v44  ;;  %v1466_v55 = vmax.f32 %v1112_v24, %v1436_v26  ;;  %v1642_v39 = vpop.f32.mrf.mxu1 }
 0x22d   :  { %v1491_v1 = vmax.f32 %v4422_v11, %v1466_v55  ;;  %2922 = vmatmul.msk.bf16.vlgmr.msrb.gmra.mxu2 %vm1629_vm2, %v1569_v59 }
 0x22f   :  { %v1520_v28 = vadd.f32 %v4066_v19, %v1491_v1 }
 0x230   :  { %v1437_v47 = vpop.f32.mrf.mxu2  ;;  %v1367_v46 = vpop.f32.mrf.mxu0 }
 0x231   :  { %v1545_v15 = vmax.f32 %v1520_v28, 0.0  ;;  %v1438_v10 = vadd.f32 %v1437_v47, %v1364_v12  ;;  %v1664_v54 = vpop.f32.mrf.mxu3 }
 0x232   :  { %v1665_v14 = vadd.f32 %v1664_v54, %v1642_v39 }
 0x233   :  { %v1570_v27 = vpack.c.bf16 %v1545_v15, %v1545_v15  ;;  %v1467_v60 = vmax.f32 %v1114_v6, %v1438_v10  ;;  %v1644_v61 = vpop.f32.mrf.mxu1 }
 0x235   :  { %v1492_v5 = vmax.f32 %v4425_v48, %v1467_v60  ;;  %2927 = vmatmul.msk.bf16.vlgmr.msra.gmra.mxu1 %vm1629_vm2, %v1570_v27  ;;  %v2218_v60 = vld [vmem:[%s4343_s8 + $0x38] sm:$0xf] }
 0x236   :  { %v2252_v54 = vunpack.c.l.b16 %v2218_v60 }
 0x237   :  { %v1521_v53 = vadd.f32 %v4066_v19, %v1492_v5  ;;  %v3112_v5 = vld [vmem:[%s4343_s8 + $0x30] sm:$0xff] }
 0x238   :  { %v1440_v31 = vpop.f32.mrf.mxu2  ;;  %v1369_v3 = vpop.f32.mrf.mxu0 }
 0x239   :  { %v1546_v16 = vmax.f32 %v1521_v53, 0.0  ;;  %v1441_v58 = vadd.f32 %v1440_v31, %v1367_v46  ;;  %v1666_v38 = vpop.f32.mrf.mxu3  ;;  %v3111_v53 = vld [vmem:[%s4343_s8 + $0x28] sm:$0xff]  ;;  %v3110_v31 = vld [vmem:[%s4343_s8 + $0x20] sm:$0xff]  ;;  %v3109_v3 = vld [vmem:[%s4343_s8 + $0x18] sm:$0xff] }
 0x23b   :  { %v1571_v30 = vpack.c.bf16 %v1546_v16, %v1546_v16  ;;  %v1468_v34 = vmax.f32 %v1117_v9, %v1441_v58  ;;  %v1686_v33 = vpop.f32.mrf.mxu1 }
 0x23c   :  { %v1690_v45 = vadd.f32 %v1686_v33, %v1665_v14  ;;  %v2260_v14 = vpack.c.b16 %v2252_v54, %v2252_v54 }
 0x23d   :  { %v1493_v25 = vmax.f32 %v4428_v21, %v1468_v34  ;;  %2932 = vmatmul.msk.bf16.vlgmr.msrb.gmra.mxu3 %vm1629_vm2, %v1571_v30  ;;  %v3108_v30 = vld [vmem:[%s4343_s8 + $0x10] sm:$0xff]  ;;  %v3106_v21 = vld [vmem:[%s4343_s8] sm:$0xff] }
 0x23e   :  { %v2274_v48 = vsel %vm2272_vm3, %v2260_v14, 0 }
 0x23f   :  { %v1522_v50 = vadd.f32 %v4066_v19, %v1493_v25  ;;  %2276 = vmatpush.bf16.msra.mxu2 %v2274_v48 }
 0x240   :  { %v1442_v56 = vpop.f32.mrf.mxu2  ;;  %v1732_v4 = vpop.f32.mrf.mxu0 }
 0x241   :  { %v1547_v0 = vmax.f32 %v1522_v50, 0.0  ;;  %v1709_v57 = vpop.f32.mrf.mxu3  ;;  %v2295_v56 = vld [vmem:[%s4344_s10 + $0x10] sm:$0xf] }
 0x242   :  { %v1713_v17 = vadd.f32 %v1709_v57, %v1690_v45 }
 0x243   :  { %v1572_v18 = vpack.c.bf16 %v1547_v0, %v1547_v0  ;;  %v1688_v63 = vpop.f32.mrf.mxu1  ;;  %2277 = vmatpush.bf16.msra.mxu2 %v3112_v5  ;;  %v2309_v0 = vunpack.c.l.b16 %v2295_v56 }
 0x244   :  { %v1736_v23 = vadd.f32 %v1732_v4, %v1713_v17 }
 0x245   :  { %2937 = vmatmul.msk.bf16.vlgmr.msrb.gmra.mxu0 %vm1629_vm2, %v1572_v18  ;;  %v2312_v18 = vpack.c.b16 %v2309_v0, %v2309_v0 }
 0x247   :  { %2278 = vmatpush.bf16.msra.mxu2 %v3111_v53  ;;  %v2320_v63 = vsel %vm2272_vm3, %v2312_v18, 0 }
 0x248   :  { %v1734_v29 = vpop.f32.mrf.mxu0  ;;  %2327 = vmatpush.bf16.msrb.mxu1 %v2320_v63 }
 0x249   :  { %v1711_v42 = vpop.f32.mrf.mxu3 }
 0x24b   :  { %v1778_v52 = vpop.f32.mrf.mxu1  ;;  %2279 = vmatpush.bf16.msra.mxu2 %v3110_v31 }
 0x24f   :  { %2280 = vmatpush.bf16.msra.mxu2 %v3109_v3 }
 0x250   :  { %v1847_v20 = vpop.f32.mrf.mxu2  ;;  %v1824_v35 = vpop.f32.mrf.mxu0 }
 0x251   :  { %v1755_v41 = vpop.f32.mrf.mxu3 }
 0x252   :  { %v1759_v43 = vadd.f32 %v1755_v41, %v1736_v23  ;;  %v3114_v23 = vld [vmem:[%s4344_s10 + $0x8] sm:$0xff] }
 0x253   :  { %v1780_v40 = vpop.f32.mrf.mxu1  ;;  %2281 = vmatpush.bf16.msra.mxu2 %v3108_v30  ;;  %2328 = vmatpush.bf16.msrb.mxu1 %v3114_v23 }
 0x254   :  { %v1782_v2 = vadd.f32 %v1778_v52, %v1759_v43 }
 0x257   :  { %2282 = vmatpush.bf16.msra.mxu2 %v3107_v49 }
 0x258   :  { %v1849_v19 = vpop.f32.mrf.mxu2  ;;  %v1826_v8 = vpop.f32.mrf.mxu0 }
 0x259   :  { %v1757_v24 = vpop.f32.mrf.mxu3  ;;  %v3116_v8 = vld [vmem:[%s4341_s7] ss:$0 sm:$0xff] }
 0x25b   :  { %v1870_v36 = vpop.f32.mrf.mxu1  ;;  %2283 = vmatpush.bf16.msra.mxu2 %v3106_v21 }
 0x261   :  { %v1801_v44 = vpop.f32.mrf.mxu3 }
 0x262   :  { %v1916_v13 = vpop.f32.mrf.mxu0  ;;  %v1805_v26 = vadd.f32 %v1801_v44, %v1782_v2 }
 0x263   :  { %v1872_v12 = vpop.f32.mrf.mxu1 }
 0x264   :  { %v1828_v59 = vadd.f32 %v1824_v35, %v1805_v26 }
 0x266   :  { %v1851_v55 = vadd.f32 %v1847_v20, %v1828_v59 }
 0x268   :  { %v1874_v22 = vadd.f32 %v1870_v36, %v1851_v55  ;;  %v3113_v55 = vld [vmem:[%s4344_s10] sm:$0xff] }
 0x269   :  { %v1803_v51 = vpop.f32.mrf.mxu3  ;;  %2329 = vmatpush.bf16.msrb.mxu1 %v3113_v55 }
 0x26a   :  { %v1918_v62 = vpop.f32.mrf.mxu0 }
 0x26b   :  { %v3117_v62 = vld [vmem:[%s4342_s9] ss:$0 sm:$0xff] }
 0x270   :  { %v1939_v11 = vpop.f32.mrf.mxu2 }
 0x271   :  { %v1893_v39 = vpop.f32.mrf.mxu3 }
 0x272   :  { %v1962_v1 = vpop.f32.mrf.mxu1  ;;  %v1897_v28 = vadd.f32 %v1893_v39, %v1874_v22 }
 0x274   :  { %v1920_v47 = vadd.f32 %v1916_v13, %v1897_v28  ;;  %v3118_v28 = vld [vmem:[%s4345_s11] ss:$0 sm:$0xff] }
 0x276   :  { %v1943_v7 = vadd.f32 %v1939_v11, %v1920_v47 }
 0x278   :  { %v1941_v6 = vpop.f32.mrf.mxu2  ;;  %v1966_v25 = vadd.f32 %v1962_v1, %v1943_v7 }
 0x279   :  { %v1895_v10 = vpop.f32.mrf.mxu3 }
 0x27a   :  { %v1964_v15 = vpop.f32.mrf.mxu1 }
 0x281   :  { %v1985_v27 = vpop.f32.mrf.mxu3 }
 0x282   :  { %v2008_v46 = vpop.f32.mrf.mxu0  ;;  %v1989_v45 = vadd.f32 %v1985_v27, %v1966_v25 }
 0x284   :  { %v2012_v4 = vadd.f32 %v2008_v46, %v1989_v45 }
 0x289   :  { %v1987_v32 = vpop.f32.mrf.mxu3 }
 0x28a   :  { %v2010_v37 = vpop.f32.mrf.mxu0 }
 0x290   :  { %v2031_v61 = vpop.f32.mrf.mxu2 }
 0x291   :  { %v2035_v57 = vadd.f32 %v2031_v61, %v2012_v4 }
 0x292   :  { %v2054_v9 = vpop.f32.mrf.mxu1 }
 0x293   :  { %v2058_v42 = vadd.f32 %v2054_v9, %v2035_v57 }
 0x298   :  { %v2033_v16 = vpop.f32.mrf.mxu2 }
 0x29a   :  { %v2056_v58 = vpop.f32.mrf.mxu1 }
 0x2a0   :  { %v2077_v34 = vpop.f32.mrf.mxu3 }
 0x2a1   :  { %v2081_v52 = vadd.f32 %v2077_v34, %v2058_v42 }
 0x2a2   :  { %v2100_v38 = vpop.f32.mrf.mxu0 }
 0x2a3   :  { %v2104_v35 = vadd.f32 %v2100_v38, %v2081_v52 }
 0x2a8   :  { %v2079_v33 = vpop.f32.mrf.mxu3 }
 0x2aa   :  { %v2102_v50 = vpop.f32.mrf.mxu0 }
 0x2b0   :  { %v2123_v17 = vpop.f32.mrf.mxu2 }
 0x2b1   :  { %v2127_v43 = vadd.f32 %v2123_v17, %v2104_v35 }
 0x2b2   :  { %v2146_v29 = vpop.f32.mrf.mxu1 }
 0x2b3   :  { %v2150_v40 = vadd.f32 %v2146_v29, %v2127_v43 }
 0x2b8   :  { %v2125_v20 = vpop.f32.mrf.mxu2 }
 0x2ba   :  { %v2148_v41 = vpop.f32.mrf.mxu1 }
 0x2c0   :  { %v2169_v2 = vpop.f32.mrf.mxu3 }
 0x2c1   :  { %v2173_v19 = vadd.f32 %v2169_v2, %v2150_v40 }
 0x2c2   :  { %v2192_v24 = vpop.f32.mrf.mxu0 }
 0x2c3   :  { %v2196_v36 = vadd.f32 %v2192_v24, %v2173_v19 }
 0x2c5   :  { %v2201_v13 = vadd.f32 %v3116_v8, %v2196_v36 }
 0x2c7   :  { %v2202_v44 = vmax.f32 %v2201_v13, 0.0 }
 0x2c8   :  { %v2171_v26 = vpop.f32.mrf.mxu3 }
 0x2c9   :  { %v2203_v12 = vpack.c.bf16 %v2202_v44, %v2202_v44 }
 0x2ca   :  { %v2194_v59 = vpop.f32.mrf.mxu0 }
 0x2cb   :  { %2966 = vmatmul.msk.bf16.vlgmr.msra.gmra.mxu2 %vm2268_vm4, %v2203_v12 }
 0x34e   :  { %v2285_v22 = vpop.f32.mrf.mxu2 }
 0x34f   :  { %v2286_v51 = vadd.f32 %v3117_v62, %v2285_v22 }
 0x351   :  { %v2289_v11 = vmax.f32 %v2286_v51, 0.0 }
 0x353   :  { %v2290_v1 = vpack.c.bf16 %v2289_v11, %v2289_v11 }
 0x355   :  { %2975 = vmatmul.msk.bf16.vlgmr.msrb.gmra.mxu1 %vm2315_vm5, %v2290_v1 }
 0x356   :  { %v2287_v39 = vpop.f32.mrf.mxu2 }
 0x3d2   :  { %v2331_v47 = vpop.f32.mrf.mxu1 }
 0x3d3   :  { %v2332_v6 = vadd.f32 %v3118_v28, %v2331_v47 }
 0x3d5   :  { %2336 = vst.msk [vmem:[%s4346_s12] sm:$0xff] %vm2335_vm6, %v2332_v6 }
 0x3da   :  { %v2333_v15 = vpop.f32.mrf.mxu1 }

</bundles_post_ra>
